<compile_context>
chip_gen: v7x
topology: tpu7x:2x2x1
jax: 0.10.0
libtpu: 0.0.40
codegen_flags: <defaults>
</compile_context>

<pallas_src>
import functools

import jax
import jax.numpy as jnp
from jax import lax
from jax.experimental import pallas as pl
from jax.experimental.pallas import tpu as pltpu


def _sigmoid(x):
    # Exact divide (keeps the final ret/ret2 path at f32 reference accuracy).
    return 1.0 / (1.0 + jnp.exp(-x))


def _softmax_rows(logits):
    m = jnp.max(logits, axis=1, keepdims=True)
    e = jnp.exp(logits - m)
    return e / jnp.sum(e, axis=1, keepdims=True)


# ----------------------------------------------------------------------------
# Fused forward kernel
# ----------------------------------------------------------------------------
def _gic_fused_kernel(scalars_ref, adjb_ref, xcat_ref, w1_ref, w2_ref,
                      mu0_ref, bilw_ref, ret_ref, ret2_ref, *, num_iter, n):
    f32 = jnp.float32
    bf16 = jnp.bfloat16

    temp = scalars_ref[0]      # cluster_temp
    bil_b = scalars_ref[1]     # bilinear bias

    adj_blk = adjb_ref[...]    # (2N, 2N) bf16, block-diag(adj, adj)
    x_cat = xcat_ref[...]      # (2N, n_in) bf16, [x1 ; x2] stacked on sublanes
    w1 = w1_ref[...]           # (n_in, 512) bf16
    w2 = w2_ref[...]           # (512, n_h) bf16
    n_h = w2.shape[1]

    # ------------------ 2-layer GCN, both views stacked along sublanes -------
    # bf16 MXU operands with f32 accumulation; no lane slices/concats anywhere.
    ax = jnp.dot(adj_blk, x_cat, preferred_element_type=f32)           # (2N, n_in)
    ha = jnp.maximum(jnp.dot(ax.astype(bf16), w1,
                             preferred_element_type=f32), 0.0)         # (2N, 512)
    hw = jnp.dot(ha.astype(bf16), w2, preferred_element_type=f32)      # (2N, n_h)
    # layer 2 reassociated: adj @ (h @ W2)   (identical math, far fewer MACs)
    h_cat = jnp.dot(adj_blk, hw.astype(bf16),
                    preferred_element_type=f32)                        # (2N, n_h)
    h1 = h_cat[:n]                                                     # (N, n_h)

    # ------------------ Clusterator: soft k-means, fused 10+1 iterations -----
    # NOTE: an exactly-zero row of h1 gives NaN here, matching the PyTorch
    # reference (torch.diag(1./torch.norm(data)) @ data has no eps clamp).
    data = h1 * lax.rsqrt(jnp.sum(h1 * h1, axis=1, keepdims=True))     # (N, n_h)
    data_t = temp * data        # temp folded once; softmax is scale-consistent
    # Ones column so r^T @ data_aug = [cluster_mean | cluster_r] in one MXU pass.
    data_aug = jnp.concatenate([data, jnp.ones((n, 1), f32)], axis=1)  # (N, n_h+1)

    def one_iter(_, mu):
        dist = lax.dot_general(data_t, mu, (((1,), (1,)), ((), ())),
                               preferred_element_type=f32)             # (N, K)
        r = _softmax_rows(dist)
        cm = lax.dot_general(r, data_aug, (((0,), (0,)), ((), ())),
                             preferred_element_type=f32)               # (K, n_h+1)
        return cm[:, :n_h] / cm[:, n_h:]

    mu = lax.fori_loop(0, num_iter, one_iter, mu0_ref[...], unroll=True)
    S = _softmax_rows(lax.dot_general(data_t, mu, (((1,), (1,)), ((), ())),
                                      preferred_element_type=f32))     # (N, K)
    Z = mu                                                             # (K, n_h)

    # ------------------ Bilinear discriminator vs sigmoid(avg readout) -------
    c = _sigmoid(jnp.mean(h1, axis=0, keepdims=True))                  # (1, n_h)
    wc = lax.dot_general(c, bilw_ref[...], (((1,), (1,)), ((), ())),
                         preferred_element_type=f32)                   # (1, n_h) = (W c)^T
    # ret[0, :N] = h1 @ (W c) + b, ret[0, N:] = h2 @ (W c) + b : one matmul
    ret_ref[...] = lax.dot_general(wc, h_cat, (((1,), (1,)), ((), ())),
                                   preferred_element_type=f32) + bil_b  # (1, 2N)

    # ------------------ Cluster discriminator --------------------------------
    # ret2[0, j] = <h1[j], c2[j]> for j<N, <h2[j-N], c2[j-N]> for j>=N, via
    # elementwise products + ones-vector contraction (lane-dense single store).
    c2 = _sigmoid(jnp.dot(S, Z, preferred_element_type=f32))           # (N, n_h)
    c2_cat = jnp.concatenate([c2, c2], axis=0)                         # (2N, n_h)
    e = c2_cat * h_cat                                                 # (2N, n_h)
    ret2_ref[...] = lax.dot_general(jnp.ones((1, n_h), f32), e,
                                    (((1,), (1,)), ((), ())),
                                    preferred_element_type=f32)        # (1, 2N)


# ----------------------------------------------------------------------------
# Forward wrapper: one gridless pallas_call for the whole GIC_GCN forward.
# ----------------------------------------------------------------------------
def gic_gcn_forward(params, seq1, seq2, adj, cluster_temp):
    n = adj.shape[0]
    f32, bf16 = jnp.float32, jnp.bfloat16

    # Stack the two feature views along SUBLANES and block-diagonalize adj so
    # every GCN matmul inside the kernel is a single wide, relayout-free pass.
    x_cat = jnp.concatenate([seq1[0], seq2[0]], axis=0).astype(bf16)     # (2N, n_in)
    z = jnp.zeros_like(adj)
    adj_blk = jnp.concatenate(
        [jnp.concatenate([adj, z], axis=1),
         jnp.concatenate([z, adj], axis=1)], axis=0).astype(bf16)        # (2N, 2N)

    scalars = jnp.stack([jnp.asarray(cluster_temp, f32),
                         params["bil_b"][0].astype(f32)])

    kernel = functools.partial(_gic_fused_kernel, num_iter=11, n=n)
    vmem = pltpu.MemorySpace.VMEM

    ret, ret2 = pl.pallas_call(
        kernel,
        out_shape=(jax.ShapeDtypeStruct((1, 2 * n), f32),
                   jax.ShapeDtypeStruct((1, 2 * n), f32)),
        in_specs=[
            pl.BlockSpec(memory_space=pltpu.MemorySpace.SMEM),  # [cluster_temp, bil_b]
            pl.BlockSpec(memory_space=vmem),   # adj_blk (bf16)
            pl.BlockSpec(memory_space=vmem),   # x_cat   (bf16)
            pl.BlockSpec(memory_space=vmem),   # w1      (bf16)
            pl.BlockSpec(memory_space=vmem),   # w2      (bf16)
            pl.BlockSpec(memory_space=vmem),   # mu0     (f32)
            pl.BlockSpec(memory_space=vmem),   # bil_w   (f32)
        ],
        out_specs=(pl.BlockSpec(memory_space=vmem),
                   pl.BlockSpec(memory_space=vmem)),
    )(scalars, adj_blk, x_cat,
      params["w1_t"].astype(bf16), params["w2_t"].astype(bf16),
      params["mu0"], params["bil_w"])
    return ret, ret2


# ----------------------------------------------------------------------------
# Deterministic parameter construction + driver
# ----------------------------------------------------------------------------
def make_params(key, n_in, n_hidden, n_h, num_clusters):
    k1, k2, k3, k4, k5 = jax.random.split(key, 5)
    return {
        # Linear weights stored transposed: (in, out) so kernels do x @ W_t.
        "w1_t": 0.1 * jax.random.normal(k1, (n_in, n_hidden), jnp.float32),
        "w2_t": 0.1 * jax.random.normal(k2, (n_hidden, n_h), jnp.float32),
        # nn.Bilinear(n_h, n_h, 1): weight[0] and scalar bias.
        "bil_w": 0.1 * jax.random.normal(k3, (n_h, n_h), jnp.float32),
        "bil_b": 0.05 * jax.random.normal(k4, (1,), jnp.float32),
        # Clusterator init = torch.rand(K, n_h)
        "mu0": jax.random.uniform(k5, (num_clusters, n_h), jnp.float32),
    }


if __name__ == "__main__":
    N = 64          # n_nb (nodes)
    N_IN = 32       # input feature dim
    N_HIDDEN = 512  # fixed by the module: embedding_dim = [n_in, 512, n_h]
    N_H = 32        # output embedding dim
    K = 8           # num_clusters
    CLUSTER_TEMP = 10.0

    key = jax.random.PRNGKey(0)
    kp, ka, ks1, ks2 = jax.random.split(key, 4)

    params = make_params(kp, N_IN, N_HIDDEN, N_H, K)

    # Dense row-normalized adjacency (self-loops included).
    a = jax.random.uniform(ka, (N, N), jnp.float32)
    a = (a + a.T) * 0.5
    a = jnp.where(a > 0.7, 1.0, 0.0) + jnp.eye(N, dtype=jnp.float32)
    adj = a / jnp.sum(a, axis=1, keepdims=True)

    seq1 = jax.random.normal(ks1, (1, N, N_IN), jnp.float32)
    seq2 = jax.random.normal(ks2, (1, N, N_IN), jnp.float32)  # corrupted features

    fwd = jax.jit(gic_gcn_forward)
    ret, ret2 = fwd(params, seq1, seq2, adj, CLUSTER_TEMP)
    jax.block_until_ready((ret, ret2))

    assert ret.shape == (1, 2 * N) and ret2.shape == (1, 2 * N)
    assert bool(jnp.all(jnp.isfinite(ret))) and bool(jnp.all(jnp.isfinite(ret2)))
    print("KERNEL_OK")
</pallas_src>

<mosaic_0001>
module attributes {stable_mosaic.version = 11 : i64} {
  func.func @_gic_fused_kernel(%arg0: memref<2xf32, #tpu.memory_space<smem>>, %arg1: memref<128x128xbf16, #tpu.memory_space<vmem>>, %arg2: memref<128x32xbf16, #tpu.memory_space<vmem>>, %arg3: memref<32x512xbf16, #tpu.memory_space<vmem>>, %arg4: memref<512x32xbf16, #tpu.memory_space<vmem>>, %arg5: memref<8x32xf32, #tpu.memory_space<vmem>>, %arg6: memref<32x32xf32, #tpu.memory_space<vmem>>, %arg7: memref<1x128xf32, #tpu.memory_space<vmem>>, %arg8: memref<1x128xf32, #tpu.memory_space<vmem>>) attributes {dimension_semantics = [], scalar_prefetch = 0 : i64, scratch_operands = 0 : i64, tpu.core_type = #tpu.core_type<tc>} {
    %c0 = arith.constant 0 : index
    %0 = memref.load %arg0[%c0] : memref<2xf32, #tpu.memory_space<smem>>
    %c1 = arith.constant 1 : index
    %1 = memref.load %arg0[%c1] : memref<2xf32, #tpu.memory_space<smem>>
    %c0_0 = arith.constant 0 : index
    %c0_1 = arith.constant 0 : index
    %2 = vector.load %arg1[%c0_0, %c0_1] : memref<128x128xbf16, #tpu.memory_space<vmem>>, vector<128x128xbf16>
    %c0_2 = arith.constant 0 : index
    %c0_3 = arith.constant 0 : index
    %3 = vector.load %arg2[%c0_2, %c0_3] : memref<128x32xbf16, #tpu.memory_space<vmem>>, vector<128x32xbf16>
    %c0_4 = arith.constant 0 : index
    %c0_5 = arith.constant 0 : index
    %4 = vector.load %arg3[%c0_4, %c0_5] : memref<32x512xbf16, #tpu.memory_space<vmem>>, vector<32x512xbf16>
    %c0_6 = arith.constant 0 : index
    %c0_7 = arith.constant 0 : index
    %5 = vector.load %arg4[%c0_6, %c0_7] : memref<512x32xbf16, #tpu.memory_space<vmem>>, vector<512x32xbf16>
    %cst = arith.constant dense<0.000000e+00> : vector<128x32xf32>
    %6 = tpu.matmul %2, %3, %cst {dimension_numbers = #tpu.dot_dimension_numbers<[1], [0], [0], [1], [0, 0, 1, 1], [], []>} : vector<128x128xbf16>, vector<128x32xbf16>, vector<128x32xf32> -> vector<128x32xf32>
    %7 = arith.truncf %6 : vector<128x32xf32> to vector<128x32xbf16>
    %cst_8 = arith.constant dense<0.000000e+00> : vector<128x512xf32>
    %8 = tpu.matmul %7, %4, %cst_8 {dimension_numbers = #tpu.dot_dimension_numbers<[1], [0], [0], [1], [0, 0, 1, 1], [], []>} : vector<128x32xbf16>, vector<32x512xbf16>, vector<128x512xf32> -> vector<128x512xf32>
    %cst_9 = arith.constant 0.000000e+00 : f32
    %9 = vector.broadcast %cst_9 : f32 to vector<128x512xf32>
    %10 = arith.maximumf %8, %9 : vector<128x512xf32>
    %11 = arith.truncf %10 : vector<128x512xf32> to vector<128x512xbf16>
    %cst_10 = arith.constant dense<0.000000e+00> : vector<128x32xf32>
    %12 = tpu.matmul %11, %5, %cst_10 {dimension_numbers = #tpu.dot_dimension_numbers<[1], [0], [0], [1], [0, 0, 1, 1], [], []>} : vector<128x512xbf16>, vector<512x32xbf16>, vector<128x32xf32> -> vector<128x32xf32>
    %13 = arith.truncf %12 : vector<128x32xf32> to vector<128x32xbf16>
    %cst_11 = arith.constant dense<0.000000e+00> : vector<128x32xf32>
    %14 = tpu.matmul %2, %13, %cst_11 {dimension_numbers = #tpu.dot_dimension_numbers<[1], [0], [0], [1], [0, 0, 1, 1], [], []>} : vector<128x128xbf16>, vector<128x32xbf16>, vector<128x32xf32> -> vector<128x32xf32>
    %15 = vector.extract_strided_slice %14 {offsets = [0, 0], sizes = [64, 32], strides = [1, 1]} : vector<128x32xf32> to vector<64x32xf32>
    %16 = arith.mulf %15, %15 : vector<64x32xf32>
    %cst_12 = arith.constant dense<0.000000e+00> : vector<64xf32>
    %17 = vector.multi_reduction <add>, %16, %cst_12 [1] : vector<64x32xf32> to vector<64xf32>
    %18 = vector.shape_cast %17 : vector<64xf32> to vector<64x1xf32>
    %19 = math.rsqrt %18 : vector<64x1xf32>
    %20 = vector.broadcast %19 : vector<64x1xf32> to vector<64x32xf32>
    %21 = arith.mulf %15, %20 : vector<64x32xf32>
    %22 = vector.broadcast %0 : f32 to vector<64x32xf32>
    %23 = arith.mulf %22, %21 : vector<64x32xf32>
    %cst_13 = arith.constant 1.000000e+00 : f32
    %24 = vector.broadcast %cst_13 : f32 to vector<64x1xf32>
    %25 = tpu.concatenate %21, %24 in 1 : vector<64x32xf32>, vector<64x1xf32> -> vector<64x33xf32>
    %c0_14 = arith.constant 0 : index
    %c0_15 = arith.constant 0 : index
    %26 = vector.load %arg5[%c0_14, %c0_15] : memref<8x32xf32, #tpu.memory_space<vmem>>, vector<8x32xf32>
    %c0_i32 = arith.constant 0 : i32
    %cst_16 = arith.constant dense<0.000000e+00> : vector<64x8xf32>
    %27 = tpu.matmul %23, %26, %cst_16 {dimension_numbers = #tpu.dot_dimension_numbers<[1], [1], [0], [0], [0, 0, 1, 0], [], []>} : vector<64x32xf32>, vector<8x32xf32>, vector<64x8xf32> -> vector<64x8xf32>
    %cst_17 = arith.constant dense<0xFF800000> : vector<64xf32>
    %28 = vector.multi_reduction <maximumf>, %27, %cst_17 [1] : vector<64x8xf32> to vector<64xf32>
    %29 = vector.shape_cast %28 : vector<64xf32> to vector<64x1xf32>
    %30 = vector.broadcast %29 : vector<64x1xf32> to vector<64x8xf32>
    %31 = arith.subf %27, %30 : vector<64x8xf32>
    %32 = math.exp %31 : vector<64x8xf32>
    %cst_18 = arith.constant dense<0.000000e+00> : vector<64xf32>
    %33 = vector.multi_reduction <add>, %32, %cst_18 [1] : vector<64x8xf32> to vector<64xf32>
    %34 = vector.shape_cast %33 : vector<64xf32> to vector<64x1xf32>
    %35 = vector.broadcast %34 : vector<64x1xf32> to vector<64x8xf32>
    %36 = arith.divf %32, %35 : vector<64x8xf32>
    %cst_19 = arith.constant dense<0.000000e+00> : vector<8x33xf32>
    %37 = tpu.matmul %36, %25, %cst_19 {dimension_numbers = #tpu.dot_dimension_numbers<[0], [0], [1], [1], [0, 1, 1, 1], [], []>} : vector<64x8xf32>, vector<64x33xf32>, vector<8x33xf32> -> vector<8x33xf32>
    %38 = vector.extract_strided_slice %37 {offsets = [0, 0], sizes = [8, 32], strides = [1, 1]} : vector<8x33xf32> to vector<8x32xf32>
    %39 = vector.extract_strided_slice %37 {offsets = [0, 32], sizes = [8, 1], strides = [1, 1]} : vector<8x33xf32> to vector<8x1xf32>
    %40 = vector.broadcast %39 : vector<8x1xf32> to vector<8x32xf32>
    %41 = arith.divf %38, %40 : vector<8x32xf32>
    %c1_i32 = arith.constant 1 : i32
    %cst_20 = arith.constant dense<0.000000e+00> : vector<64x8xf32>
    %42 = tpu.matmul %23, %41, %cst_20 {dimension_numbers = #tpu.dot_dimension_numbers<[1], [1], [0], [0], [0, 0, 1, 0], [], []>} : vector<64x32xf32>, vector<8x32xf32>, vector<64x8xf32> -> vector<64x8xf32>
    %cst_21 = arith.constant dense<0xFF800000> : vector<64xf32>
    %43 = vector.multi_reduction <maximumf>, %42, %cst_21 [1] : vector<64x8xf32> to vector<64xf32>
    %44 = vector.shape_cast %43 : vector<64xf32> to vector<64x1xf32>
    %45 = vector.broadcast %44 : vector<64x1xf32> to vector<64x8xf32>
    %46 = arith.subf %42, %45 : vector<64x8xf32>
    %47 = math.exp %46 : vector<64x8xf32>
    %cst_22 = arith.constant dense<0.000000e+00> : vector<64xf32>
    %48 = vector.multi_reduction <add>, %47, %cst_22 [1] : vector<64x8xf32> to vector<64xf32>
    %49 = vector.shape_cast %48 : vector<64xf32> to vector<64x1xf32>
    %50 = vector.broadcast %49 : vector<64x1xf32> to vector<64x8xf32>
    %51 = arith.divf %47, %50 : vector<64x8xf32>
    %cst_23 = arith.constant dense<0.000000e+00> : vector<8x33xf32>
    %52 = tpu.matmul %51, %25, %cst_23 {dimension_numbers = #tpu.dot_dimension_numbers<[0], [0], [1], [1], [0, 1, 1, 1], [], []>} : vector<64x8xf32>, vector<64x33xf32>, vector<8x33xf32> -> vector<8x33xf32>
    %53 = vector.extract_strided_slice %52 {offsets = [0, 0], sizes = [8, 32], strides = [1, 1]} : vector<8x33xf32> to vector<8x32xf32>
    %54 = vector.extract_strided_slice %52 {offsets = [0, 32], sizes = [8, 1], strides = [1, 1]} : vector<8x33xf32> to vector<8x1xf32>
    %55 = vector.broadcast %54 : vector<8x1xf32> to vector<8x32xf32>
    %56 = arith.divf %53, %55 : vector<8x32xf32>
    %c2_i32 = arith.constant 2 : i32
    %cst_24 = arith.constant dense<0.000000e+00> : vector<64x8xf32>
    %57 = tpu.matmul %23, %56, %cst_24 {dimension_numbers = #tpu.dot_dimension_numbers<[1], [1], [0], [0], [0, 0, 1, 0], [], []>} : vector<64x32xf32>, vector<8x32xf32>, vector<64x8xf32> -> vector<64x8xf32>
    %cst_25 = arith.constant dense<0xFF800000> : vector<64xf32>
    %58 = vector.multi_reduction <maximumf>, %57, %cst_25 [1] : vector<64x8xf32> to vector<64xf32>
    %59 = vector.shape_cast %58 : vector<64xf32> to vector<64x1xf32>
    %60 = vector.broadcast %59 : vector<64x1xf32> to vector<64x8xf32>
    %61 = arith.subf %57, %60 : vector<64x8xf32>
    %62 = math.exp %61 : vector<64x8xf32>
    %cst_26 = arith.constant dense<0.000000e+00> : vector<64xf32>
    %63 = vector.multi_reduction <add>, %62, %cst_26 [1] : vector<64x8xf32> to vector<64xf32>
    %64 = vector.shape_cast %63 : vector<64xf32> to vector<64x1xf32>
    %65 = vector.broadcast %64 : vector<64x1xf32> to vector<64x8xf32>
    %66 = arith.divf %62, %65 : vector<64x8xf32>
    %cst_27 = arith.constant dense<0.000000e+00> : vector<8x33xf32>
    %67 = tpu.matmul %66, %25, %cst_27 {dimension_numbers = #tpu.dot_dimension_numbers<[0], [0], [1], [1], [0, 1, 1, 1], [], []>} : vector<64x8xf32>, vector<64x33xf32>, vector<8x33xf32> -> vector<8x33xf32>
    %68 = vector.extract_strided_slice %67 {offsets = [0, 0], sizes = [8, 32], strides = [1, 1]} : vector<8x33xf32> to vector<8x32xf32>
    %69 = vector.extract_strided_slice %67 {offsets = [0, 32], sizes = [8, 1], strides = [1, 1]} : vector<8x33xf32> to vector<8x1xf32>
    %70 = vector.broadcast %69 : vector<8x1xf32> to vector<8x32xf32>
    %71 = arith.divf %68, %70 : vector<8x32xf32>
    %c3_i32 = arith.constant 3 : i32
    %cst_28 = arith.constant dense<0.000000e+00> : vector<64x8xf32>
    %72 = tpu.matmul %23, %71, %cst_28 {dimension_numbers = #tpu.dot_dimension_numbers<[1], [1], [0], [0], [0, 0, 1, 0], [], []>} : vector<64x32xf32>, vector<8x32xf32>, vector<64x8xf32> -> vector<64x8xf32>
    %cst_29 = arith.constant dense<0xFF800000> : vector<64xf32>
    %73 = vector.multi_reduction <maximumf>, %72, %cst_29 [1] : vector<64x8xf32> to vector<64xf32>
    %74 = vector.shape_cast %73 : vector<64xf32> to vector<64x1xf32>
    %75 = vector.broadcast %74 : vector<64x1xf32> to vector<64x8xf32>
    %76 = arith.subf %72, %75 : vector<64x8xf32>
    %77 = math.exp %76 : vector<64x8xf32>
    %cst_30 = arith.constant dense<0.000000e+00> : vector<64xf32>
    %78 = vector.multi_reduction <add>, %77, %cst_30 [1] : vector<64x8xf32> to vector<64xf32>
    %79 = vector.shape_cast %78 : vector<64xf32> to vector<64x1xf32>
    %80 = vector.broadcast %79 : vector<64x1xf32> to vector<64x8xf32>
    %81 = arith.divf %77, %80 : vector<64x8xf32>
    %cst_31 = arith.constant dense<0.000000e+00> : vector<8x33xf32>
    %82 = tpu.matmul %81, %25, %cst_31 {dimension_numbers = #tpu.dot_dimension_numbers<[0], [0], [1], [1], [0, 1, 1, 1], [], []>} : vector<64x8xf32>, vector<64x33xf32>, vector<8x33xf32> -> vector<8x33xf32>
    %83 = vector.extract_strided_slice %82 {offsets = [0, 0], sizes = [8, 32], strides = [1, 1]} : vector<8x33xf32> to vector<8x32xf32>
    %84 = vector.extract_strided_slice %82 {offsets = [0, 32], sizes = [8, 1], strides = [1, 1]} : vector<8x33xf32> to vector<8x1xf32>
    %85 = vector.broadcast %84 : vector<8x1xf32> to vector<8x32xf32>
    %86 = arith.divf %83, %85 : vector<8x32xf32>
    %c4_i32 = arith.constant 4 : i32
    %cst_32 = arith.constant dense<0.000000e+00> : vector<64x8xf32>
    %87 = tpu.matmul %23, %86, %cst_32 {dimension_numbers = #tpu.dot_dimension_numbers<[1], [1], [0], [0], [0, 0, 1, 0], [], []>} : vector<64x32xf32>, vector<8x32xf32>, vector<64x8xf32> -> vector<64x8xf32>
    %cst_33 = arith.constant dense<0xFF800000> : vector<64xf32>
    %88 = vector.multi_reduction <maximumf>, %87, %cst_33 [1] : vector<64x8xf32> to vector<64xf32>
    %89 = vector.shape_cast %88 : vector<64xf32> to vector<64x1xf32>
    %90 = vector.broadcast %89 : vector<64x1xf32> to vector<64x8xf32>
    %91 = arith.subf %87, %90 : vector<64x8xf32>
    %92 = math.exp %91 : vector<64x8xf32>
    %cst_34 = arith.constant dense<0.000000e+00> : vector<64xf32>
    %93 = vector.multi_reduction <add>, %92, %cst_34 [1] : vector<64x8xf32> to vector<64xf32>
    %94 = vector.shape_cast %93 : vector<64xf32> to vector<64x1xf32>
    %95 = vector.broadcast %94 : vector<64x1xf32> to vector<64x8xf32>
    %96 = arith.divf %92, %95 : vector<64x8xf32>
    %cst_35 = arith.constant dense<0.000000e+00> : vector<8x33xf32>
    %97 = tpu.matmul %96, %25, %cst_35 {dimension_numbers = #tpu.dot_dimension_numbers<[0], [0], [1], [1], [0, 1, 1, 1], [], []>} : vector<64x8xf32>, vector<64x33xf32>, vector<8x33xf32> -> vector<8x33xf32>
    %98 = vector.extract_strided_slice %97 {offsets = [0, 0], sizes = [8, 32], strides = [1, 1]} : vector<8x33xf32> to vector<8x32xf32>
    %99 = vector.extract_strided_slice %97 {offsets = [0, 32], sizes = [8, 1], strides = [1, 1]} : vector<8x33xf32> to vector<8x1xf32>
    %100 = vector.broadcast %99 : vector<8x1xf32> to vector<8x32xf32>
    %101 = arith.divf %98, %100 : vector<8x32xf32>
    %c5_i32 = arith.constant 5 : i32
    %cst_36 = arith.constant dense<0.000000e+00> : vector<64x8xf32>
    %102 = tpu.matmul %23, %101, %cst_36 {dimension_numbers = #tpu.dot_dimension_numbers<[1], [1], [0], [0], [0, 0, 1, 0], [], []>} : vector<64x32xf32>, vector<8x32xf32>, vector<64x8xf32> -> vector<64x8xf32>
    %cst_37 = arith.constant dense<0xFF800000> : vector<64xf32>
    %103 = vector.multi_reduction <maximumf>, %102, %cst_37 [1] : vector<64x8xf32> to vector<64xf32>
    %104 = vector.shape_cast %103 : vector<64xf32> to vector<64x1xf32>
    %105 = vector.broadcast %104 : vector<64x1xf32> to vector<64x8xf32>
    %106 = arith.subf %102, %105 : vector<64x8xf32>
    %107 = math.exp %106 : vector<64x8xf32>
    %cst_38 = arith.constant dense<0.000000e+00> : vector<64xf32>
    %108 = vector.multi_reduction <add>, %107, %cst_38 [1] : vector<64x8xf32> to vector<64xf32>
    %109 = vector.shape_cast %108 : vector<64xf32> to vector<64x1xf32>
    %110 = vector.broadcast %109 : vector<64x1xf32> to vector<64x8xf32>
    %111 = arith.divf %107, %110 : vector<64x8xf32>
    %cst_39 = arith.constant dense<0.000000e+00> : vector<8x33xf32>
    %112 = tpu.matmul %111, %25, %cst_39 {dimension_numbers = #tpu.dot_dimension_numbers<[0], [0], [1], [1], [0, 1, 1, 1], [], []>} : vector<64x8xf32>, vector<64x33xf32>, vector<8x33xf32> -> vector<8x33xf32>
    %113 = vector.extract_strided_slice %112 {offsets = [0, 0], sizes = [8, 32], strides = [1, 1]} : vector<8x33xf32> to vector<8x32xf32>
    %114 = vector.extract_strided_slice %112 {offsets = [0, 32], sizes = [8, 1], strides = [1, 1]} : vector<8x33xf32> to vector<8x1xf32>
    %115 = vector.broadcast %114 : vector<8x1xf32> to vector<8x32xf32>
    %116 = arith.divf %113, %115 : vector<8x32xf32>
    %c6_i32 = arith.constant 6 : i32
    %cst_40 = arith.constant dense<0.000000e+00> : vector<64x8xf32>
    %117 = tpu.matmul %23, %116, %cst_40 {dimension_numbers = #tpu.dot_dimension_numbers<[1], [1], [0], [0], [0, 0, 1, 0], [], []>} : vector<64x32xf32>, vector<8x32xf32>, vector<64x8xf32> -> vector<64x8xf32>
    %cst_41 = arith.constant dense<0xFF800000> : vector<64xf32>
    %118 = vector.multi_reduction <maximumf>, %117, %cst_41 [1] : vector<64x8xf32> to vector<64xf32>
    %119 = vector.shape_cast %118 : vector<64xf32> to vector<64x1xf32>
    %120 = vector.broadcast %119 : vector<64x1xf32> to vector<64x8xf32>
    %121 = arith.subf %117, %120 : vector<64x8xf32>
    %122 = math.exp %121 : vector<64x8xf32>
    %cst_42 = arith.constant dense<0.000000e+00> : vector<64xf32>
    %123 = vector.multi_reduction <add>, %122, %cst_42 [1] : vector<64x8xf32> to vector<64xf32>
    %124 = vector.shape_cast %123 : vector<64xf32> to vector<64x1xf32>
    %125 = vector.broadcast %124 : vector<64x1xf32> to vector<64x8xf32>
    %126 = arith.divf %122, %125 : vector<64x8xf32>
    %cst_43 = arith.constant dense<0.000000e+00> : vector<8x33xf32>
    %127 = tpu.matmul %126, %25, %cst_43 {dimension_numbers = #tpu.dot_dimension_numbers<[0], [0], [1], [1], [0, 1, 1, 1], [], []>} : vector<64x8xf32>, vector<64x33xf32>, vector<8x33xf32> -> vector<8x33xf32>
    %128 = vector.extract_strided_slice %127 {offsets = [0, 0], sizes = [8, 32], strides = [1, 1]} : vector<8x33xf32> to vector<8x32xf32>
    %129 = vector.extract_strided_slice %127 {offsets = [0, 32], sizes = [8, 1], strides = [1, 1]} : vector<8x33xf32> to vector<8x1xf32>
    %130 = vector.broadcast %129 : vector<8x1xf32> to vector<8x32xf32>
    %131 = arith.divf %128, %130 : vector<8x32xf32>
    %c7_i32 = arith.constant 7 : i32
    %cst_44 = arith.constant dense<0.000000e+00> : vector<64x8xf32>
    %132 = tpu.matmul %23, %131, %cst_44 {dimension_numbers = #tpu.dot_dimension_numbers<[1], [1], [0], [0], [0, 0, 1, 0], [], []>} : vector<64x32xf32>, vector<8x32xf32>, vector<64x8xf32> -> vector<64x8xf32>
    %cst_45 = arith.constant dense<0xFF800000> : vector<64xf32>
    %133 = vector.multi_reduction <maximumf>, %132, %cst_45 [1] : vector<64x8xf32> to vector<64xf32>
    %134 = vector.shape_cast %133 : vector<64xf32> to vector<64x1xf32>
    %135 = vector.broadcast %134 : vector<64x1xf32> to vector<64x8xf32>
    %136 = arith.subf %132, %135 : vector<64x8xf32>
    %137 = math.exp %136 : vector<64x8xf32>
    %cst_46 = arith.constant dense<0.000000e+00> : vector<64xf32>
    %138 = vector.multi_reduction <add>, %137, %cst_46 [1] : vector<64x8xf32> to vector<64xf32>
    %139 = vector.shape_cast %138 : vector<64xf32> to vector<64x1xf32>
    %140 = vector.broadcast %139 : vector<64x1xf32> to vector<64x8xf32>
    %141 = arith.divf %137, %140 : vector<64x8xf32>
    %cst_47 = arith.constant dense<0.000000e+00> : vector<8x33xf32>
    %142 = tpu.matmul %141, %25, %cst_47 {dimension_numbers = #tpu.dot_dimension_numbers<[0], [0], [1], [1], [0, 1, 1, 1], [], []>} : vector<64x8xf32>, vector<64x33xf32>, vector<8x33xf32> -> vector<8x33xf32>
    %143 = vector.extract_strided_slice %142 {offsets = [0, 0], sizes = [8, 32], strides = [1, 1]} : vector<8x33xf32> to vector<8x32xf32>
    %144 = vector.extract_strided_slice %142 {offsets = [0, 32], sizes = [8, 1], strides = [1, 1]} : vector<8x33xf32> to vector<8x1xf32>
    %145 = vector.broadcast %144 : vector<8x1xf32> to vector<8x32xf32>
    %146 = arith.divf %143, %145 : vector<8x32xf32>
    %c8_i32 = arith.constant 8 : i32
    %cst_48 = arith.constant dense<0.000000e+00> : vector<64x8xf32>
    %147 = tpu.matmul %23, %146, %cst_48 {dimension_numbers = #tpu.dot_dimension_numbers<[1], [1], [0], [0], [0, 0, 1, 0], [], []>} : vector<64x32xf32>, vector<8x32xf32>, vector<64x8xf32> -> vector<64x8xf32>
    %cst_49 = arith.constant dense<0xFF800000> : vector<64xf32>
    %148 = vector.multi_reduction <maximumf>, %147, %cst_49 [1] : vector<64x8xf32> to vector<64xf32>
    %149 = vector.shape_cast %148 : vector<64xf32> to vector<64x1xf32>
    %150 = vector.broadcast %149 : vector<64x1xf32> to vector<64x8xf32>
    %151 = arith.subf %147, %150 : vector<64x8xf32>
    %152 = math.exp %151 : vector<64x8xf32>
    %cst_50 = arith.constant dense<0.000000e+00> : vector<64xf32>
    %153 = vector.multi_reduction <add>, %152, %cst_50 [1] : vector<64x8xf32> to vector<64xf32>
    %154 = vector.shape_cast %153 : vector<64xf32> to vector<64x1xf32>
    %155 = vector.broadcast %154 : vector<64x1xf32> to vector<64x8xf32>
    %156 = arith.divf %152, %155 : vector<64x8xf32>
    %cst_51 = arith.constant dense<0.000000e+00> : vector<8x33xf32>
    %157 = tpu.matmul %156, %25, %cst_51 {dimension_numbers = #tpu.dot_dimension_numbers<[0], [0], [1], [1], [0, 1, 1, 1], [], []>} : vector<64x8xf32>, vector<64x33xf32>, vector<8x33xf32> -> vector<8x33xf32>
    %158 = vector.extract_strided_slice %157 {offsets = [0, 0], sizes = [8, 32], strides = [1, 1]} : vector<8x33xf32> to vector<8x32xf32>
    %159 = vector.extract_strided_slice %157 {offsets = [0, 32], sizes = [8, 1], strides = [1, 1]} : vector<8x33xf32> to vector<8x1xf32>
    %160 = vector.broadcast %159 : vector<8x1xf32> to vector<8x32xf32>
    %161 = arith.divf %158, %160 : vector<8x32xf32>
    %c9_i32 = arith.constant 9 : i32
    %cst_52 = arith.constant dense<0.000000e+00> : vector<64x8xf32>
    %162 = tpu.matmul %23, %161, %cst_52 {dimension_numbers = #tpu.dot_dimension_numbers<[1], [1], [0], [0], [0, 0, 1, 0], [], []>} : vector<64x32xf32>, vector<8x32xf32>, vector<64x8xf32> -> vector<64x8xf32>
    %cst_53 = arith.constant dense<0xFF800000> : vector<64xf32>
    %163 = vector.multi_reduction <maximumf>, %162, %cst_53 [1] : vector<64x8xf32> to vector<64xf32>
    %164 = vector.shape_cast %163 : vector<64xf32> to vector<64x1xf32>
    %165 = vector.broadcast %164 : vector<64x1xf32> to vector<64x8xf32>
    %166 = arith.subf %162, %165 : vector<64x8xf32>
    %167 = math.exp %166 : vector<64x8xf32>
    %cst_54 = arith.constant dense<0.000000e+00> : vector<64xf32>
    %168 = vector.multi_reduction <add>, %167, %cst_54 [1] : vector<64x8xf32> to vector<64xf32>
    %169 = vector.shape_cast %168 : vector<64xf32> to vector<64x1xf32>
    %170 = vector.broadcast %169 : vector<64x1xf32> to vector<64x8xf32>
    %171 = arith.divf %167, %170 : vector<64x8xf32>
    %cst_55 = arith.constant dense<0.000000e+00> : vector<8x33xf32>
    %172 = tpu.matmul %171, %25, %cst_55 {dimension_numbers = #tpu.dot_dimension_numbers<[0], [0], [1], [1], [0, 1, 1, 1], [], []>} : vector<64x8xf32>, vector<64x33xf32>, vector<8x33xf32> -> vector<8x33xf32>
    %173 = vector.extract_strided_slice %172 {offsets = [0, 0], sizes = [8, 32], strides = [1, 1]} : vector<8x33xf32> to vector<8x32xf32>
    %174 = vector.extract_strided_slice %172 {offsets = [0, 32], sizes = [8, 1], strides = [1, 1]} : vector<8x33xf32> to vector<8x1xf32>
    %175 = vector.broadcast %174 : vector<8x1xf32> to vector<8x32xf32>
    %176 = arith.divf %173, %175 : vector<8x32xf32>
    %c10_i32 = arith.constant 10 : i32
    %cst_56 = arith.constant dense<0.000000e+00> : vector<64x8xf32>
    %177 = tpu.matmul %23, %176, %cst_56 {dimension_numbers = #tpu.dot_dimension_numbers<[1], [1], [0], [0], [0, 0, 1, 0], [], []>} : vector<64x32xf32>, vector<8x32xf32>, vector<64x8xf32> -> vector<64x8xf32>
    %cst_57 = arith.constant dense<0xFF800000> : vector<64xf32>
    %178 = vector.multi_reduction <maximumf>, %177, %cst_57 [1] : vector<64x8xf32> to vector<64xf32>
    %179 = vector.shape_cast %178 : vector<64xf32> to vector<64x1xf32>
    %180 = vector.broadcast %179 : vector<64x1xf32> to vector<64x8xf32>
    %181 = arith.subf %177, %180 : vector<64x8xf32>
    %182 = math.exp %181 : vector<64x8xf32>
    %cst_58 = arith.constant dense<0.000000e+00> : vector<64xf32>
    %183 = vector.multi_reduction <add>, %182, %cst_58 [1] : vector<64x8xf32> to vector<64xf32>
    %184 = vector.shape_cast %183 : vector<64xf32> to vector<64x1xf32>
    %185 = vector.broadcast %184 : vector<64x1xf32> to vector<64x8xf32>
    %186 = arith.divf %182, %185 : vector<64x8xf32>
    %cst_59 = arith.constant dense<0.000000e+00> : vector<8x33xf32>
    %187 = tpu.matmul %186, %25, %cst_59 {dimension_numbers = #tpu.dot_dimension_numbers<[0], [0], [1], [1], [0, 1, 1, 1], [], []>} : vector<64x8xf32>, vector<64x33xf32>, vector<8x33xf32> -> vector<8x33xf32>
    %188 = vector.extract_strided_slice %187 {offsets = [0, 0], sizes = [8, 32], strides = [1, 1]} : vector<8x33xf32> to vector<8x32xf32>
    %189 = vector.extract_strided_slice %187 {offsets = [0, 32], sizes = [8, 1], strides = [1, 1]} : vector<8x33xf32> to vector<8x1xf32>
    %190 = vector.broadcast %189 : vector<8x1xf32> to vector<8x32xf32>
    %191 = arith.divf %188, %190 : vector<8x32xf32>
    %cst_60 = arith.constant dense<0.000000e+00> : vector<64x8xf32>
    %192 = tpu.matmul %23, %191, %cst_60 {dimension_numbers = #tpu.dot_dimension_numbers<[1], [1], [0], [0], [0, 0, 1, 0], [], []>} : vector<64x32xf32>, vector<8x32xf32>, vector<64x8xf32> -> vector<64x8xf32>
    %cst_61 = arith.constant dense<0xFF800000> : vector<64xf32>
    %193 = vector.multi_reduction <maximumf>, %192, %cst_61 [1] : vector<64x8xf32> to vector<64xf32>
    %194 = vector.shape_cast %193 : vector<64xf32> to vector<64x1xf32>
    %195 = vector.broadcast %194 : vector<64x1xf32> to vector<64x8xf32>
    %196 = arith.subf %192, %195 : vector<64x8xf32>
    %197 = math.exp %196 : vector<64x8xf32>
    %cst_62 = arith.constant dense<0.000000e+00> : vector<64xf32>
    %198 = vector.multi_reduction <add>, %197, %cst_62 [1] : vector<64x8xf32> to vector<64xf32>
    %199 = vector.shape_cast %198 : vector<64xf32> to vector<64x1xf32>
    %200 = vector.broadcast %199 : vector<64x1xf32> to vector<64x8xf32>
    %201 = arith.divf %197, %200 : vector<64x8xf32>
    %cst_63 = arith.constant dense<0.000000e+00> : vector<32xf32>
    %202 = vector.multi_reduction <add>, %15, %cst_63 [0] : vector<64x32xf32> to vector<32xf32>
    %203 = vector.shape_cast %202 : vector<32xf32> to vector<1x32xf32>
    %cst_64 = arith.constant 6.400000e+01 : f32
    %204 = vector.broadcast %cst_64 : f32 to vector<1x32xf32>
    %205 = arith.divf %203, %204 : vector<1x32xf32>
    %cst_65 = arith.constant 0.000000e+00 : f32
    %206 = vector.broadcast %cst_65 : f32 to vector<1x32xf32>
    %207 = arith.subf %206, %205 : vector<1x32xf32>
    %208 = math.exp %207 : vector<1x32xf32>
    %cst_66 = arith.constant 1.000000e+00 : f32
    %209 = vector.broadcast %cst_66 : f32 to vector<1x32xf32>
    %210 = arith.addf %209, %208 : vector<1x32xf32>
    %cst_67 = arith.constant 1.000000e+00 : f32
    %211 = vector.broadcast %cst_67 : f32 to vector<1x32xf32>
    %212 = arith.divf %211, %210 : vector<1x32xf32>
    %c0_68 = arith.constant 0 : index
    %c0_69 = arith.constant 0 : index
    %213 = vector.load %arg6[%c0_68, %c0_69] : memref<32x32xf32, #tpu.memory_space<vmem>>, vector<32x32xf32>
    %cst_70 = arith.constant dense<0.000000e+00> : vector<1x32xf32>
    %214 = tpu.matmul %212, %213, %cst_70 {dimension_numbers = #tpu.dot_dimension_numbers<[1], [1], [0], [0], [0, 0, 1, 0], [], []>} : vector<1x32xf32>, vector<32x32xf32>, vector<1x32xf32> -> vector<1x32xf32>
    %cst_71 = arith.constant dense<0.000000e+00> : vector<1x128xf32>
    %215 = tpu.matmul %214, %14, %cst_71 {dimension_numbers = #tpu.dot_dimension_numbers<[1], [1], [0], [0], [0, 0, 1, 0], [], []>} : vector<1x32xf32>, vector<128x32xf32>, vector<1x128xf32> -> vector<1x128xf32>
    %216 = vector.broadcast %1 : f32 to vector<1x128xf32>
    %217 = arith.addf %215, %216 : vector<1x128xf32>
    %c0_72 = arith.constant 0 : index
    %c0_73 = arith.constant 0 : index
    %218 = vector.load %arg7[%c0_72, %c0_73] : memref<1x128xf32, #tpu.memory_space<vmem>>, vector<1x128xf32>
    tpu.vector_store %arg7[%c0_72, %c0_73], %217 {strides = array<i32>} : memref<1x128xf32, #tpu.memory_space<vmem>>, vector<1x128xf32>,
    %cst_74 = arith.constant dense<0.000000e+00> : vector<64x32xf32>
    %219 = tpu.matmul %201, %191, %cst_74 {dimension_numbers = #tpu.dot_dimension_numbers<[1], [0], [0], [1], [0, 0, 1, 1], [], []>} : vector<64x8xf32>, vector<8x32xf32>, vector<64x32xf32> -> vector<64x32xf32>
    %cst_75 = arith.constant 0.000000e+00 : f32
    %220 = vector.broadcast %cst_75 : f32 to vector<64x32xf32>
    %221 = arith.subf %220, %219 : vector<64x32xf32>
    %222 = math.exp %221 : vector<64x32xf32>
    %cst_76 = arith.constant 1.000000e+00 : f32
    %223 = vector.broadcast %cst_76 : f32 to vector<64x32xf32>
    %224 = arith.addf %223, %222 : vector<64x32xf32>
    %cst_77 = arith.constant 1.000000e+00 : f32
    %225 = vector.broadcast %cst_77 : f32 to vector<64x32xf32>
    %226 = arith.divf %225, %224 : vector<64x32xf32>
    %227 = tpu.concatenate %226, %226 in 0 : vector<64x32xf32>, vector<64x32xf32> -> vector<128x32xf32>
    %228 = arith.mulf %227, %14 : vector<128x32xf32>
    %cst_78 = arith.constant 1.000000e+00 : f32
    %229 = vector.broadcast %cst_78 : f32 to vector<1x32xf32>
    %cst_79 = arith.constant dense<0.000000e+00> : vector<1x128xf32>
    %230 = tpu.matmul %229, %228, %cst_79 {dimension_numbers = #tpu.dot_dimension_numbers<[1], [1], [0], [0], [0, 0, 1, 0], [], []>} : vector<1x32xf32>, vector<128x32xf32>, vector<1x128xf32> -> vector<1x128xf32>
    %c0_80 = arith.constant 0 : index
    %c0_81 = arith.constant 0 : index
    %231 = vector.load %arg8[%c0_80, %c0_81] : memref<1x128xf32, #tpu.memory_space<vmem>>, vector<1x128xf32>
    tpu.vector_store %arg8[%c0_80, %c0_81], %230 {strides = array<i32>} : memref<1x128xf32, #tpu.memory_space<vmem>>, vector<1x128xf32>,
    return
  }
}

</mosaic_0001>

<bundles_post_ra>
// kernel: gic_gcn_forward.1
= control target key start
LH: loop header
LB: loop body
LE: loop exit
PB: predicated region body
PF: predicated region fallthrough
CT: control target
= control target key end

     0   :  { %14 = vsyncpa [#allocation4], 0  ;;  %s8584_s0 = inlined_call_operand.vmem [shape: f32[2], index: 0, kind: input, shape index: {}]   ;;  %s8585_s1 = inlined_call_operand.vmem [shape: bf16[128,128], index: 1, kind: input, shape index: {}]   ;;  %s8586_s2 = inlined_call_operand.vmem [shape: bf16[128,32], index: 2, kind: input, shape index: {}]   ;;  %s8587_s3 = inlined_call_operand.vmem [shape: bf16[32,512], index: 3, kind: input, shape index: {}]   ;;  %s8588_s4 = inlined_call_operand.vmem [shape: bf16[512,32], index: 4, kind: input, shape index: {}]   ;;  %s8589_s5 = inlined_call_operand.vmem [shape: f32[8,32], index: 5, kind: input, shape index: {}]   ;;  %s8590_s6 = inlined_call_operand.vmem [shape: f32[32,32], index: 6, kind: input, shape index: {}]   ;;  %s8591_s7 = inlined_call_operand.hbm [shape: f32[1,128], index: 7, kind: output, shape index: {0}]   ;;  %s8592_s8 = inlined_call_operand.hbm [shape: f32[1,128], index: 8, kind: output, shape index: {1}]  }
   0x1   :  { %15 = vsyncpa [#allocation3], 0 }
   0x2   :  { %16 = vsyncpa [#allocation7], 0  ;;  %s23_s29 = sshll.u32 %s8584_s0, 4  ;;  %s24_s29 = int_to_ptr.vmem [resolvable:$true] %s23_s29 }
   0x3   :  { %s7415_s30 = scalar_lea.vmem %s24_s29, 16  ;;  %p7420_p1 = scmp.lt.s32.totalorder %s24_s29, %s24_s29 }
   0x4   :  { %p7416_p0 = scmp.ne.s32.totalorder %s24_s29, %s7415_s30  ;;  %p7421_p2 = scmp.lt.s32.totalorder %s7415_s30, %s7415_s30 }
   0x6   :  { %p7422_p3 = por %p7421_p2, %p7420_p1 }
   0x8   :  { %p7423_p4 = pnand %p7422_p3, %p7416_p0 }
   0xa   :  { %7426 = shalt.err (!%p7423_p4)
}
   0xb   :  { %s7477_s9 = smov [#allocation2]  }
   0xc   :  { %26 = dma.vmem_to_smem %s24_s29, 16, %s7477_s9, [#allocation4]  }
   0xd   :  { %7471 = dma.done.wait [#allocation4], 16  }
   0xe   :  { %7472 = vsyncadd [#allocation4], 4294967280 }
   0xf   :  { %42 = sfence }
  0x10   :  { %v6895_v0 = vld [vmem:[%s8586_s2] sm:$0xff]   ;;  %v6896_v1 = vld [vmem:[%s8586_s2 + $0x8] sm:$0xff]   ;;  %v6897_v2 = vld [vmem:[%s8586_s2 + $0x10] sm:$0xff]   ;;  %v7478_v24 = vmov 0   ;;  %vm391_vm0 = vcmask 261120   ;;  %vm1427_vm1 = vcmask 64512  }
  0x11   :  { %6144 = vmatprep.subr.bf16.mxu0 %v6895_v0  ;;  %v6898_v3 = vld [vmem:[%s8586_s2 + $0x18] sm:$0xff]   ;;  %v7549_v4 = vld [vmem:[%s8585_s1] sm:$0xff]   ;;  %v6900_v6 = vld [vmem:[%s8586_s2 + $0x28] sm:$0xff]   ;;  %448 = vmatprep.mubr.bf16.mxu1 %v7478_v24  ;;  %vm7480_vm2 = vmmov 0   ;;  %vm1548_vm3 = vcmask 523264   ;;  %s7484_s12 = smov [#allocation5]  }
  0x12   :  { %6145 = vmatpush3.bf16.msra.mxu0 %v6895_v0  ;;  %6160 = vmatprep.mubr.bf16.mxu0 %v7549_v4  ;;  %v6899_v5 = vld [vmem:[%s8586_s2 + $0x20] sm:$0xff]   ;;  %v6901_v7 = vld [vmem:[%s8586_s2 + $0x30] sm:$0xff]   ;;  %v6902_v10 = vld [vmem:[%s8586_s2 + $0x38] sm:$0xff]   ;;  %s5467_s13 = sshll.u32 %s7484_s12, 4  ;;  %s5468_s13 = int_to_ptr.vmem [resolvable:$true] %s5467_s13 }
  0x13   :  { %6146 = vmatprep.subr.bf16.mxu0 %v6896_v1  ;;  %v6917_v8 = vld [vmem:[%s8587_s3 + $0x4] ss:$16 sps:$4 sm:$0xff]   ;;  %v6919_v9 = vld [vmem:[%s8587_s3] ss:$16 sps:$4 sm:$0xff]   ;;  %v6913_v11 = vld [vmem:[%s8587_s3 + $0xc] ss:$16 sps:$4 sm:$0xff]   ;;  %p7432_p6 = scmp.lt.s32.totalorder %s5468_s13, %s5468_s13 }
  0x14   :  { %416 = vmatprep.subr.bf16.mxu1 %v6917_v8  ;;  %v6904_v12 = vld [vmem:[%s8585_s1 + $0x8] sm:$0xff]   ;;  %v6905_v13 = vld [vmem:[%s8585_s1 + $0x10] sm:$0xff]   ;;  %v7591_v17 = vld [vmem:[%s8585_s1 + $0x18] sm:$0xff]   ;;  %s7427_s0 = scalar_lea.vmem %s5468_s13, 16 }
  0x15   :  { %417 = vmatpush1.bf16.msra.mxu1 %v6919_v9  ;;  %v6911_v14 = vld [vmem:[%s8587_s3 + $0x8] ss:$16 sps:$4 sm:$0xff]   ;;  %v6916_v15 = vld [vmem:[%s8587_s3 + $0x2c] ss:$16 sps:$4 sm:$0xff]   ;;  %v7596_v18 = vld [vmem:[%s8585_s1 + $0x20] sm:$0xff]   ;;  %p7428_p5 = scmp.ne.s32.totalorder %s5468_s13, %s7427_s0 }
  0x16   :  { %6147 = vmatpush3.bf16.msra.mxu0 %v6896_v1  ;;  %v6914_v16 = vld [vmem:[%s8587_s3 + $0x28] ss:$16 sps:$4 sm:$0xff]   ;;  %v7608_v20 = vld [vmem:[%s8585_s1 + $0x30] sm:$0xff]   ;;  %v6923_v25 = vld [vmem:[%s8588_s4 + $0x40] sm:$0xff]  }
  0x17   :  { %6148 = vmatprep.subr.bf16.mxu0 %v6897_v2  ;;  %v7603_v19 = vld [vmem:[%s8585_s1 + $0x28] sm:$0xff]   ;;  %v7615_v21 = vld [vmem:[%s8585_s1 + $0x38] sm:$0xff]   ;;  %v6920_v22 = vld [vmem:[%s8587_s3 + $0x24] ss:$16 sps:$4 sm:$0xff]  }
  0x18   :  { %v6922_v23 = vld [vmem:[%s8587_s3 + $0x20] ss:$16 sps:$4 sm:$0xff]   ;;  %418 = vmatprep.subr.bf16.mxu1 %v6920_v22  ;;  %v6927_v35 = vld [vmem:[%s8588_s4 + $0x48] sm:$0xff]   ;;  %v6935_v49 = vld [vmem:[%s8588_s4 + $0x58] sm:$0xff]   ;;  %s7431_s3 = scalar_lea.vmem %s5468_s13, 32 }
  0x19   :  { %419 = vmatpush1.bf16.msra.mxu1 %v6922_v23  ;;  %v6924_v26 = vld [vmem:[%s8588_s4 + $0xc0] sm:$0xff]   ;;  %v6928_v36 = vld [vmem:[%s8588_s4 + $0xc8] sm:$0xff]   ;;  %v6931_v41 = vld [vmem:[%s8588_s4 + $0x50] sm:$0xff]   ;;  %p7433_p7 = scmp.lt.s32.totalorder %s7431_s3, %s7427_s0 }
  0x1a   :  { %6149 = vmatpush3.bf16.msra.mxu0 %v6897_v2  ;;  %5745 = vmatprep.subr.bf16.mxu1 %v6923_v25  ;;  %v6925_v33 = vld [vmem:[%s8588_s4] sm:$0xff]   ;;  %v6929_v38 = vld [vmem:[%s8588_s4 + $0x8] sm:$0xff]   ;;  %v6932_v42 = vld [vmem:[%s8588_s4 + $0xd0] sm:$0xff]  }
  0x1b   :  { %6150 = vmatprep.subr.bf16.mxu0 %v6898_v3  ;;  %v6926_v34 = vld [vmem:[%s8588_s4 + $0x80] sm:$0xff]   ;;  %v6930_v39 = vld [vmem:[%s8588_s4 + $0x88] sm:$0xff]   ;;  %v6933_v47 = vld [vmem:[%s8588_s4 + $0x10] sm:$0xff]   ;;  %p7434_p8 = por %p7433_p7, %p7432_p6 }
  0x1c   :  { %v6934_v48 = vld [vmem:[%s8588_s4 + $0x90] sm:$0xff]   ;;  %v6936_v50 = vld [vmem:[%s8588_s4 + $0xd8] sm:$0xff]   ;;  %v6939_v55 = vld [vmem:[%s8588_s4 + $0x60] sm:$0xff]  }
  0x1d   :  { %v6937_v52 = vld [vmem:[%s8588_s4 + $0x18] sm:$0xff]   ;;  %v6940_v56 = vld [vmem:[%s8588_s4 + $0xe0] sm:$0xff]   ;;  %v6943_v63 = vld [vmem:[%s8588_s4 + $0x68] sm:$0xff]   ;;  %p7435_p9 = pnand %p7434_p8, %p7428_p5 }
  0x1e   :  { %6151 = vmatpush3.bf16.msra.mxu0 %v6898_v3  ;;  %v6938_v53 = vld [vmem:[%s8588_s4 + $0x98] sm:$0xff]   ;;  %v6941_v61 = vld [vmem:[%s8588_s4 + $0x20] sm:$0xff]   ;;  %v6944_v0 = vld [vmem:[%s8588_s4 + $0xe8] sm:$0xff]  }
  0x1f   :  { %6152 = vmatprep.subr.bf16.mxu0 %v6899_v5  ;;  %v6942_v62 = vld [vmem:[%s8588_s4 + $0xa0] sm:$0xff]   ;;  %v6945_v2 = vld [vmem:[%s8588_s4 + $0x28] sm:$0xff]   ;;  %v6954_v22 = vld [vmem:[%s8588_s4 + $0xb8] sm:$0xff]  }
  0x20   :  { %v6946_v3 = vld [vmem:[%s8588_s4 + $0xa8] sm:$0xff]   ;;  %vm8372_vm4 = vmpackc.low %vm391_vm0, %vm391_vm0 }
  0x22   :  { %6153 = vmatpush3.bf16.msra.mxu0 %v6899_v5 }
  0x23   :  { %6154 = vmatprep.subr.bf16.mxu0 %v6900_v6 }
  0x26   :  { %6155 = vmatpush3.bf16.msra.mxu0 %v6900_v6  ;;  %v6947_v6 = vld [vmem:[%s8588_s4 + $0x70] sm:$0xff]  }
  0x27   :  { %6156 = vmatprep.subr.bf16.mxu0 %v6901_v7 }
  0x2a   :  { %6157 = vmatpush3.bf16.msra.mxu0 %v6901_v7  ;;  %v6948_v7 = vld [vmem:[%s8588_s4 + $0xf0] sm:$0xff]  }
  0x2b   :  { %6158 = vmatprep.subr.bf16.mxu0 %v6902_v10 }
  0x2e   :  { %6159 = vmatpush3.bf16.msra.mxu0 %v6902_v10 }
  0x2f   :  { %529 = vmatprep.subr.bf16.mxu0 %v6913_v11 }
  0x31   :  { %6161 = vmatmul.mubr.bf16.vlgmr.msra.gmra.mrb[0].mxu0 %v6904_v12  ;;  %v6949_v12 = vld [vmem:[%s8588_s4 + $0x30] sm:$0xff]  }
  0x32   :  { %6164 = vmatprep.mubr.bf16.mxu0 %v6905_v13  ;;  %530 = vmatpush1.bf16.msra.mxu0 %v6911_v14  ;;  %v6950_v13 = vld [vmem:[%s8588_s4 + $0xb0] sm:$0xff]   ;;  %v6951_v14 = vld [vmem:[%s8588_s4 + $0x78] sm:$0xff]  }
  0x33   :  { %531 = vmatprep.subr.bf16.mxu0 %v6916_v15  ;;  %v6952_v15 = vld [vmem:[%s8588_s4 + $0xf8] sm:$0xff]  }
  0x36   :  { %532 = vmatpush1.bf16.msra.mxu0 %v6914_v16  ;;  %v6953_v16 = vld [vmem:[%s8588_s4 + $0x38] sm:$0xff]  }
  0x37   :  { %5809 = vmatprep.subr.bf16.mxu0 %v6924_v26 }
  0x39   :  { %6165 = vmatmul.mubr.bf16.gmra.mrb[4].mxu0 %v7591_v17 }
  0x3a   :  { %6168 = vmatprep.mubr.bf16.mxu0 %v7596_v18 }
  0x41   :  { %6169 = vmatmul.mubr.bf16.gmra.mrb[8].mxu0 %v7603_v19 }
  0x42   :  { %6172 = vmatprep.mubr.bf16.mxu0 %v7608_v20 }
  0x49   :  { %6173 = vmatmul.mubr.bf16.gmra.mrb[12].mxu0 %v7615_v21 }
  0x4a   :  { %561 = vmatprep.mubr.bf16.mxu0 %v7478_v24 }
 0x104   :  { %v6162_v27 = vpop.f32.mrb[0].mxu0 }
 0x105   :  { %v280_v28 = vpop.f32.mrb[1].mxu0 }
 0x106   :  { %v6163_v29 = vpop.f32.mrb[2].mxu0 }
 0x107   :  { %v344_v30 = vpack.c.bf16 %v6163_v29, %v6162_v27  ;;  %v283_v31 = vpop.f32.mrb[3].mxu0 }
 0x108   :  { %v343_v32 = vpack.c.bf16 %v283_v31, %v280_v28 }
 0x10a   :  { %5515 = vmatmul.mubr.msk.bf16.vlgmr.msra.gmra.mrb[0].mxu1 %vm391_vm0, %v343_v32  ;;  %5523 = vmatmul.mubr.msk.bf16.vlgmr.msra.gmra.mrb[16].mxu0 %vm391_vm0, %v343_v32 }
 0x10b   :  { %458 = vmatprep.mubr.bf16.mxu1 %v7478_v24  ;;  %571 = vmatprep.mubr.bf16.mxu0 %v7478_v24 }
 0x10c   :  { %v6166_v37 = vpop.f32.mrb[4].mxu0  ;;  %5746 = vmatpush3.bf16.msra.mxu1 %v6925_v33  ;;  %5810 = vmatpush3.bf16.msra.mxu0 %v6926_v34 }
 0x10d   :  { %v296_v40 = vpop.f32.mrb[5].mxu0  ;;  %5747 = vmatprep.subr.bf16.mxu1 %v6927_v35  ;;  %5811 = vmatprep.subr.bf16.mxu0 %v6928_v36 }
 0x10e   :  { %v6167_v43 = vpop.f32.mrb[6].mxu0 }
 0x10f   :  { %v346_v44 = vpack.c.bf16 %v6167_v43, %v6166_v37  ;;  %v299_v45 = vpop.f32.mrb[7].mxu0 }
 0x110   :  { %v345_v46 = vpack.c.bf16 %v299_v45, %v296_v40  ;;  %5748 = vmatpush3.bf16.msra.mxu1 %v6929_v38  ;;  %5812 = vmatpush3.bf16.msra.mxu0 %v6930_v39 }
 0x111   :  { %5749 = vmatprep.subr.bf16.mxu1 %v6931_v41  ;;  %5813 = vmatprep.subr.bf16.mxu0 %v6932_v42 }
 0x112   :  { %5516 = vmatmul.mubr.msk.bf16.gmra.mrb[4].mxu1 %vm391_vm0, %v344_v30  ;;  %5524 = vmatmul.mubr.msk.bf16.gmra.mrb[20].mxu0 %vm391_vm0, %v344_v30 }
 0x113   :  { %468 = vmatprep.mubr.bf16.mxu1 %v7478_v24  ;;  %581 = vmatprep.mubr.bf16.mxu0 %v7478_v24 }
 0x114   :  { %v6170_v51 = vpop.f32.mrb[8].mxu0  ;;  %5750 = vmatpush3.bf16.msra.mxu1 %v6933_v47  ;;  %5814 = vmatpush3.bf16.msra.mxu0 %v6934_v48 }
 0x115   :  { %v312_v54 = vpop.f32.mrb[9].mxu0  ;;  %5751 = vmatprep.subr.bf16.mxu1 %v6935_v49  ;;  %5815 = vmatprep.subr.bf16.mxu0 %v6936_v50 }
 0x116   :  { %v6171_v57 = vpop.f32.mrb[10].mxu0 }
 0x117   :  { %v348_v58 = vpack.c.bf16 %v6171_v57, %v6170_v51  ;;  %v315_v59 = vpop.f32.mrb[11].mxu0 }
 0x118   :  { %v347_v60 = vpack.c.bf16 %v315_v59, %v312_v54  ;;  %5752 = vmatpush3.bf16.msra.mxu1 %v6937_v52  ;;  %5816 = vmatpush3.bf16.msra.mxu0 %v6938_v53 }
 0x119   :  { %5753 = vmatprep.subr.bf16.mxu1 %v6939_v55  ;;  %5817 = vmatprep.subr.bf16.mxu0 %v6940_v56 }
 0x11a   :  { %5517 = vmatmul.mubr.msk.bf16.gmra.mrb[8].mxu1 %vm391_vm0, %v345_v46  ;;  %5525 = vmatmul.mubr.msk.bf16.gmra.mrb[24].mxu0 %vm391_vm0, %v345_v46 }
 0x11b   :  { %478 = vmatprep.mubr.bf16.mxu1 %v7478_v24  ;;  %591 = vmatprep.mubr.bf16.mxu0 %v7478_v24 }
 0x11c   :  { %v6174_v1 = vpop.f32.mrb[12].mxu0  ;;  %5754 = vmatpush3.bf16.msra.mxu1 %v6941_v61  ;;  %5818 = vmatpush3.bf16.msra.mxu0 %v6942_v62 }
 0x11d   :  { %v328_v5 = vpop.f32.mrb[13].mxu0  ;;  %5755 = vmatprep.subr.bf16.mxu1 %v6943_v63  ;;  %5819 = vmatprep.subr.bf16.mxu0 %v6944_v0 }
 0x11e   :  { %v6175_v8 = vpop.f32.mrb[14].mxu0 }
 0x11f   :  { %v350_v9 = vpack.c.bf16 %v6175_v8, %v6174_v1  ;;  %v331_v10 = vpop.f32.mrb[15].mxu0 }
 0x120   :  { %v349_v11 = vpack.c.bf16 %v331_v10, %v328_v5  ;;  %5756 = vmatpush3.bf16.msra.mxu1 %v6945_v2  ;;  %5820 = vmatpush3.bf16.msra.mxu0 %v6946_v3 }
 0x121   :  { %5757 = vmatprep.subr.bf16.mxu1 %v6947_v6  ;;  %5821 = vmatprep.subr.bf16.mxu0 %v6948_v7 }
 0x122   :  { %5518 = vmatmul.mubr.msk.bf16.gmra.mrb[12].mxu1 %vm391_vm0, %v346_v44  ;;  %5526 = vmatmul.mubr.msk.bf16.gmra.mrb[28].mxu0 %vm391_vm0, %v346_v44 }
 0x123   :  { %488 = vmatprep.mubr.bf16.mxu1 %v7478_v24  ;;  %601 = vmatprep.mubr.bf16.mxu0 %v7478_v24 }
 0x124   :  { %5758 = vmatpush3.bf16.msra.mxu1 %v6949_v12  ;;  %5822 = vmatpush3.bf16.msra.mxu0 %v6950_v13 }
 0x125   :  { %5759 = vmatprep.subr.bf16.mxu1 %v6951_v14  ;;  %5823 = vmatprep.subr.bf16.mxu0 %v6952_v15 }
 0x128   :  { %5760 = vmatpush3.bf16.msra.mxu1 %v6953_v16  ;;  %5824 = vmatpush3.bf16.msra.mxu0 %v6954_v22 }
 0x12a   :  { %5519 = vmatmul.mubr.msk.bf16.gmra.mrb[16].mxu1 %vm391_vm0, %v347_v60  ;;  %5527 = vmatmul.mubr.msk.bf16.gmra.mrb[32].mxu0 %vm391_vm0, %v347_v60 }
 0x12b   :  { %498 = vmatprep.mubr.bf16.mxu1 %v7478_v24  ;;  %611 = vmatprep.mubr.bf16.mxu0 %v7478_v24 }
 0x132   :  { %5520 = vmatmul.mubr.msk.bf16.gmra.mrb[20].mxu1 %vm391_vm0, %v348_v58  ;;  %5528 = vmatmul.mubr.msk.bf16.gmra.mrb[36].mxu0 %vm391_vm0, %v348_v58 }
 0x133   :  { %508 = vmatprep.mubr.bf16.mxu1 %v7478_v24  ;;  %621 = vmatprep.mubr.bf16.mxu0 %v7478_v24 }
 0x13a   :  { %5521 = vmatmul.mubr.msk.bf16.gmra.mrb[24].mxu1 %vm391_vm0, %v349_v11  ;;  %5529 = vmatmul.mubr.msk.bf16.gmra.mrb[40].mxu0 %vm391_vm0, %v349_v11 }
 0x13b   :  { %518 = vmatprep.mubr.bf16.mxu1 %v7478_v24  ;;  %631 = vmatprep.mubr.bf16.mxu0 %v7478_v24 }
 0x142   :  { %5522 = vmatmul.mubr.msk.bf16.gmra.mrb[28].mxu1 %vm391_vm0, %v350_v9  ;;  %5530 = vmatmul.mubr.msk.bf16.gmra.mrb[44].mxu0 %vm391_vm0, %v350_v9 }
 0x1dd   :  { %v450_v23 = vpop.f32.mrb[0].mxu1  ;;  %v563_v24 = vpop.f32.mrb[16].mxu0 }
 0x1de   :  { %v452_v25 = vpop.f32.mrb[1].mxu1  ;;  %v565_v26 = vpop.f32.mrb[17].mxu0  ;;  %v642_v29 = vmax.f32 %v450_v23, 0.0  ;;  %v644_v30 = vmax.f32 %v563_v24, 0.0 }
 0x1df   :  { %v454_v27 = vpop.f32.mrb[2].mxu1  ;;  %v567_v28 = vpop.f32.mrb[18].mxu0  ;;  %v643_v35 = vmax.f32 %v452_v25, 0.0  ;;  %v645_v36 = vmax.f32 %v565_v26, 0.0 }
 0x1e0   :  { %v646_v31 = vmax.f32 %v454_v27, 0.0  ;;  %v648_v32 = vmax.f32 %v567_v28, 0.0  ;;  %v456_v33 = vpop.f32.mrb[3].mxu1  ;;  %v569_v34 = vpop.f32.mrb[19].mxu0 }
 0x1e1   :  { %v647_v37 = vmax.f32 %v456_v33, 0.0  ;;  %v649_v38 = vmax.f32 %v569_v34, 0.0 }
 0x1e2   :  { %v706_v39 = vpack.c.bf16 %v646_v31, %v642_v29  ;;  %v708_v40 = vpack.c.bf16 %v648_v32, %v644_v30 }
 0x1e3   :  { %v707_v41 = vpack.c.bf16 %v647_v37, %v643_v35  ;;  %v709_v42 = vpack.c.bf16 %v649_v38, %v645_v36 }
 0x1e5   :  { %v460_v43 = vpop.f32.mrb[4].mxu1  ;;  %v573_v44 = vpop.f32.mrb[20].mxu0  ;;  %962 = vmatprep.mubr.bf16.mxu1 %v707_v41  ;;  %1059 = vmatprep.mubr.bf16.mxu0 %v709_v42 }
 0x1e6   :  { %v462_v45 = vpop.f32.mrb[5].mxu1  ;;  %v575_v46 = vpop.f32.mrb[21].mxu0  ;;  %963 = vmatmul.mubr.bf16.vlgmr.msra.gmra.mrb[32].mxu1 %v706_v39  ;;  %1060 = vmatmul.mubr.bf16.vlgmr.msra.gmra.mrb[48].mxu0 %v708_v40  ;;  %v650_v49 = vmax.f32 %v460_v43, 0.0  ;;  %v652_v50 = vmax.f32 %v573_v44, 0.0 }
 0x1e7   :  { %v464_v47 = vpop.f32.mrb[6].mxu1  ;;  %v577_v48 = vpop.f32.mrb[22].mxu0  ;;  %v651_v55 = vmax.f32 %v462_v45, 0.0  ;;  %v653_v56 = vmax.f32 %v575_v46, 0.0 }
 0x1e8   :  { %v654_v51 = vmax.f32 %v464_v47, 0.0  ;;  %v656_v52 = vmax.f32 %v577_v48, 0.0  ;;  %v466_v53 = vpop.f32.mrb[7].mxu1  ;;  %v579_v54 = vpop.f32.mrb[23].mxu0 }
 0x1e9   :  { %v655_v57 = vmax.f32 %v466_v53, 0.0  ;;  %v657_v58 = vmax.f32 %v579_v54, 0.0 }
 0x1ea   :  { %v710_v59 = vpack.c.bf16 %v654_v51, %v650_v49  ;;  %v712_v60 = vpack.c.bf16 %v656_v52, %v652_v50 }
 0x1eb   :  { %v711_v61 = vpack.c.bf16 %v655_v57, %v651_v55  ;;  %v713_v62 = vpack.c.bf16 %v657_v58, %v653_v56 }
 0x1ed   :  { %v470_v63 = vpop.f32.mrb[8].mxu1  ;;  %v583_v0 = vpop.f32.mrb[24].mxu0  ;;  %970 = vmatprep.mubr.bf16.mxu1 %v711_v61  ;;  %1067 = vmatprep.mubr.bf16.mxu0 %v713_v62 }
 0x1ee   :  { %v472_v1 = vpop.f32.mrb[9].mxu1  ;;  %v585_v2 = vpop.f32.mrb[25].mxu0  ;;  %971 = vmatmul.mubr.bf16.gmra.mrb[36].mxu1 %v710_v59  ;;  %1068 = vmatmul.mubr.bf16.gmra.mrb[52].mxu0 %v712_v60  ;;  %v658_v6 = vmax.f32 %v470_v63, 0.0  ;;  %v660_v7 = vmax.f32 %v583_v0, 0.0 }
 0x1ef   :  { %v474_v3 = vpop.f32.mrb[10].mxu1  ;;  %v587_v5 = vpop.f32.mrb[26].mxu0  ;;  %v659_v12 = vmax.f32 %v472_v1, 0.0  ;;  %v661_v13 = vmax.f32 %v585_v2, 0.0 }
 0x1f0   :  { %v662_v8 = vmax.f32 %v474_v3, 0.0  ;;  %v664_v9 = vmax.f32 %v587_v5, 0.0  ;;  %v476_v10 = vpop.f32.mrb[11].mxu1  ;;  %v589_v11 = vpop.f32.mrb[27].mxu0 }
 0x1f1   :  { %v663_v14 = vmax.f32 %v476_v10, 0.0  ;;  %v665_v15 = vmax.f32 %v589_v11, 0.0 }
 0x1f2   :  { %v714_v16 = vpack.c.bf16 %v662_v8, %v658_v6  ;;  %v716_v22 = vpack.c.bf16 %v664_v9, %v660_v7 }
 0x1f3   :  { %v715_v23 = vpack.c.bf16 %v663_v14, %v659_v12  ;;  %v717_v24 = vpack.c.bf16 %v665_v15, %v661_v13 }
 0x1f5   :  { %v480_v25 = vpop.f32.mrb[12].mxu1  ;;  %v593_v26 = vpop.f32.mrb[28].mxu0  ;;  %978 = vmatprep.mubr.bf16.mxu1 %v715_v23  ;;  %1075 = vmatprep.mubr.bf16.mxu0 %v717_v24 }
 0x1f6   :  { %v482_v27 = vpop.f32.mrb[13].mxu1  ;;  %v595_v28 = vpop.f32.mrb[29].mxu0  ;;  %979 = vmatmul.mubr.bf16.gmra.mrb[40].mxu1 %v714_v16  ;;  %1076 = vmatmul.mubr.bf16.gmra.mrb[56].mxu0 %v716_v22  ;;  %v666_v31 = vmax.f32 %v480_v25, 0.0  ;;  %v668_v32 = vmax.f32 %v593_v26, 0.0 }
 0x1f7   :  { %v484_v29 = vpop.f32.mrb[14].mxu1  ;;  %v597_v30 = vpop.f32.mrb[30].mxu0  ;;  %v667_v37 = vmax.f32 %v482_v27, 0.0  ;;  %v669_v38 = vmax.f32 %v595_v28, 0.0 }
 0x1f8   :  { %v670_v33 = vmax.f32 %v484_v29, 0.0  ;;  %v672_v34 = vmax.f32 %v597_v30, 0.0  ;;  %v486_v35 = vpop.f32.mrb[15].mxu1  ;;  %v599_v36 = vpop.f32.mrb[31].mxu0 }
 0x1f9   :  { %v671_v39 = vmax.f32 %v486_v35, 0.0  ;;  %v673_v40 = vmax.f32 %v599_v36, 0.0 }
 0x1fa   :  { %v718_v41 = vpack.c.bf16 %v670_v33, %v666_v31  ;;  %v720_v42 = vpack.c.bf16 %v672_v34, %v668_v32 }
 0x1fb   :  { %v719_v43 = vpack.c.bf16 %v671_v39, %v667_v37  ;;  %v721_v44 = vpack.c.bf16 %v673_v40, %v669_v38 }
 0x1fd   :  { %v490_v45 = vpop.f32.mrb[16].mxu1  ;;  %v603_v46 = vpop.f32.mrb[32].mxu0  ;;  %986 = vmatprep.mubr.bf16.mxu1 %v719_v43  ;;  %1083 = vmatprep.mubr.bf16.mxu0 %v721_v44 }
 0x1fe   :  { %v492_v47 = vpop.f32.mrb[17].mxu1  ;;  %v605_v48 = vpop.f32.mrb[33].mxu0  ;;  %987 = vmatmul.mubr.bf16.gmra.mrb[44].mxu1 %v718_v41  ;;  %1084 = vmatmul.mubr.bf16.gmra.mrb[60].mxu0 %v720_v42  ;;  %v674_v51 = vmax.f32 %v490_v45, 0.0  ;;  %v676_v52 = vmax.f32 %v603_v46, 0.0 }
 0x1ff   :  { %v494_v49 = vpop.f32.mrb[18].mxu1  ;;  %v607_v50 = vpop.f32.mrb[34].mxu0  ;;  %v675_v57 = vmax.f32 %v492_v47, 0.0  ;;  %v677_v58 = vmax.f32 %v605_v48, 0.0 }
 0x200   :  { %v678_v53 = vmax.f32 %v494_v49, 0.0  ;;  %v680_v54 = vmax.f32 %v607_v50, 0.0  ;;  %v496_v55 = vpop.f32.mrb[19].mxu1  ;;  %v609_v56 = vpop.f32.mrb[35].mxu0 }
 0x201   :  { %v679_v59 = vmax.f32 %v496_v55, 0.0  ;;  %v681_v60 = vmax.f32 %v609_v56, 0.0 }
 0x202   :  { %v722_v61 = vpack.c.bf16 %v678_v53, %v674_v51  ;;  %v724_v62 = vpack.c.bf16 %v680_v54, %v676_v52 }
 0x203   :  { %v723_v63 = vpack.c.bf16 %v679_v59, %v675_v57  ;;  %v725_v0 = vpack.c.bf16 %v681_v60, %v677_v58 }
 0x205   :  { %v500_v1 = vpop.f32.mrb[20].mxu1  ;;  %v613_v2 = vpop.f32.mrb[36].mxu0  ;;  %994 = vmatprep.mubr.bf16.mxu1 %v723_v63  ;;  %1091 = vmatprep.mubr.bf16.mxu0 %v725_v0 }
 0x206   :  { %v502_v3 = vpop.f32.mrb[21].mxu1  ;;  %v615_v5 = vpop.f32.mrb[37].mxu0  ;;  %995 = vmatmul.mubr.bf16.gmra.mrb[48].mxu1 %v722_v61  ;;  %1092 = vmatmul.mubr.bf16.gmra.mrb[64].mxu0 %v724_v62  ;;  %v682_v8 = vmax.f32 %v500_v1, 0.0  ;;  %v684_v9 = vmax.f32 %v613_v2, 0.0 }
 0x207   :  { %v504_v6 = vpop.f32.mrb[22].mxu1  ;;  %v617_v7 = vpop.f32.mrb[38].mxu0  ;;  %v683_v14 = vmax.f32 %v502_v3, 0.0  ;;  %v685_v15 = vmax.f32 %v615_v5, 0.0 }
 0x208   :  { %v686_v10 = vmax.f32 %v504_v6, 0.0  ;;  %v688_v11 = vmax.f32 %v617_v7, 0.0  ;;  %v506_v12 = vpop.f32.mrb[23].mxu1  ;;  %v619_v13 = vpop.f32.mrb[39].mxu0 }
 0x209   :  { %v687_v16 = vmax.f32 %v506_v12, 0.0  ;;  %v689_v22 = vmax.f32 %v619_v13, 0.0 }
 0x20a   :  { %v726_v23 = vpack.c.bf16 %v686_v10, %v682_v8  ;;  %v728_v24 = vpack.c.bf16 %v688_v11, %v684_v9 }
 0x20b   :  { %v727_v25 = vpack.c.bf16 %v687_v16, %v683_v14  ;;  %v729_v26 = vpack.c.bf16 %v689_v22, %v685_v15 }
 0x20d   :  { %v510_v27 = vpop.f32.mrb[24].mxu1  ;;  %v623_v28 = vpop.f32.mrb[40].mxu0  ;;  %1002 = vmatprep.mubr.bf16.mxu1 %v727_v25  ;;  %1099 = vmatprep.mubr.bf16.mxu0 %v729_v26 }
 0x20e   :  { %v512_v29 = vpop.f32.mrb[25].mxu1  ;;  %v625_v30 = vpop.f32.mrb[41].mxu0  ;;  %1003 = vmatmul.mubr.bf16.gmra.mrb[52].mxu1 %v726_v23  ;;  %1100 = vmatmul.mubr.bf16.gmra.mrb[68].mxu0 %v728_v24  ;;  %v690_v33 = vmax.f32 %v510_v27, 0.0  ;;  %v692_v34 = vmax.f32 %v623_v28, 0.0 }
 0x20f   :  { %v514_v31 = vpop.f32.mrb[26].mxu1  ;;  %v627_v32 = vpop.f32.mrb[42].mxu0  ;;  %v691_v39 = vmax.f32 %v512_v29, 0.0  ;;  %v693_v40 = vmax.f32 %v625_v30, 0.0 }
 0x210   :  { %v694_v35 = vmax.f32 %v514_v31, 0.0  ;;  %v696_v36 = vmax.f32 %v627_v32, 0.0  ;;  %v516_v37 = vpop.f32.mrb[27].mxu1  ;;  %v629_v38 = vpop.f32.mrb[43].mxu0 }
 0x211   :  { %v695_v41 = vmax.f32 %v516_v37, 0.0  ;;  %v697_v42 = vmax.f32 %v629_v38, 0.0 }
 0x212   :  { %v730_v43 = vpack.c.bf16 %v694_v35, %v690_v33  ;;  %v732_v44 = vpack.c.bf16 %v696_v36, %v692_v34 }
 0x213   :  { %v731_v45 = vpack.c.bf16 %v695_v41, %v691_v39  ;;  %v733_v46 = vpack.c.bf16 %v697_v42, %v693_v40 }
 0x215   :  { %v520_v47 = vpop.f32.mrb[28].mxu1  ;;  %v633_v48 = vpop.f32.mrb[44].mxu0  ;;  %1010 = vmatprep.mubr.bf16.mxu1 %v731_v45  ;;  %1107 = vmatprep.mubr.bf16.mxu0 %v733_v46 }
 0x216   :  { %v522_v49 = vpop.f32.mrb[29].mxu1  ;;  %v635_v50 = vpop.f32.mrb[45].mxu0  ;;  %1011 = vmatmul.mubr.bf16.gmra.mrb[56].mxu1 %v730_v43  ;;  %1108 = vmatmul.mubr.bf16.gmra.mrb[72].mxu0 %v732_v44  ;;  %v698_v53 = vmax.f32 %v520_v47, 0.0  ;;  %v700_v54 = vmax.f32 %v633_v48, 0.0 }
 0x217   :  { %v524_v51 = vpop.f32.mrb[30].mxu1  ;;  %v637_v52 = vpop.f32.mrb[46].mxu0  ;;  %v699_v59 = vmax.f32 %v522_v49, 0.0  ;;  %v701_v60 = vmax.f32 %v635_v50, 0.0 }
 0x218   :  { %v702_v55 = vmax.f32 %v524_v51, 0.0  ;;  %v704_v56 = vmax.f32 %v637_v52, 0.0  ;;  %v526_v57 = vpop.f32.mrb[31].mxu1  ;;  %v639_v58 = vpop.f32.mrb[47].mxu0 }
 0x219   :  { %v703_v61 = vmax.f32 %v526_v57, 0.0  ;;  %v705_v62 = vmax.f32 %v639_v58, 0.0 }
 0x21a   :  { %v734_v63 = vpack.c.bf16 %v702_v55, %v698_v53  ;;  %v736_v0 = vpack.c.bf16 %v704_v56, %v700_v54 }
 0x21b   :  { %v735_v1 = vpack.c.bf16 %v703_v61, %v699_v59  ;;  %v737_v2 = vpack.c.bf16 %v705_v62, %v701_v60 }
 0x21d   :  { %1018 = vmatprep.mubr.bf16.mxu1 %v735_v1  ;;  %1115 = vmatprep.mubr.bf16.mxu0 %v737_v2 }
 0x21e   :  { %1019 = vmatmul.mubr.bf16.gmra.mrb[60].mxu1 %v734_v63  ;;  %1116 = vmatmul.mubr.bf16.gmra.mrb[76].mxu0 %v736_v0 }
 0x21f   :  { %6192 = vmatprep.mubr.bf16.mxu1 %v7549_v4 }
 0x2b9   :  { %v5761_v3 = vpop.f32.mrb[32].mxu1  ;;  %v5825_v5 = vpop.f32.mrb[48].mxu0 }
 0x2ba   :  { %v5762_v6 = vpop.f32.mrb[33].mxu1  ;;  %v5826_v7 = vpop.f32.mrb[49].mxu0 }
 0x2bb   :  { %v5763_v8 = vadd.f32 %v5762_v6, %v5761_v3  ;;  %v5827_v9 = vadd.f32 %v5826_v7, %v5825_v5  ;;  %v5764_v10 = vpop.f32.mrb[34].mxu1  ;;  %v5828_v11 = vpop.f32.mrb[50].mxu0 }
 0x2bc   :  { %v5765_v12 = vpop.f32.mrb[35].mxu1  ;;  %v5829_v13 = vpop.f32.mrb[51].mxu0 }
 0x2bd   :  { %v1062_v14 = vadd.f32 %v5827_v9, %v5763_v8  ;;  %v5766_v15 = vadd.f32 %v5765_v12, %v5764_v10  ;;  %v5830_v16 = vadd.f32 %v5829_v13, %v5828_v11 }
 0x2bf   :  { %v1065_v22 = vadd.f32 %v5830_v16, %v5766_v15 }
 0x2c1   :  { %v5767_v23 = vpop.f32.mrb[36].mxu1  ;;  %v5831_v24 = vpop.f32.mrb[52].mxu0  ;;  %v1124_v25 = vpack.c.bf16 %v1065_v22, %v1062_v14 }
 0x2c2   :  { %v5768_v26 = vpop.f32.mrb[37].mxu1  ;;  %v5832_v27 = vpop.f32.mrb[53].mxu0 }
 0x2c3   :  { %v5769_v4 = vadd.f32 %v5768_v26, %v5767_v23  ;;  %v5833_v28 = vadd.f32 %v5832_v27, %v5831_v24  ;;  %v5770_v29 = vpop.f32.mrb[38].mxu1  ;;  %v5834_v30 = vpop.f32.mrb[54].mxu0  ;;  %6176 = vmatprep.subr.bf16.mxu1 %v1124_v25 }
 0x2c4   :  { %v5771_v31 = vpop.f32.mrb[39].mxu1  ;;  %v5835_v32 = vpop.f32.mrb[55].mxu0  ;;  %6177 = vmatpush3.bf16.msra.mxu1 %v1124_v25 }
 0x2c5   :  { %v1070_v33 = vadd.f32 %v5833_v28, %v5769_v4  ;;  %v5772_v34 = vadd.f32 %v5771_v31, %v5770_v29  ;;  %v5836_v35 = vadd.f32 %v5835_v32, %v5834_v30 }
 0x2c7   :  { %v1073_v36 = vadd.f32 %v5836_v35, %v5772_v34 }
 0x2c9   :  { %v5773_v37 = vpop.f32.mrb[40].mxu1  ;;  %v5837_v38 = vpop.f32.mrb[56].mxu0  ;;  %v1125_v39 = vpack.c.bf16 %v1073_v36, %v1070_v33 }
 0x2ca   :  { %v5774_v40 = vpop.f32.mrb[41].mxu1  ;;  %v5838_v41 = vpop.f32.mrb[57].mxu0 }
 0x2cb   :  { %v5775_v42 = vadd.f32 %v5774_v40, %v5773_v37  ;;  %v5839_v43 = vadd.f32 %v5838_v41, %v5837_v38  ;;  %v5776_v44 = vpop.f32.mrb[42].mxu1  ;;  %v5840_v45 = vpop.f32.mrb[58].mxu0  ;;  %6178 = vmatprep.subr.bf16.mxu1 %v1125_v39 }
 0x2cc   :  { %v5777_v46 = vpop.f32.mrb[43].mxu1  ;;  %v5841_v47 = vpop.f32.mrb[59].mxu0  ;;  %6179 = vmatpush3.bf16.msra.mxu1 %v1125_v39 }
 0x2cd   :  { %v1078_v48 = vadd.f32 %v5839_v43, %v5775_v42  ;;  %v5778_v49 = vadd.f32 %v5777_v46, %v5776_v44  ;;  %v5842_v50 = vadd.f32 %v5841_v47, %v5840_v45 }
 0x2cf   :  { %v1081_v51 = vadd.f32 %v5842_v50, %v5778_v49 }
 0x2d1   :  { %v5779_v52 = vpop.f32.mrb[44].mxu1  ;;  %v5843_v53 = vpop.f32.mrb[60].mxu0  ;;  %v1126_v54 = vpack.c.bf16 %v1081_v51, %v1078_v48 }
 0x2d2   :  { %v5780_v55 = vpop.f32.mrb[45].mxu1  ;;  %v5844_v56 = vpop.f32.mrb[61].mxu0 }
 0x2d3   :  { %v5781_v57 = vadd.f32 %v5780_v55, %v5779_v52  ;;  %v5845_v58 = vadd.f32 %v5844_v56, %v5843_v53  ;;  %v5782_v59 = vpop.f32.mrb[46].mxu1  ;;  %v5846_v60 = vpop.f32.mrb[62].mxu0  ;;  %6180 = vmatprep.subr.bf16.mxu1 %v1126_v54 }
 0x2d4   :  { %v5783_v61 = vpop.f32.mrb[47].mxu1  ;;  %v5847_v62 = vpop.f32.mrb[63].mxu0  ;;  %6181 = vmatpush3.bf16.msra.mxu1 %v1126_v54 }
 0x2d5   :  { %v1086_v63 = vadd.f32 %v5845_v58, %v5781_v57  ;;  %v5784_v0 = vadd.f32 %v5783_v61, %v5782_v59  ;;  %v5848_v1 = vadd.f32 %v5847_v62, %v5846_v60 }
 0x2d7   :  { %v1089_v2 = vadd.f32 %v5848_v1, %v5784_v0 }
 0x2d9   :  { %v5785_v3 = vpop.f32.mrb[48].mxu1  ;;  %v5849_v5 = vpop.f32.mrb[64].mxu0  ;;  %v1127_v6 = vpack.c.bf16 %v1089_v2, %v1086_v63 }
 0x2da   :  { %v5786_v7 = vpop.f32.mrb[49].mxu1  ;;  %v5850_v8 = vpop.f32.mrb[65].mxu0 }
 0x2db   :  { %v5787_v9 = vadd.f32 %v5786_v7, %v5785_v3  ;;  %v5851_v10 = vadd.f32 %v5850_v8, %v5849_v5  ;;  %v5788_v11 = vpop.f32.mrb[50].mxu1  ;;  %v5852_v12 = vpop.f32.mrb[66].mxu0  ;;  %6182 = vmatprep.subr.bf16.mxu1 %v1127_v6  ;;  %v7414_v7 = vld [vmem:[%s8585_s1 + $0x10] sm:$0xff]   ;;  %v1294_v8 = vld [vmem:[%s8589_s5] sm:$0xff] }
 0x2dc   :  { %v5789_v13 = vpop.f32.mrb[51].mxu1  ;;  %v5853_v14 = vpop.f32.mrb[67].mxu0  ;;  %6183 = vmatpush3.bf16.msra.mxu1 %v1127_v6  ;;  %v7413_v6 = vld [vmem:[%s8585_s1 + $0x8] sm:$0xff]   ;;  %s44_s1 = sld [smem:[#allocation2]] }
 0x2dd   :  { %v1094_v15 = vadd.f32 %v5851_v10, %v5787_v9  ;;  %v5790_v16 = vadd.f32 %v5789_v13, %v5788_v11  ;;  %v5854_v22 = vadd.f32 %v5853_v14, %v5852_v12 }
 0x2df   :  { %v1097_v23 = vadd.f32 %v5854_v22, %v5790_v16 }
 0x2e1   :  { %v5791_v24 = vpop.f32.mrb[52].mxu1  ;;  %v5855_v25 = vpop.f32.mrb[68].mxu0  ;;  %v1128_v26 = vpack.c.bf16 %v1097_v23, %v1094_v15 }
 0x2e2   :  { %v5792_v27 = vpop.f32.mrb[53].mxu1  ;;  %v5856_v4 = vpop.f32.mrb[69].mxu0 }
 0x2e3   :  { %v5793_v28 = vadd.f32 %v5792_v27, %v5791_v24  ;;  %v5857_v29 = vadd.f32 %v5856_v4, %v5855_v25  ;;  %v5794_v30 = vpop.f32.mrb[54].mxu1  ;;  %v5858_v31 = vpop.f32.mrb[70].mxu0  ;;  %6184 = vmatprep.subr.bf16.mxu1 %v1128_v26 }
 0x2e4   :  { %v5795_v32 = vpop.f32.mrb[55].mxu1  ;;  %v5859_v33 = vpop.f32.mrb[71].mxu0  ;;  %6185 = vmatpush3.bf16.msra.mxu1 %v1128_v26 }
 0x2e5   :  { %v1102_v34 = vadd.f32 %v5857_v29, %v5793_v28  ;;  %v5796_v35 = vadd.f32 %v5795_v32, %v5794_v30  ;;  %v5860_v36 = vadd.f32 %v5859_v33, %v5858_v31 }
 0x2e7   :  { %v1105_v37 = vadd.f32 %v5860_v36, %v5796_v35 }
 0x2e9   :  { %v5797_v38 = vpop.f32.mrb[56].mxu1  ;;  %v5861_v39 = vpop.f32.mrb[72].mxu0  ;;  %v1129_v40 = vpack.c.bf16 %v1105_v37, %v1102_v34 }
 0x2ea   :  { %v5798_v41 = vpop.f32.mrb[57].mxu1  ;;  %v5862_v42 = vpop.f32.mrb[73].mxu0 }
 0x2eb   :  { %v5799_v43 = vadd.f32 %v5798_v41, %v5797_v38  ;;  %v5863_v44 = vadd.f32 %v5862_v42, %v5861_v39  ;;  %v5800_v45 = vpop.f32.mrb[58].mxu1  ;;  %v5864_v46 = vpop.f32.mrb[74].mxu0  ;;  %6186 = vmatprep.subr.bf16.mxu1 %v1129_v40 }
 0x2ec   :  { %v5801_v47 = vpop.f32.mrb[59].mxu1  ;;  %v5865_v48 = vpop.f32.mrb[75].mxu0  ;;  %6187 = vmatpush3.bf16.msra.mxu1 %v1129_v40 }
 0x2ed   :  { %v1110_v49 = vadd.f32 %v5863_v44, %v5799_v43  ;;  %v5802_v50 = vadd.f32 %v5801_v47, %v5800_v45  ;;  %v5866_v51 = vadd.f32 %v5865_v48, %v5864_v46 }
 0x2ef   :  { %v1113_v52 = vadd.f32 %v5866_v51, %v5802_v50  ;;  %v7479_v51 = vmov 0.0|0.0  }
 0x2f0   :  { %6692 = vmatprep.subr.bf16.mxu0 %v7479_v51 }
 0x2f1   :  { %v5803_v53 = vpop.f32.mrb[60].mxu1  ;;  %v5867_v54 = vpop.f32.mrb[76].mxu0  ;;  %v1130_v55 = vpack.c.bf16 %v1113_v52, %v1110_v49 }
 0x2f2   :  { %v5804_v56 = vpop.f32.mrb[61].mxu1  ;;  %v5868_v57 = vpop.f32.mrb[77].mxu0 }
 0x2f3   :  { %v5805_v58 = vadd.f32 %v5804_v56, %v5803_v53  ;;  %v5869_v59 = vadd.f32 %v5868_v57, %v5867_v54  ;;  %v5806_v60 = vpop.f32.mrb[62].mxu1  ;;  %v5870_v61 = vpop.f32.mrb[78].mxu0  ;;  %6188 = vmatprep.subr.bf16.mxu1 %v1130_v55 }
 0x2f4   :  { %v5807_v62 = vpop.f32.mrb[63].mxu1  ;;  %v5871_v63 = vpop.f32.mrb[79].mxu0  ;;  %6189 = vmatpush3.bf16.msra.mxu1 %v1130_v55 }
 0x2f5   :  { %v1118_v0 = vadd.f32 %v5869_v59, %v5805_v58  ;;  %v5808_v1 = vadd.f32 %v5807_v62, %v5806_v60  ;;  %v5872_v2 = vadd.f32 %v5871_v63, %v5870_v61 }
 0x2f7   :  { %v1121_v3 = vadd.f32 %v5872_v2, %v5808_v1 }
 0x2f9   :  { %v1131_v5 = vpack.c.bf16 %v1121_v3, %v1118_v0 }
 0x2fb   :  { %6190 = vmatprep.subr.bf16.mxu1 %v1131_v5 }
 0x2fc   :  { %6191 = vmatpush3.bf16.msra.mxu1 %v1131_v5 }
 0x2fd   :  { %6208 = vmatprep.subr.msk.mxu1 %vm391_vm0, %v1294_v8 }
 0x2ff   :  { %6193 = vmatmul.mubr.bf16.vlgmr.msra.gmra.mrb[64].mxu1 %v7413_v6 }
 0x300   :  { %6196 = vmatprep.mubr.bf16.mxu1 %v7414_v7 }
 0x305   :  { %6209 = vmatpush3.xpose.msk.msra.mxu1 %vm391_vm0, %v1294_v8 }
 0x306   :  { %6680 = vmatprep.subr.bf16.mxu1 %v7479_v51 }
 0x307   :  { %6197 = vmatmul.mubr.bf16.gmra.mrb[68].mxu1 %v7591_v17 }
 0x308   :  { %6200 = vmatprep.mubr.bf16.mxu1 %v7596_v18 }
 0x30f   :  { %6201 = vmatmul.mubr.bf16.gmra.mrb[72].mxu1 %v7603_v19 }
 0x310   :  { %6204 = vmatprep.mubr.bf16.mxu1 %v7608_v20 }
 0x317   :  { %6205 = vmatmul.mubr.bf16.gmra.mrb[76].mxu1 %v7615_v21 }
 0x3d2   :  { %v7769_v9 = vpop.f32.mrb[64].mxu1 }
 0x3d3   :  { %v7771_v10 = vpop.f32.mrb[65].mxu1  ;;  %v1231_v17 = vmul.f32 %v7769_v9, %v7769_v9  ;;  %v4908_v24 = vsel %vm391_vm0, %v7769_v9, 0.0 }
 0x3d4   :  { %v7775_v18 = vpop.f32.mrb[66].mxu1  ;;  %v1229_v19 = vmul.f32 %v7771_v10, %v7771_v10  ;;  %v4905_v20 = vsel %vm391_vm0, %v7771_v10, 0.0 }
 0x3d5   :  { %v6825_v21 = vpack.c.bf16 %v7775_v18, %v7769_v9  ;;  %v7783_v11 = vpop.f32.mrb[67].mxu1  ;;  %v1243_v12 = vsel %vm391_vm0, %v1231_v17, 0.0  ;;  %v1232_v13 = vmul.f32 %v7775_v18, %v7775_v18  ;;  %v4910_v27 = vsel %vm391_vm0, %v7775_v18, 0.0 }
 0x3d6   :  { %v4906_v14 = vsel %vm391_vm0, %v7783_v11, 0.0  ;;  %v6821_v15 = vpack.c.bf16 %v7783_v11, %v7771_v10  ;;  %1244 = vadd.xlane.f32.xlu1 %v1243_v12  ;;  %v1237_v16 = vsel %vm391_vm0, %v1229_v19, 0.0  ;;  %v1230_v22 = vmul.f32 %v7783_v11, %v7783_v11 }
 0x3d7   :  { %v4907_v23 = vadd.f32 %v4906_v14, %v4905_v20  ;;  %1238 = vadd.xlane.f32.xlu0 %v1237_v16  ;;  %v1246_v26 = vsel %vm391_vm0, %v1232_v13, 0.0  ;;  %v1277_v17 = vstv %s44_s1 }
 0x3d8   :  { %v1240_v28 = vsel %vm391_vm0, %v1230_v22, 0.0 }
 0x3d9   :  { %v4909_v25 = vadd.f32 %v4908_v24, %v4907_v23 }
 0x3da   :  { %1247 = vadd.xlane.f32.xlu1 %v1246_v26  ;;  %v7800_v4 = vpop.f32.mrb[68].mxu1 }
 0x3db   :  { %1241 = vadd.xlane.f32.xlu0 %v1240_v28  ;;  %v7803_v29 = vpop.f32.mrb[69].mxu1  ;;  %v4911_v30 = vadd.f32 %v4910_v27, %v4909_v25  ;;  %v1235_v34 = vmul.f32 %v7800_v4, %v7800_v4  ;;  %v4916_v35 = vsel %vm391_vm0, %v7800_v4, 0.0 }
 0x3dc   :  { %v4912_v31 = vsel %vm391_vm0, %v7803_v29, 0.0  ;;  %v7807_v32 = vpop.f32.mrb[70].mxu1  ;;  %v1233_v33 = vmul.f32 %v7803_v29, %v7803_v29 }
 0x3dd   :  { %v4913_v36 = vadd.f32 %v4912_v31, %v4911_v30  ;;  %v6833_v37 = vpack.c.bf16 %v7807_v32, %v7800_v4  ;;  %v7817_v38 = vpop.f32.mrb[71].mxu1  ;;  %v1236_v44 = vmul.f32 %v7807_v32, %v7807_v32  ;;  %v4918_v45 = vsel %vm391_vm0, %v7807_v32, 0.0 }
 0x3de   :  { %v4914_v39 = vsel %vm391_vm0, %v7817_v38, 0.0  ;;  %v6829_v40 = vpack.c.bf16 %v7817_v38, %v7803_v29  ;;  %v1249_v41 = vsel %vm391_vm0, %v1233_v33, 0.0  ;;  %v1234_v42 = vmul.f32 %v7817_v38, %v7817_v38 }
 0x3df   :  { %v4915_v43 = vadd.f32 %v4914_v39, %v4913_v36  ;;  %1250 = vadd.xlane.f32.xlu0 %v1249_v41  ;;  %v1255_v47 = vsel %vm391_vm0, %v1235_v34, 0.0  ;;  %v1258_v49 = vsel %vm391_vm0, %v1236_v44, 0.0 }
 0x3e0   :  { %v1252_v46 = vsel %vm391_vm0, %v1234_v42, 0.0 }
 0x3e1   :  { %v4917_v48 = vadd.f32 %v4916_v35, %v4915_v43  ;;  %1253 = vadd.xlane.f32.xlu1 %v1252_v46 }
 0x3e2   :  { %v7837_v52 = vpop.f32.mrb[72].mxu1 }
 0x3e3   :  { %v7833_v50 = vadd.f32 %v4918_v45, %v4917_v48  ;;  %1256 = vadd.xlane.f32.xlu0 %v1255_v47  ;;  %v7839_v53 = vpop.f32.mrb[73].mxu1 }
 0x3e4   :  { %v7841_v54 = vpop.f32.mrb[74].mxu1 }
 0x3e5   :  { %1259 = vadd.xlane.f32.xlu1 %v1258_v49  ;;  %v6841_v55 = vpack.c.bf16 %v7841_v54, %v7837_v52  ;;  %v7845_v56 = vpop.f32.mrb[75].mxu1 }
 0x3e6   :  { %v6837_v57 = vpack.c.bf16 %v7845_v56, %v7839_v53 }
 0x3ea   :  { %v7849_v58 = vpop.f32.mrb[76].mxu1 }
 0x3eb   :  { %v7851_v59 = vpop.f32.mrb[77].mxu1 }
 0x3ec   :  { %v7853_v60 = vpop.f32.mrb[78].mxu1 }
 0x3ed   :  { %v6849_v61 = vpack.c.bf16 %v7853_v60, %v7849_v58  ;;  %v7857_v62 = vpop.f32.mrb[79].mxu1 }
 0x3ee   :  { %v6845_v63 = vpack.c.bf16 %v7857_v62, %v7851_v59 }
 0x463   :  { %v1245_v0 = vpop.xlane.xlu1 %1244 }
 0x464   :  { %6955 = vrsqrt.f32 %v1245_v0  ;;  %v1239_v1 = vpop.xlane.xlu0 %1238 }
 0x465   :  { %6957 = vrsqrt.f32 %v1239_v1 }
 0x467   :  { %v1248_v2 = vpop.xlane.xlu1 %1247 }
 0x468   :  { %6959 = vrsqrt.f32 %v1248_v2  ;;  %v1242_v3 = vpop.xlane.xlu0 %1241 }
 0x469   :  { %6961 = vrsqrt.f32 %v1242_v3 }
 0x46c   :  { %v1251_v5 = vpop.xlane.xlu0 %1250 }
 0x46d   :  { %6963 = vrsqrt.f32 %v1251_v5 }
 0x46e   :  { %v6956_v6 = vpop.eup %6955  ;;  %v1254_v7 = vpop.xlane.xlu1 %1253 }
 0x46f   :  { %v6958_v8 = vpop.eup %6957  ;;  %6965 = vrsqrt.f32 %v1254_v7  ;;  %v1271_v12 = vmul.f32 %v6956_v6, %v7769_v9 }
 0x470   :  { %v1269_v19 = vmul.f32 %v6958_v8, %v7771_v10  ;;  %v1257_v20 = vpop.xlane.xlu0 %1256 }
 0x471   :  { %6967 = vrsqrt.f32 %v1257_v20  ;;  %v1288_v25 = vsel %vm391_vm0, %v1271_v12, 1.0  ;;  %v7877_v34 = vmul.f32 %v1277_v17, %v1271_v12 }
 0x472   :  { %v6960_v13 = vpop.eup %6959  ;;  %v7863_v14 = vmul.f32 %v1277_v17, %v1269_v19  ;;  %v1260_v16 = vpop.xlane.xlu1 %1259  ;;  %v1286_v27 = vsel %vm391_vm0, %v1269_v19, 1.0 }
 0x473   :  { %v6962_v22 = vpop.eup %6961  ;;  %v1272_v23 = vmul.f32 %v6960_v13, %v7775_v18  ;;  %6969 = vrsqrt.f32 %v1260_v16 }
 0x474   :  { %v1270_v24 = vmul.f32 %v6962_v22, %v7783_v11  ;;  %6210 = vmatprep.mubr.msk.f32.mxu1 %vm391_vm0, %v7863_v14 }
 0x475   :  { %v1289_v26 = vsel %vm391_vm0, %v1272_v23, 1.0  ;;  %v7887_v41 = vmul.f32 %v1277_v17, %v1272_v23 }
 0x476   :  { %v7872_v28 = vpack.c.bf16 %v1289_v26, %v1288_v25  ;;  %v7874_v30 = vmul.f32 %v1277_v17, %v1270_v24  ;;  %v1287_v31 = vsel %vm391_vm0, %v1270_v24, 1.0 }
 0x477   :  { %v6964_v33 = vpop.eup %6963  ;;  %v7879_v35 = vpack.c.bf16 %v1287_v31, %v1286_v27 }
 0x478   :  { %v1273_v36 = vmul.f32 %v6964_v33, %v7803_v29  ;;  %6211 = vmatmul.mubr.msk.f32.vlgmr.msra.gmra.mrb[80].mxu1 %vm391_vm0, %v7874_v30 }
 0x479   :  { %v6966_v39 = vpop.eup %6965  ;;  %6213 = vmatprep.mubr.msk.f32.mxu1 %vm391_vm0, %v7877_v34  ;;  %6682 = vmatpush3.bf16.msra.mxu1 %v7879_v35 }
 0x47a   :  { %v7889_v42 = vmul.f32 %v1277_v17, %v1273_v36  ;;  %v1274_v43 = vmul.f32 %v6966_v39, %v7817_v38  ;;  %6694 = vmatpush3.bf16.msra.mxu0 %v7879_v35  ;;  %6683 = vmatprep.subr.bf16.mxu1 %v7479_v51  ;;  %v1290_v45 = vsel %vm391_vm0, %v1273_v36, 1.0 }
 0x47b   :  { %v6968_v44 = vpop.eup %6967  ;;  %6695 = vmatprep.subr.bf16.mxu0 %v7479_v51 }
 0x47c   :  { %v1291_v46 = vsel %vm391_vm0, %v1274_v43, 1.0  ;;  %v1275_v47 = vmul.f32 %v6968_v44, %v7800_v4  ;;  %6214 = vmatmul.mubr.msk.f32.gmra.mrb[82].mxu1 %vm391_vm0, %v7887_v41  ;;  %v7905_v0 = vmul.f32 %v1277_v17, %v1274_v43 }
 0x47d   :  { %v6970_v48 = vpop.eup %6969  ;;  %v7900_v49 = vpack.c.bf16 %v1291_v46, %v1290_v45  ;;  %6216 = vmatprep.mubr.msk.f32.mxu1 %vm391_vm0, %v7889_v42  ;;  %6685 = vmatpush3.bf16.msra.mxu1 %v7872_v28 }
 0x47e   :  { %v7907_v1 = vmul.f32 %v1277_v17, %v1275_v47  ;;  %v1276_v2 = vmul.f32 %v6970_v48, %v7807_v32  ;;  %6697 = vmatpush3.bf16.msra.mxu0 %v7872_v28  ;;  %6686 = vmatprep.subr.bf16.mxu1 %v7479_v51  ;;  %v1292_v3 = vsel %vm391_vm0, %v1275_v47, 1.0 }
 0x47f   :  { %6698 = vmatprep.subr.bf16.mxu0 %v7479_v51 }
 0x480   :  { %v1293_v5 = vsel %vm391_vm0, %v1276_v2, 1.0  ;;  %6217 = vmatmul.mubr.msk.f32.gmra.mrb[84].mxu1 %vm391_vm0, %v7905_v0  ;;  %v7922_v7 = vmul.f32 %v1277_v17, %v1276_v2 }
 0x481   :  { %v7917_v6 = vpack.c.bf16 %v1293_v5, %v1292_v3  ;;  %6219 = vmatprep.mubr.msk.f32.mxu1 %vm391_vm0, %v7907_v1  ;;  %6688 = vmatpush3.bf16.msra.mxu1 %v7900_v49 }
 0x482   :  { %6700 = vmatpush3.bf16.msra.mxu0 %v7900_v49  ;;  %6689 = vmatprep.subr.bf16.mxu1 %v7479_v51 }
 0x483   :  { %6701 = vmatprep.subr.bf16.mxu0 %v7479_v51 }
 0x484   :  { %6220 = vmatmul.mubr.msk.f32.gmra.mrb[86].mxu1 %vm391_vm0, %v7922_v7 }
 0x485   :  { %6691 = vmatpush3.bf16.msra.mxu1 %v7917_v6 }
 0x486   :  { %6703 = vmatpush3.bf16.msra.mxu0 %v7917_v6 }
 0x54b   :  { %v6212_v8 = vpop.f32.mrb[80].mxu1 }
 0x54c   :  { %v1388_v19 = vpop.f32.mrb[81].mxu1  ;;  %v1431_v20 = vsel %vm1427_vm1, %v6212_v8, -inf }
 0x54d   :  { %1432 = vmax.xlane.f32.xlu1 %v1431_v20  ;;  %v1428_v17 = vsel %vm1427_vm1, %v1388_v19, -inf }
 0x54e   :  { %1429 = vmax.xlane.f32.xlu0 %v1428_v17 }
 0x54f   :  { %v6215_v12 = vpop.f32.mrb[82].mxu1 }
 0x550   :  { %v1398_v13 = vpop.f32.mrb[83].mxu1  ;;  %v1437_v16 = vsel %vm1427_vm1, %v6215_v12, -inf }
 0x551   :  { %1438 = vmax.xlane.f32.xlu1 %v1437_v16  ;;  %v1434_v22 = vsel %vm1427_vm1, %v1398_v13, -inf }
 0x552   :  { %1435 = vmax.xlane.f32.xlu0 %v1434_v22 }
 0x553   :  { %v6218_v23 = vpop.f32.mrb[84].mxu1 }
 0x554   :  { %v1408_v24 = vpop.f32.mrb[85].mxu1  ;;  %v1443_v25 = vsel %vm1427_vm1, %v6218_v23, -inf }
 0x555   :  { %1444 = vmax.xlane.f32.xlu1 %v1443_v25  ;;  %v1440_v26 = vsel %vm1427_vm1, %v1408_v24, -inf }
 0x556   :  { %1441 = vmax.xlane.f32.xlu0 %v1440_v26 }
 0x557   :  { %v6221_v27 = vpop.f32.mrb[86].mxu1 }
 0x558   :  { %v1418_v31 = vpop.f32.mrb[87].mxu1  ;;  %v1449_v33 = vsel %vm1427_vm1, %v6221_v27, -inf }
 0x559   :  { %1450 = vmax.xlane.f32.xlu1 %v1449_v33  ;;  %v1446_v36 = vsel %vm1427_vm1, %v1418_v31, -inf }
 0x55a   :  { %1447 = vmax.xlane.f32.xlu0 %v1446_v36 }
 0x5da   :  { %v1433_v39 = vpop.xlane.xlu1 %1432 }
 0x5db   :  { %v1453_v43 = vsub.f32 %v6212_v8, %v1433_v39  ;;  %v1430_v44 = vpop.xlane.xlu0 %1429 }
 0x5dc   :  { %v1452_v45 = vsub.f32 %v1388_v19, %v1430_v44 }
 0x5dd   :  { %v1462_v46 = vmul.f32 1.442695, %v1453_v43 }
 0x5de   :  { %v1460_v47 = vmul.f32 1.442695, %v1452_v45  ;;  %v1439_v48 = vpop.xlane.xlu1 %1438 }
 0x5df   :  { %6971 = vpow2.f32 %v1462_v46  ;;  %v1455_v2 = vsub.f32 %v6215_v12, %v1439_v48  ;;  %v1436_v3 = vpop.xlane.xlu0 %1435 }
 0x5e0   :  { %6973 = vpow2.f32 %v1460_v47  ;;  %v1454_v5 = vsub.f32 %v1398_v13, %v1436_v3 }
 0x5e1   :  { %v1466_v20 = vmul.f32 1.442695, %v1455_v2 }
 0x5e2   :  { %v1464_v17 = vmul.f32 1.442695, %v1454_v5  ;;  %v1445_v16 = vpop.xlane.xlu1 %1444 }
 0x5e3   :  { %6975 = vpow2.f32 %v1466_v20  ;;  %v1457_v22 = vsub.f32 %v6218_v23, %v1445_v16  ;;  %v1442_v25 = vpop.xlane.xlu0 %1441 }
 0x5e4   :  { %6977 = vpow2.f32 %v1464_v17  ;;  %v1456_v26 = vsub.f32 %v1408_v24, %v1442_v25  ;;  %v7481_v25 = vmov 0.0  }
 0x5e5   :  { %v1470_v33 = vmul.f32 1.442695, %v1457_v22  ;;  %6238 = vmatprep.mubr.msk.f32.mxu1 %vm7480_vm2, %v7481_v25  ;;  %6271 = vmatprep.mubr.msk.f32.mxu0 %vm7480_vm2, %v7481_v25 }
 0x5e6   :  { %v1468_v8 = vmul.f32 1.442695, %v1456_v26  ;;  %v1451_v36 = vpop.xlane.xlu1 %1450 }
 0x5e7   :  { %6979 = vpow2.f32 %v1470_v33  ;;  %v1459_v19 = vsub.f32 %v6221_v27, %v1451_v36  ;;  %v1448_v39 = vpop.xlane.xlu0 %1447 }
 0x5e8   :  { %6981 = vpow2.f32 %v1468_v8  ;;  %v1458_v43 = vsub.f32 %v1418_v31, %v1448_v39 }
 0x5e9   :  { %v6972_v12 = vpop.eup %6971  ;;  %v1474_v44 = vmul.f32 1.442695, %v1459_v19 }
 0x5ea   :  { %v6974_v45 = vpop.eup %6973  ;;  %v1472_v13 = vmul.f32 1.442695, %v1458_v43  ;;  %v1479_v46 = vsel %vm1427_vm1, %v6972_v12, 0.0 }
 0x5eb   :  { %6983 = vpow2.f32 %v1474_v44  ;;  %1480 = vadd.xlane.f32.xlu1 %v1479_v46  ;;  %v1476_v23 = vsel %vm1427_vm1, %v6974_v45, 0.0 }
 0x5ec   :  { %6985 = vpow2.f32 %v1472_v13  ;;  %1477 = vadd.xlane.f32.xlu0 %v1476_v23 }
 0x5ed   :  { %v6976_v24 = vpop.eup %6975 }
 0x5ee   :  { %v6978_v47 = vpop.eup %6977  ;;  %v1485_v48 = vsel %vm1427_vm1, %v6976_v24, 0.0 }
 0x5ef   :  { %1486 = vadd.xlane.f32.xlu1 %v1485_v48  ;;  %v1482_v27 = vsel %vm1427_vm1, %v6978_v47, 0.0  ;;  %v7482_v48 = vmov 32  }
 0x5f0   :  { %1483 = vadd.xlane.f32.xlu0 %v1482_v27  ;;  %6893 = vset.pattern.permute.xlu1 %v7482_v48 }
 0x5f1   :  { %v6980_v31 = vpop.eup %6979 }
 0x5f2   :  { %v6982_v2 = vpop.eup %6981  ;;  %v1491_v3 = vsel %vm1427_vm1, %v6980_v31, 0.0 }
 0x5f3   :  { %1492 = vadd.xlane.f32.xlu1 %v1491_v3  ;;  %v1488_v5 = vsel %vm1427_vm1, %v6982_v2, 0.0 }
 0x5f4   :  { %1489 = vadd.xlane.f32.xlu0 %v1488_v5 }
 0x5f5   :  { %v6984_v20 = vpop.eup %6983 }
 0x5f6   :  { %v6986_v17 = vpop.eup %6985  ;;  %v1497_v16 = vsel %vm1427_vm1, %v6984_v20, 0.0 }
 0x5f7   :  { %1498 = vadd.xlane.f32.xlu1 %v1497_v16  ;;  %v1494_v22 = vsel %vm1427_vm1, %v6986_v17, 0.0 }
 0x5f8   :  { %1495 = vadd.xlane.f32.xlu0 %v1494_v22 }
 0x678   :  { %v1481_v26 = vpop.xlane.xlu1 %1480 }
 0x679   :  { %v1478_v33 = vpop.xlane.xlu0 %1477 }
 0x67a   :  { %6987 = vrcp.f32 %v1478_v33 }
 0x67b   :  { %6989 = vrcp.f32 %v1481_v26 }
 0x67c   :  { %v1487_v36 = vpop.xlane.xlu1 %1486 }
 0x67d   :  { %v1484_v8 = vpop.xlane.xlu0 %1483 }
 0x67e   :  { %6991 = vrcp.f32 %v1484_v8 }
 0x67f   :  { %6993 = vrcp.f32 %v1487_v36 }
 0x680   :  { %v1493_v13 = vpop.xlane.xlu1 %1492 }
 0x681   :  { %v1490_v39 = vpop.xlane.xlu0 %1489 }
 0x682   :  { %6995 = vrcp.f32 %v1490_v39 }
 0x683   :  { %6997 = vrcp.f32 %v1493_v13 }
 0x684   :  { %v6988_v19 = vpop.eup %6987  ;;  %v1499_v16 = vpop.xlane.xlu1 %1498 }
 0x685   :  { %v1501_v43 = vmul.f32 %v6988_v19, %v6974_v45  ;;  %v6990_v44 = vpop.eup %6989  ;;  %v1496_v27 = vpop.xlane.xlu0 %1495 }
 0x686   :  { %v1503_v46 = vmul.f32 %v6990_v44, %v6972_v12  ;;  %6999 = vrcp.f32 %v1496_v27 }
 0x687   :  { %1516 = vxpose.xlu0.b32.start [1/8] (short) (narrow) %v1501_v43, 8  ;;  %7001 = vrcp.f32 %v1499_v16 }
 0x688   :  { %v6992_v23 = vpop.eup %6991 }
 0x689   :  { %v1505_v3 = vmul.f32 %v6992_v23, %v6978_v47  ;;  %v6994_v5 = vpop.eup %6993 }
 0x68a   :  { %v1507_v22 = vmul.f32 %v6994_v5, %v6976_v24 }
 0x68b   :  { %1517 = vxpose.xlu0.b32.cont [2/8] (short) (narrow) %v1503_v46, 8 }
 0x68c   :  { %v6996_v26 = vpop.eup %6995 }
 0x68d   :  { %v1509_v45 = vmul.f32 %v6996_v26, %v6982_v2  ;;  %v6998_v33 = vpop.eup %6997 }
 0x68e   :  { %v1511_v8 = vmul.f32 %v6998_v33, %v6980_v31 }
 0x68f   :  { %1518 = vxpose.xlu0.b32.cont [3/8] (short) (narrow) %v1505_v3, 8 }
 0x690   :  { %v7000_v12 = vpop.eup %6999 }
 0x691   :  { %v1513_v36 = vmul.f32 %v7000_v12, %v6986_v17  ;;  %v7002_v19 = vpop.eup %7001 }
 0x692   :  { %v1515_v39 = vmul.f32 %v7002_v19, %v6984_v20 }
 0x693   :  { %1519 = vxpose.xlu0.b32.cont [4/8] (short) (narrow) %v1507_v22, 8 }
 0x697   :  { %1520 = vxpose.xlu0.b32.cont [5/8] (short) (narrow) %v1509_v45, 8 }
 0x69b   :  { %1521 = vxpose.xlu0.b32.cont [6/8] (short) (narrow) %v1511_v8, 8 }
 0x69f   :  { %1522 = vxpose.xlu0.b32.cont [7/8] (short) (narrow) %v1513_v36, 8 }
 0x6a3   :  { %1523 = vxpose.xlu0.b32.end [8/8] (short) (narrow) %v1515_v39, 8 }
 0x6cc   :  { %6894 = vset.pattern.permute.xlu0 %v7482_v48 }
 0x707   :  { %v1532_v47 = vpop.trf.xlu0 }
 0x708   :  { %6239 = vmatmul.mubr.msk.f32.vlgmr.msra.gmra.mrb[88].mxu1 %vm1548_vm3, %v1532_v47 }
 0x709   :  { %6243 = vmatprep.mubr.msk.f32.mxu1 %vm391_vm0, %v7863_v14 }
 0x7db   :  { %v1618_v24 = vpop.f32.mrb[88].mxu1 }
 0x7dc   :  { %1624 = vperm.xlu1 %6893, %v1618_v24   ;;  %v6240_v2 = vpop.f32.mrb[89].mxu1 }
 0x85b   :  { %v1625_v43 = vpop.permute.xlu1 %1624 }
 0x85c   :  { %7003 = vrcp.f32 %v1625_v43 }
 0x866   :  { %v7004_v31 = vpop.eup %7003 }
 0x867   :  { %v1628_v44 = vmul.f32 %v7004_v31, %v1618_v24 }
 0x869   :  { %6241 = vmatprep.subr.msk.mxu1 %vm391_vm0, %v1628_v44 }
 0x86a   :  { %6242 = vmatpush3.xpose.msk.msra.mxu1 %vm391_vm0, %v1628_v44 }
 0x86b   :  { %6704 = vmatprep.subr.bf16.mxu1 %v7479_v51 }
 0x86d   :  { %6244 = vmatmul.mubr.msk.f32.vlgmr.msra.gmra.mrb[90].mxu1 %vm391_vm0, %v7874_v30 }
 0x86e   :  { %6246 = vmatprep.mubr.msk.f32.mxu1 %vm391_vm0, %v7877_v34  ;;  %6706 = vmatpush3.bf16.msra.mxu1 %v7879_v35 }
 0x86f   :  { %6707 = vmatprep.subr.bf16.mxu1 %v7479_v51 }
 0x871   :  { %6247 = vmatmul.mubr.msk.f32.gmra.mrb[92].mxu1 %vm391_vm0, %v7887_v41 }
 0x872   :  { %6249 = vmatprep.mubr.msk.f32.mxu1 %vm391_vm0, %v7889_v42  ;;  %6709 = vmatpush3.bf16.msra.mxu1 %v7872_v28 }
 0x873   :  { %6710 = vmatprep.subr.bf16.mxu1 %v7479_v51 }
 0x875   :  { %6250 = vmatmul.mubr.msk.f32.gmra.mrb[94].mxu1 %vm391_vm0, %v7905_v0 }
 0x876   :  { %6252 = vmatprep.mubr.msk.f32.mxu1 %vm391_vm0, %v7907_v1  ;;  %6712 = vmatpush3.bf16.msra.mxu1 %v7900_v49 }
 0x877   :  { %6713 = vmatprep.subr.bf16.mxu1 %v7479_v51 }
 0x879   :  { %6253 = vmatmul.mubr.msk.f32.gmra.mrb[96].mxu1 %vm391_vm0, %v7922_v7 }
 0x87a   :  { %6715 = vmatpush3.bf16.msra.mxu1 %v7917_v6  ;;  %6304 = vmatprep.mubr.msk.f32.mxu1 %vm7480_vm2, %v7481_v25 }
 0x940   :  { %v6245_v20 = vpop.f32.mrb[90].mxu1 }
 0x941   :  { %v1698_v17 = vpop.f32.mrb[91].mxu1  ;;  %v1740_v13 = vsel %vm1427_vm1, %v6245_v20, -inf }
 0x942   :  { %1741 = vmax.xlane.f32.xlu1 %v1740_v13  ;;  %v1737_v48 = vsel %vm1427_vm1, %v1698_v17, -inf }
 0x944   :  { %v6248_v46 = vpop.f32.mrb[92].mxu1 }
 0x945   :  { %v1708_v23 = vpop.f32.mrb[93].mxu1  ;;  %v1746_v5 = vsel %vm1427_vm1, %v6248_v46, -inf }
 0x946   :  { %1738 = vmax.xlane.f32.xlu1 %v1737_v48  ;;  %v1743_v26 = vsel %vm1427_vm1, %v1708_v23, -inf }
 0x948   :  { %v6251_v27 = vpop.f32.mrb[94].mxu1 }
 0x949   :  { %v1718_v3 = vpop.f32.mrb[95].mxu1  ;;  %v1752_v8 = vsel %vm1427_vm1, %v6251_v27, -inf }
 0x94a   :  { %1747 = vmax.xlane.f32.xlu1 %v1746_v5  ;;  %v1749_v33 = vsel %vm1427_vm1, %v1718_v3, -inf }
 0x94c   :  { %v6254_v16 = vpop.f32.mrb[96].mxu1 }
 0x94d   :  { %v1728_v22 = vpop.f32.mrb[97].mxu1  ;;  %v1758_v12 = vsel %vm1427_vm1, %v6254_v16, -inf }
 0x94e   :  { %1744 = vmax.xlane.f32.xlu1 %v1743_v26  ;;  %v1755_v45 = vsel %vm1427_vm1, %v1728_v22, -inf }
 0x94f   :  { %1756 = vmax.xlane.f32.xlu0 %v1755_v45 }
 0x952   :  { %1750 = vmax.xlane.f32.xlu1 %v1749_v33 }
 0x956   :  { %1753 = vmax.xlane.f32.xlu1 %v1752_v8 }
 0x95a   :  { %1759 = vmax.xlane.f32.xlu1 %v1758_v12 }
 0x9cf   :  { %v1742_v36 = vpop.xlane.xlu1 %1741 }
 0x9d0   :  { %v1762_v19 = vsub.f32 %v6245_v20, %v1742_v36 }
 0x9d2   :  { %v1771_v39 = vmul.f32 1.442695, %v1762_v19 }
 0x9d3   :  { %v1739_v47 = vpop.xlane.xlu1 %1738 }
 0x9d4   :  { %7005 = vpow2.f32 %v1771_v39  ;;  %v1761_v24 = vsub.f32 %v1698_v17, %v1739_v47 }
 0x9d6   :  { %v1769_v2 = vmul.f32 1.442695, %v1761_v24 }
 0x9d7   :  { %v1748_v43 = vpop.xlane.xlu1 %1747 }
 0x9d8   :  { %7007 = vpow2.f32 %v1769_v2  ;;  %v1764_v31 = vsub.f32 %v6248_v46, %v1748_v43 }
 0x9da   :  { %v1775_v44 = vmul.f32 1.442695, %v1764_v31 }
 0x9db   :  { %v1745_v13 = vpop.xlane.xlu1 %1744 }
 0x9dc   :  { %7009 = vpow2.f32 %v1775_v44  ;;  %v1763_v48 = vsub.f32 %v1708_v23, %v1745_v13  ;;  %v1757_v12 = vpop.xlane.xlu0 %1756 }
 0x9dd   :  { %v1767_v39 = vsub.f32 %v1728_v22, %v1757_v12 }
 0x9de   :  { %v7006_v5 = vpop.eup %7005  ;;  %v1773_v26 = vmul.f32 1.442695, %v1763_v48 }
 0x9df   :  { %v1751_v45 = vpop.xlane.xlu1 %1750  ;;  %v1788_v33 = vsel %vm1427_vm1, %v7006_v5, 0.0  ;;  %v1781_v31 = vmul.f32 1.442695, %v1767_v39 }
 0x9e0   :  { %7011 = vpow2.f32 %v1773_v26  ;;  %1789 = vadd.xlane.f32.xlu1 %v1788_v33  ;;  %v1765_v8 = vsub.f32 %v1718_v3, %v1751_v45 }
 0x9e2   :  { %v7008_v20 = vpop.eup %7007  ;;  %v1777_v47 = vmul.f32 1.442695, %v1765_v8 }
 0x9e3   :  { %v1754_v36 = vpop.xlane.xlu1 %1753  ;;  %v1785_v17 = vsel %vm1427_vm1, %v7008_v20, 0.0 }
 0x9e4   :  { %v1766_v19 = vsub.f32 %v6251_v27, %v1754_v36  ;;  %1786 = vadd.xlane.f32.xlu1 %v1785_v17 }
 0x9e6   :  { %v7010_v46 = vpop.eup %7009  ;;  %v1779_v24 = vmul.f32 1.442695, %v1766_v19 }
 0x9e7   :  { %v1760_v23 = vpop.xlane.xlu1 %1759  ;;  %v1794_v2 = vsel %vm1427_vm1, %v7010_v46, 0.0 }
 0x9e8   :  { %7013 = vpow2.f32 %v1779_v24  ;;  %1795 = vadd.xlane.f32.xlu1 %v1794_v2  ;;  %v1768_v44 = vsub.f32 %v6254_v16, %v1760_v23 }
 0x9e9   :  { %7015 = vpow2.f32 %v1777_v47 }
 0x9ea   :  { %v7012_v43 = vpop.eup %7011  ;;  %7017 = vpow2.f32 %v1781_v31  ;;  %v1783_v13 = vmul.f32 1.442695, %v1768_v44 }
 0x9eb   :  { %v1791_v3 = vsel %vm1427_vm1, %v7012_v43, 0.0 }
 0x9ec   :  { %1792 = vadd.xlane.f32.xlu1 %v1791_v3  ;;  %7019 = vpow2.f32 %v1783_v13 }
 0x9f2   :  { %v7014_v27 = vpop.eup %7013 }
 0x9f3   :  { %v1800_v22 = vsel %vm1427_vm1, %v7014_v27, 0.0  ;;  %v7016_v48 = vpop.eup %7015 }
 0x9f4   :  { %1801 = vadd.xlane.f32.xlu1 %v1800_v22  ;;  %v1797_v26 = vsel %vm1427_vm1, %v7016_v48, 0.0  ;;  %v7018_v45 = vpop.eup %7017 }
 0x9f5   :  { %v1803_v33 = vsel %vm1427_vm1, %v7018_v45, 0.0 }
 0x9f6   :  { %v7020_v8 = vpop.eup %7019 }
 0x9f7   :  { %v1806_v16 = vsel %vm1427_vm1, %v7020_v8, 0.0 }
 0x9f8   :  { %1798 = vadd.xlane.f32.xlu1 %v1797_v26 }
 0x9fc   :  { %1804 = vadd.xlane.f32.xlu1 %v1803_v33 }
 0xa00   :  { %1807 = vadd.xlane.f32.xlu1 %v1806_v16 }
 0xa6d   :  { %v1790_v12 = vpop.xlane.xlu1 %1789 }
 0xa71   :  { %v1787_v36 = vpop.xlane.xlu1 %1786 }
 0xa72   :  { %7021 = vrcp.f32 %v1787_v36 }
 0xa73   :  { %7023 = vrcp.f32 %v1790_v12 }
 0xa75   :  { %v1796_v17 = vpop.xlane.xlu1 %1795 }
 0xa79   :  { %v1793_v19 = vpop.xlane.xlu1 %1792 }
 0xa7a   :  { %7025 = vrcp.f32 %v1793_v19 }
 0xa7b   :  { %7027 = vrcp.f32 %v1796_v17 }
 0xa7c   :  { %v7022_v39 = vpop.eup %7021 }
 0xa7d   :  { %v1810_v47 = vmul.f32 %v7022_v39, %v7008_v20  ;;  %v7024_v24 = vpop.eup %7023 }
 0xa7e   :  { %v1812_v2 = vmul.f32 %v7024_v24, %v7006_v5 }
 0xa7f   :  { %1825 = vxpose.xlu1.b32.start [1/8] (short) (narrow) %v1810_v47, 8 }
 0xa81   :  { %v1802_v23 = vpop.xlane.xlu1 %1801 }
 0xa83   :  { %1826 = vxpose.xlu1.b32.cont [2/8] (short) (narrow) %v1812_v2, 8 }
 0xa84   :  { %v7026_v31 = vpop.eup %7025 }
 0xa85   :  { %v1799_v44 = vpop.xlane.xlu1 %1798  ;;  %v1814_v3 = vmul.f32 %v7026_v31, %v7012_v43  ;;  %v7028_v13 = vpop.eup %7027 }
 0xa86   :  { %7029 = vrcp.f32 %v1799_v44  ;;  %v1816_v26 = vmul.f32 %v7028_v13, %v7010_v46 }
 0xa87   :  { %1827 = vxpose.xlu1.b32.cont [3/8] (short) (narrow) %v1814_v3, 8  ;;  %7031 = vrcp.f32 %v1802_v23 }
 0xa89   :  { %v1805_v22 = vpop.xlane.xlu1 %1804 }
 0xa8a   :  { %7033 = vrcp.f32 %v1805_v22 }
 0xa8b   :  { %1828 = vxpose.xlu1.b32.cont [4/8] (short) (narrow) %v1816_v26, 8 }
 0xa8d   :  { %v1808_v33 = vpop.xlane.xlu1 %1807 }
 0xa8e   :  { %7035 = vrcp.f32 %v1808_v33 }
 0xa90   :  { %v7030_v16 = vpop.eup %7029 }
 0xa91   :  { %v1818_v20 = vmul.f32 %v7030_v16, %v7016_v48  ;;  %v7032_v12 = vpop.eup %7031 }
 0xa92   :  { %v1820_v36 = vmul.f32 %v7032_v12, %v7014_v27 }
 0xa93   :  { %1829 = vxpose.xlu1.b32.cont [5/8] (short) (narrow) %v1818_v20, 8 }
 0xa94   :  { %v7034_v5 = vpop.eup %7033 }
 0xa95   :  { %v1822_v17 = vmul.f32 %v7034_v5, %v7018_v45 }
 0xa97   :  { %1830 = vxpose.xlu1.b32.cont [6/8] (short) (narrow) %v1820_v36, 8 }
 0xa98   :  { %v7036_v19 = vpop.eup %7035 }
 0xa99   :  { %v1824_v43 = vmul.f32 %v7036_v19, %v7020_v8 }
 0xa9b   :  { %1831 = vxpose.xlu1.b32.cont [7/8] (short) (narrow) %v1822_v17, 8 }
 0xa9f   :  { %1832 = vxpose.xlu1.b32.end [8/8] (short) (narrow) %v1824_v43, 8 }
 0xb03   :  { %v1841_v39 = vpop.trf.xlu1 }
 0xb04   :  { %6272 = vmatmul.mubr.msk.f32.vlgmr.msra.gmra.mrb[80].mxu0 %vm1548_vm3, %v1841_v39 }
 0xb05   :  { %6276 = vmatprep.mubr.msk.f32.mxu0 %vm391_vm0, %v7863_v14 }
 0xbd7   :  { %v1926_v46 = vpop.f32.mrb[80].mxu0 }
 0xbd8   :  { %1932 = vperm.xlu0 %6894, %v1926_v46   ;;  %v6273_v47 = vpop.f32.mrb[81].mxu0 }
 0xc57   :  { %v1933_v48 = vpop.permute.xlu0 %1932 }
 0xc58   :  { %7037 = vrcp.f32 %v1933_v48 }
 0xc62   :  { %v7038_v24 = vpop.eup %7037 }
 0xc63   :  { %v1936_v27 = vmul.f32 %v7038_v24, %v1926_v46 }
 0xc65   :  { %6274 = vmatprep.subr.msk.mxu0 %vm391_vm0, %v1936_v27 }
 0xc66   :  { %6275 = vmatpush3.xpose.msk.msra.mxu0 %vm391_vm0, %v1936_v27 }
 0xc67   :  { %6716 = vmatprep.subr.bf16.mxu0 %v7479_v51 }
 0xc69   :  { %6277 = vmatmul.mubr.msk.f32.vlgmr.msra.gmra.mrb[82].mxu0 %vm391_vm0, %v7874_v30 }
 0xc6a   :  { %6279 = vmatprep.mubr.msk.f32.mxu0 %vm391_vm0, %v7877_v34  ;;  %6718 = vmatpush3.bf16.msra.mxu0 %v7879_v35 }
 0xc6b   :  { %6719 = vmatprep.subr.bf16.mxu0 %v7479_v51 }
 0xc6d   :  { %6280 = vmatmul.mubr.msk.f32.gmra.mrb[84].mxu0 %vm391_vm0, %v7887_v41 }
 0xc6e   :  { %6282 = vmatprep.mubr.msk.f32.mxu0 %vm391_vm0, %v7889_v42  ;;  %6721 = vmatpush3.bf16.msra.mxu0 %v7872_v28 }
 0xc6f   :  { %6722 = vmatprep.subr.bf16.mxu0 %v7479_v51 }
 0xc71   :  { %6283 = vmatmul.mubr.msk.f32.gmra.mrb[86].mxu0 %vm391_vm0, %v7905_v0 }
 0xc72   :  { %6285 = vmatprep.mubr.msk.f32.mxu0 %vm391_vm0, %v7907_v1  ;;  %6724 = vmatpush3.bf16.msra.mxu0 %v7900_v49 }
 0xc73   :  { %6725 = vmatprep.subr.bf16.mxu0 %v7479_v51 }
 0xc75   :  { %6286 = vmatmul.mubr.msk.f32.gmra.mrb[88].mxu0 %vm391_vm0, %v7922_v7 }
 0xc76   :  { %6727 = vmatpush3.bf16.msra.mxu0 %v7917_v6  ;;  %6337 = vmatprep.mubr.msk.f32.mxu0 %vm7480_vm2, %v7481_v25 }
 0xd3c   :  { %v6278_v45 = vpop.f32.mrb[82].mxu0 }
 0xd3d   :  { %v2006_v8 = vpop.f32.mrb[83].mxu0  ;;  %v2048_v23 = vsel %vm1427_vm1, %v6278_v45, -inf }
 0xd3e   :  { %2049 = vmax.xlane.f32.xlu1 %v2048_v23  ;;  %v2045_v2 = vsel %vm1427_vm1, %v2006_v8, -inf }
 0xd3f   :  { %2046 = vmax.xlane.f32.xlu0 %v2045_v2 }
 0xd40   :  { %v6281_v31 = vpop.f32.mrb[84].mxu0 }
 0xd41   :  { %v2016_v44 = vpop.f32.mrb[85].mxu0  ;;  %v2054_v3 = vsel %vm1427_vm1, %v6281_v31, -inf }
 0xd42   :  { %v2051_v26 = vsel %vm1427_vm1, %v2016_v44, -inf }
 0xd43   :  { %2055 = vmax.xlane.f32.xlu0 %v2054_v3 }
 0xd44   :  { %v6284_v13 = vpop.f32.mrb[86].mxu0 }
 0xd45   :  { %v2026_v22 = vpop.f32.mrb[87].mxu0  ;;  %v2060_v20 = vsel %vm1427_vm1, %v6284_v13, -inf }
 0xd46   :  { %v2057_v12 = vsel %vm1427_vm1, %v2026_v22, -inf }
 0xd47   :  { %2052 = vmax.xlane.f32.xlu0 %v2051_v26 }
 0xd48   :  { %v6287_v33 = vpop.f32.mrb[88].mxu0 }
 0xd49   :  { %v2036_v16 = vpop.f32.mrb[89].mxu0  ;;  %v2066_v5 = vsel %vm1427_vm1, %v6287_v33, -inf }
 0xd4a   :  { %v2063_v36 = vsel %vm1427_vm1, %v2036_v16, -inf }
 0xd4b   :  { %2061 = vmax.xlane.f32.xlu0 %v2060_v20 }
 0xd4f   :  { %2058 = vmax.xlane.f32.xlu0 %v2057_v12 }
 0xd53   :  { %2064 = vmax.xlane.f32.xlu0 %v2063_v36 }
 0xd57   :  { %2067 = vmax.xlane.f32.xlu0 %v2066_v5 }
 0xdcb   :  { %v2050_v17 = vpop.xlane.xlu1 %2049 }
 0xdcc   :  { %v2070_v19 = vsub.f32 %v6278_v45, %v2050_v17  ;;  %v2047_v43 = vpop.xlane.xlu0 %2046 }
 0xdcd   :  { %v2069_v39 = vsub.f32 %v2006_v8, %v2047_v43 }
 0xdce   :  { %v2079_v46 = vmul.f32 1.442695, %v2070_v19 }
 0xdcf   :  { %v2077_v47 = vmul.f32 1.442695, %v2069_v39 }
 0xdd0   :  { %7039 = vpow2.f32 %v2079_v46  ;;  %v2056_v48 = vpop.xlane.xlu0 %2055 }
 0xdd1   :  { %v2072_v24 = vsub.f32 %v6281_v31, %v2056_v48  ;;  %7041 = vpow2.f32 %v2077_v47 }
 0xdd3   :  { %v2083_v27 = vmul.f32 1.442695, %v2072_v24 }
 0xdd4   :  { %v2053_v23 = vpop.xlane.xlu0 %2052 }
 0xdd5   :  { %7043 = vpow2.f32 %v2083_v27  ;;  %v2071_v2 = vsub.f32 %v2016_v44, %v2053_v23 }
 0xdd7   :  { %v2081_v3 = vmul.f32 1.442695, %v2071_v2 }
 0xdd8   :  { %v2062_v26 = vpop.xlane.xlu0 %2061 }
 0xdd9   :  { %7045 = vpow2.f32 %v2081_v3  ;;  %v2074_v20 = vsub.f32 %v6284_v13, %v2062_v26 }
 0xdda   :  { %v7040_v12 = vpop.eup %7039 }
 0xddb   :  { %v2087_v36 = vmul.f32 1.442695, %v2074_v20  ;;  %v2096_v45 = vsel %vm1427_vm1, %v7040_v12, 0.0  ;;  %v7042_v5 = vpop.eup %7041 }
 0xddc   :  { %v2059_v8 = vpop.xlane.xlu0 %2058  ;;  %2097 = vadd.xlane.f32.xlu0 %v2096_v45  ;;  %v2093_v43 = vsel %vm1427_vm1, %v7042_v5, 0.0 }
 0xddd   :  { %7047 = vpow2.f32 %v2087_v36  ;;  %v2073_v17 = vsub.f32 %v2026_v22, %v2059_v8 }
 0xddf   :  { %v7044_v19 = vpop.eup %7043  ;;  %v2085_v31 = vmul.f32 1.442695, %v2073_v17 }
 0xde0   :  { %2094 = vadd.xlane.f32.xlu0 %v2093_v43  ;;  %v2065_v39 = vpop.xlane.xlu0 %2064  ;;  %v2102_v44 = vsel %vm1427_vm1, %v7044_v19, 0.0 }
 0xde1   :  { %7049 = vpow2.f32 %v2085_v31  ;;  %v2075_v46 = vsub.f32 %v2036_v16, %v2065_v39  ;;  %2103 = vadd.xlane.f32.xlu1 %v2102_v44 }
 0xde3   :  { %v7046_v13 = vpop.eup %7045  ;;  %v2089_v47 = vmul.f32 1.442695, %v2075_v46 }
 0xde4   :  { %v2068_v48 = vpop.xlane.xlu0 %2067  ;;  %v2099_v24 = vsel %vm1427_vm1, %v7046_v13, 0.0 }
 0xde5   :  { %7051 = vpow2.f32 %v2089_v47  ;;  %v2076_v27 = vsub.f32 %v6287_v33, %v2068_v48  ;;  %2100 = vadd.xlane.f32.xlu0 %v2099_v24 }
 0xde7   :  { %v7048_v22 = vpop.eup %7047  ;;  %v2091_v23 = vmul.f32 1.442695, %v2076_v27 }
 0xde8   :  { %v2108_v2 = vsel %vm1427_vm1, %v7048_v22, 0.0 }
 0xde9   :  { %7053 = vpow2.f32 %v2091_v23  ;;  %2109 = vadd.xlane.f32.xlu1 %v2108_v2 }
 0xdeb   :  { %v7050_v3 = vpop.eup %7049 }
 0xdec   :  { %v2105_v26 = vsel %vm1427_vm1, %v7050_v3, 0.0 }
 0xded   :  { %2106 = vadd.xlane.f32.xlu0 %v2105_v26 }
 0xdef   :  { %v7052_v16 = vpop.eup %7051 }
 0xdf0   :  { %v2111_v20 = vsel %vm1427_vm1, %v7052_v16, 0.0 }
 0xdf1   :  { %2112 = vadd.xlane.f32.xlu0 %v2111_v20 }
 0xdf3   :  { %v7054_v36 = vpop.eup %7053 }
 0xdf4   :  { %v2114_v45 = vsel %vm1427_vm1, %v7054_v36, 0.0 }
 0xdf5   :  { %2115 = vadd.xlane.f32.xlu1 %v2114_v45 }
 0xe69   :  { %v2098_v33 = vpop.xlane.xlu0 %2097 }
 0xe6d   :  { %v2095_v8 = vpop.xlane.xlu0 %2094 }
 0xe6e   :  { %7055 = vrcp.f32 %v2095_v8  ;;  %v2104_v31 = vpop.xlane.xlu1 %2103 }
 0xe6f   :  { %7057 = vrcp.f32 %v2098_v33 }
 0xe72   :  { %v2101_v17 = vpop.xlane.xlu0 %2100 }
 0xe73   :  { %7059 = vrcp.f32 %v2101_v17 }
 0xe74   :  { %7061 = vrcp.f32 %v2104_v31 }
 0xe76   :  { %v2110_v47 = vpop.xlane.xlu1 %2109 }
 0xe78   :  { %v7056_v43 = vpop.eup %7055 }
 0xe79   :  { %v2118_v39 = vmul.f32 %v7056_v43, %v7042_v5  ;;  %v7058_v44 = vpop.eup %7057 }
 0xe7a   :  { %v2107_v46 = vpop.xlane.xlu0 %2106  ;;  %v2120_v48 = vmul.f32 %v7058_v44, %v7040_v12 }
 0xe7b   :  { %2133 = vxpose.xlu0.b32.start [1/8] (short) (narrow) %v2118_v39, 8  ;;  %7063 = vrcp.f32 %v2107_v46 }
 0xe7c   :  { %7065 = vrcp.f32 %v2110_v47 }
 0xe7d   :  { %v7060_v24 = vpop.eup %7059 }
 0xe7e   :  { %v2113_v27 = vpop.xlane.xlu0 %2112  ;;  %v2122_v23 = vmul.f32 %v7060_v24, %v7046_v13  ;;  %v7062_v2 = vpop.eup %7061 }
 0xe7f   :  { %2134 = vxpose.xlu0.b32.cont [2/8] (short) (narrow) %v2120_v48, 8  ;;  %7067 = vrcp.f32 %v2113_v27  ;;  %v2124_v20 = vmul.f32 %v7062_v2, %v7044_v19 }
 0xe82   :  { %v2116_v26 = vpop.xlane.xlu1 %2115 }
 0xe83   :  { %2135 = vxpose.xlu0.b32.cont [3/8] (short) (narrow) %v2122_v23, 8  ;;  %7069 = vrcp.f32 %v2116_v26 }
 0xe85   :  { %v7064_v45 = vpop.eup %7063 }
 0xe86   :  { %v2126_v5 = vmul.f32 %v7064_v45, %v7050_v3  ;;  %v7066_v33 = vpop.eup %7065 }
 0xe87   :  { %2136 = vxpose.xlu0.b32.cont [4/8] (short) (narrow) %v2124_v20, 8  ;;  %v2128_v8 = vmul.f32 %v7066_v33, %v7048_v22 }
 0xe89   :  { %v7068_v17 = vpop.eup %7067 }
 0xe8a   :  { %v2130_v12 = vmul.f32 %v7068_v17, %v7052_v16 }
 0xe8b   :  { %2137 = vxpose.xlu0.b32.cont [5/8] (short) (narrow) %v2126_v5, 8 }
 0xe8d   :  { %v7070_v31 = vpop.eup %7069 }
 0xe8e   :  { %v2132_v43 = vmul.f32 %v7070_v31, %v7054_v36 }
 0xe8f   :  { %2138 = vxpose.xlu0.b32.cont [6/8] (short) (narrow) %v2128_v8, 8 }
 0xe93   :  { %2139 = vxpose.xlu0.b32.cont [7/8] (short) (narrow) %v2130_v12, 8 }
 0xe97   :  { %2140 = vxpose.xlu0.b32.end [8/8] (short) (narrow) %v2132_v43, 8 }
 0xefb   :  { %v2149_v13 = vpop.trf.xlu0 }
 0xefc   :  { %6305 = vmatmul.mubr.msk.f32.vlgmr.msra.gmra.mrb[98].mxu1 %vm1548_vm3, %v2149_v13 }
 0xefd   :  { %6309 = vmatprep.mubr.msk.f32.mxu1 %vm391_vm0, %v7863_v14 }
 0xfcf   :  { %v2234_v19 = vpop.f32.mrb[98].mxu1 }
 0xfd0   :  { %2240 = vperm.xlu1 %6893, %v2234_v19   ;;  %v6306_v39 = vpop.f32.mrb[99].mxu1 }
0x104f   :  { %v2241_v3 = vpop.permute.xlu1 %2240 }
0x1050   :  { %7071 = vrcp.f32 %v2241_v3 }
0x105a   :  { %v7072_v44 = vpop.eup %7071 }
0x105b   :  { %v2244_v22 = vmul.f32 %v7072_v44, %v2234_v19 }
0x105d   :  { %6307 = vmatprep.subr.msk.mxu1 %vm391_vm0, %v2244_v22 }
0x105e   :  { %6308 = vmatpush3.xpose.msk.msra.mxu1 %vm391_vm0, %v2244_v22 }
0x105f   :  { %6728 = vmatprep.subr.bf16.mxu1 %v7479_v51 }
0x1061   :  { %6310 = vmatmul.mubr.msk.f32.vlgmr.msra.gmra.mrb[100].mxu1 %vm391_vm0, %v7874_v30 }
0x1062   :  { %6312 = vmatprep.mubr.msk.f32.mxu1 %vm391_vm0, %v7877_v34  ;;  %6730 = vmatpush3.bf16.msra.mxu1 %v7879_v35 }
0x1063   :  { %6731 = vmatprep.subr.bf16.mxu1 %v7479_v51 }
0x1065   :  { %6313 = vmatmul.mubr.msk.f32.gmra.mrb[102].mxu1 %vm391_vm0, %v7887_v41 }
0x1066   :  { %6315 = vmatprep.mubr.msk.f32.mxu1 %vm391_vm0, %v7889_v42  ;;  %6733 = vmatpush3.bf16.msra.mxu1 %v7872_v28 }
0x1067   :  { %6734 = vmatprep.subr.bf16.mxu1 %v7479_v51 }
0x1069   :  { %6316 = vmatmul.mubr.msk.f32.gmra.mrb[104].mxu1 %vm391_vm0, %v7905_v0 }
0x106a   :  { %6318 = vmatprep.mubr.msk.f32.mxu1 %vm391_vm0, %v7907_v1  ;;  %6736 = vmatpush3.bf16.msra.mxu1 %v7900_v49 }
0x106b   :  { %6737 = vmatprep.subr.bf16.mxu1 %v7479_v51 }
0x106d   :  { %6319 = vmatmul.mubr.msk.f32.gmra.mrb[106].mxu1 %vm391_vm0, %v7922_v7 }
0x106e   :  { %6739 = vmatpush3.bf16.msra.mxu1 %v7917_v6  ;;  %6370 = vmatprep.mubr.msk.f32.mxu1 %vm7480_vm2, %v7481_v25 }
0x1134   :  { %v6311_v16 = vpop.f32.mrb[100].mxu1 }
0x1135   :  { %v2314_v36 = vpop.f32.mrb[101].mxu1  ;;  %v2356_v46 = vsel %vm1427_vm1, %v6311_v16, -inf }
0x1136   :  { %2357 = vmax.xlane.f32.xlu1 %v2356_v46  ;;  %v2353_v24 = vsel %vm1427_vm1, %v2314_v36, -inf }
0x1138   :  { %v6314_v47 = vpop.f32.mrb[102].mxu1 }
0x1139   :  { %v2324_v48 = vpop.f32.mrb[103].mxu1  ;;  %v2362_v2 = vsel %vm1427_vm1, %v6314_v47, -inf }
0x113a   :  { %2354 = vmax.xlane.f32.xlu1 %v2353_v24  ;;  %v2359_v45 = vsel %vm1427_vm1, %v2324_v48, -inf }
0x113c   :  { %v6317_v27 = vpop.f32.mrb[104].mxu1 }
0x113d   :  { %v2334_v23 = vpop.f32.mrb[105].mxu1  ;;  %v2368_v8 = vsel %vm1427_vm1, %v6317_v27, -inf }
0x113e   :  { %2363 = vmax.xlane.f32.xlu1 %v2362_v2  ;;  %v2365_v33 = vsel %vm1427_vm1, %v2334_v23, -inf }
0x1140   :  { %v6320_v26 = vpop.f32.mrb[106].mxu1 }
0x1141   :  { %v2344_v20 = vpop.f32.mrb[107].mxu1  ;;  %v2374_v17 = vsel %vm1427_vm1, %v6320_v26, -inf }
0x1142   :  { %2360 = vmax.xlane.f32.xlu1 %v2359_v45  ;;  %v2371_v5 = vsel %vm1427_vm1, %v2344_v20, -inf }
0x1143   :  { %2372 = vmax.xlane.f32.xlu0 %v2371_v5 }
0x1146   :  { %2366 = vmax.xlane.f32.xlu1 %v2365_v33 }
0x114a   :  { %2369 = vmax.xlane.f32.xlu1 %v2368_v8 }
0x114e   :  { %2375 = vmax.xlane.f32.xlu1 %v2374_v17 }
0x11c3   :  { %v2358_v12 = vpop.xlane.xlu1 %2357 }
0x11c4   :  { %v2378_v31 = vsub.f32 %v6311_v16, %v2358_v12 }
0x11c6   :  { %v2387_v43 = vmul.f32 1.442695, %v2378_v31 }
0x11c7   :  { %v2355_v13 = vpop.xlane.xlu1 %2354 }
0x11c8   :  { %7073 = vpow2.f32 %v2387_v43  ;;  %v2377_v19 = vsub.f32 %v2314_v36, %v2355_v13 }
0x11ca   :  { %v2385_v39 = vmul.f32 1.442695, %v2377_v19 }
0x11cb   :  { %v2364_v3 = vpop.xlane.xlu1 %2363 }
0x11cc   :  { %7075 = vpow2.f32 %v2385_v39  ;;  %v2380_v44 = vsub.f32 %v6314_v47, %v2364_v3 }
0x11ce   :  { %v2391_v22 = vmul.f32 1.442695, %v2380_v44 }
0x11cf   :  { %v2361_v46 = vpop.xlane.xlu1 %2360 }
0x11d0   :  { %7077 = vpow2.f32 %v2391_v22  ;;  %v2379_v24 = vsub.f32 %v2324_v48, %v2361_v46  ;;  %v2373_v17 = vpop.xlane.xlu0 %2372 }
0x11d1   :  { %v2383_v43 = vsub.f32 %v2344_v20, %v2373_v17 }
0x11d2   :  { %v7074_v2 = vpop.eup %7073  ;;  %v2389_v45 = vmul.f32 1.442695, %v2379_v24 }
0x11d3   :  { %v2367_v5 = vpop.xlane.xlu1 %2366  ;;  %v2404_v33 = vsel %vm1427_vm1, %v7074_v2, 0.0  ;;  %v2397_v44 = vmul.f32 1.442695, %v2383_v43 }
0x11d4   :  { %7079 = vpow2.f32 %v2389_v45  ;;  %2405 = vadd.xlane.f32.xlu1 %v2404_v33  ;;  %v2381_v8 = vsub.f32 %v2334_v23, %v2367_v5 }
0x11d6   :  { %v7076_v16 = vpop.eup %7075  ;;  %v2393_v13 = vmul.f32 1.442695, %v2381_v8 }
0x11d7   :  { %v2370_v12 = vpop.xlane.xlu1 %2369  ;;  %v2401_v36 = vsel %vm1427_vm1, %v7076_v16, 0.0 }
0x11d8   :  { %v2382_v31 = vsub.f32 %v6317_v27, %v2370_v12  ;;  %2402 = vadd.xlane.f32.xlu1 %v2401_v36 }
0x11da   :  { %v7078_v47 = vpop.eup %7077  ;;  %v2395_v19 = vmul.f32 1.442695, %v2382_v31 }
0x11db   :  { %v2376_v48 = vpop.xlane.xlu1 %2375  ;;  %v2410_v39 = vsel %vm1427_vm1, %v7078_v47, 0.0 }
0x11dc   :  { %7081 = vpow2.f32 %v2395_v19  ;;  %2411 = vadd.xlane.f32.xlu1 %v2410_v39  ;;  %v2384_v22 = vsub.f32 %v6320_v26, %v2376_v48 }
0x11dd   :  { %7083 = vpow2.f32 %v2393_v13 }
0x11de   :  { %v7080_v3 = vpop.eup %7079  ;;  %7085 = vpow2.f32 %v2397_v44  ;;  %v2399_v46 = vmul.f32 1.442695, %v2384_v22 }
0x11df   :  { %v2407_v23 = vsel %vm1427_vm1, %v7080_v3, 0.0 }
0x11e0   :  { %2408 = vadd.xlane.f32.xlu1 %v2407_v23  ;;  %7087 = vpow2.f32 %v2399_v46 }
0x11e6   :  { %v7082_v27 = vpop.eup %7081 }
0x11e7   :  { %v2416_v20 = vsel %vm1427_vm1, %v7082_v27, 0.0  ;;  %v7084_v24 = vpop.eup %7083 }
0x11e8   :  { %2417 = vadd.xlane.f32.xlu1 %v2416_v20  ;;  %v2413_v45 = vsel %vm1427_vm1, %v7084_v24, 0.0  ;;  %v7086_v5 = vpop.eup %7085 }
0x11e9   :  { %v2419_v33 = vsel %vm1427_vm1, %v7086_v5, 0.0 }
0x11ea   :  { %v7088_v8 = vpop.eup %7087 }
0x11eb   :  { %v2422_v26 = vsel %vm1427_vm1, %v7088_v8, 0.0 }
0x11ec   :  { %2414 = vadd.xlane.f32.xlu1 %v2413_v45 }
0x11f0   :  { %2420 = vadd.xlane.f32.xlu1 %v2419_v33 }
0x11f4   :  { %2423 = vadd.xlane.f32.xlu1 %v2422_v26 }
0x1261   :  { %v2406_v17 = vpop.xlane.xlu1 %2405 }
0x1265   :  { %v2403_v12 = vpop.xlane.xlu1 %2402 }
0x1266   :  { %7089 = vrcp.f32 %v2403_v12 }
0x1267   :  { %7091 = vrcp.f32 %v2406_v17 }
0x1269   :  { %v2412_v36 = vpop.xlane.xlu1 %2411 }
0x126d   :  { %v2409_v31 = vpop.xlane.xlu1 %2408 }
0x126e   :  { %7093 = vrcp.f32 %v2409_v31 }
0x126f   :  { %7095 = vrcp.f32 %v2412_v36 }
0x1270   :  { %v7090_v43 = vpop.eup %7089 }
0x1271   :  { %v2426_v13 = vmul.f32 %v7090_v43, %v7076_v16  ;;  %v7092_v19 = vpop.eup %7091 }
0x1272   :  { %v2428_v39 = vmul.f32 %v7092_v19, %v7074_v2 }
0x1273   :  { %2441 = vxpose.xlu1.b32.start [1/8] (short) (narrow) %v2426_v13, 8 }
0x1275   :  { %v2418_v48 = vpop.xlane.xlu1 %2417 }
0x1277   :  { %2442 = vxpose.xlu1.b32.cont [2/8] (short) (narrow) %v2428_v39, 8 }
0x1278   :  { %v7094_v44 = vpop.eup %7093 }
0x1279   :  { %v2415_v22 = vpop.xlane.xlu1 %2414  ;;  %v2430_v23 = vmul.f32 %v7094_v44, %v7080_v3  ;;  %v7096_v46 = vpop.eup %7095 }
0x127a   :  { %7097 = vrcp.f32 %v2415_v22  ;;  %v2432_v45 = vmul.f32 %v7096_v46, %v7078_v47 }
0x127b   :  { %2443 = vxpose.xlu1.b32.cont [3/8] (short) (narrow) %v2430_v23, 8  ;;  %7099 = vrcp.f32 %v2418_v48 }
0x127d   :  { %v2421_v20 = vpop.xlane.xlu1 %2420 }
0x127e   :  { %7101 = vrcp.f32 %v2421_v20 }
0x127f   :  { %2444 = vxpose.xlu1.b32.cont [4/8] (short) (narrow) %v2432_v45, 8 }
0x1281   :  { %v2424_v33 = vpop.xlane.xlu1 %2423 }
0x1282   :  { %7103 = vrcp.f32 %v2424_v33 }
0x1284   :  { %v7098_v26 = vpop.eup %7097 }
0x1285   :  { %v2434_v16 = vmul.f32 %v7098_v26, %v7084_v24  ;;  %v7100_v17 = vpop.eup %7099 }
0x1286   :  { %v2436_v12 = vmul.f32 %v7100_v17, %v7082_v27 }
0x1287   :  { %2445 = vxpose.xlu1.b32.cont [5/8] (short) (narrow) %v2434_v16, 8 }
0x1288   :  { %v7102_v2 = vpop.eup %7101 }
0x1289   :  { %v2438_v36 = vmul.f32 %v7102_v2, %v7086_v5 }
0x128b   :  { %2446 = vxpose.xlu1.b32.cont [6/8] (short) (narrow) %v2436_v12, 8 }
0x128c   :  { %v7104_v31 = vpop.eup %7103 }
0x128d   :  { %v2440_v3 = vmul.f32 %v7104_v31, %v7088_v8 }
0x128f   :  { %2447 = vxpose.xlu1.b32.cont [7/8] (short) (narrow) %v2438_v36, 8 }
0x1293   :  { %2448 = vxpose.xlu1.b32.end [8/8] (short) (narrow) %v2440_v3, 8 }
0x12f7   :  { %v2457_v43 = vpop.trf.xlu1 }
0x12f8   :  { %6338 = vmatmul.mubr.msk.f32.vlgmr.msra.gmra.mrb[90].mxu0 %vm1548_vm3, %v2457_v43 }
0x12f9   :  { %6342 = vmatprep.mubr.msk.f32.mxu0 %vm391_vm0, %v7863_v14 }
0x13cb   :  { %v2542_v47 = vpop.f32.mrb[90].mxu0 }
0x13cc   :  { %2548 = vperm.xlu0 %6894, %v2542_v47   ;;  %v6339_v13 = vpop.f32.mrb[91].mxu0 }
0x144b   :  { %v2549_v24 = vpop.permute.xlu0 %2548 }
0x144c   :  { %7105 = vrcp.f32 %v2549_v24 }
0x1456   :  { %v7106_v19 = vpop.eup %7105 }
0x1457   :  { %v2552_v27 = vmul.f32 %v7106_v19, %v2542_v47 }
0x1459   :  { %6340 = vmatprep.subr.msk.mxu0 %vm391_vm0, %v2552_v27 }
0x145a   :  { %6341 = vmatpush3.xpose.msk.msra.mxu0 %vm391_vm0, %v2552_v27 }
0x145b   :  { %6740 = vmatprep.subr.bf16.mxu0 %v7479_v51 }
0x145d   :  { %6343 = vmatmul.mubr.msk.f32.vlgmr.msra.gmra.mrb[92].mxu0 %vm391_vm0, %v7874_v30 }
0x145e   :  { %6345 = vmatprep.mubr.msk.f32.mxu0 %vm391_vm0, %v7877_v34  ;;  %6742 = vmatpush3.bf16.msra.mxu0 %v7879_v35 }
0x145f   :  { %6743 = vmatprep.subr.bf16.mxu0 %v7479_v51 }
0x1461   :  { %6346 = vmatmul.mubr.msk.f32.gmra.mrb[94].mxu0 %vm391_vm0, %v7887_v41 }
0x1462   :  { %6348 = vmatprep.mubr.msk.f32.mxu0 %vm391_vm0, %v7889_v42  ;;  %6745 = vmatpush3.bf16.msra.mxu0 %v7872_v28 }
0x1463   :  { %6746 = vmatprep.subr.bf16.mxu0 %v7479_v51 }
0x1465   :  { %6349 = vmatmul.mubr.msk.f32.gmra.mrb[96].mxu0 %vm391_vm0, %v7905_v0 }
0x1466   :  { %6351 = vmatprep.mubr.msk.f32.mxu0 %vm391_vm0, %v7907_v1  ;;  %6748 = vmatpush3.bf16.msra.mxu0 %v7900_v49 }
0x1467   :  { %6749 = vmatprep.subr.bf16.mxu0 %v7479_v51 }
0x1469   :  { %6352 = vmatmul.mubr.msk.f32.gmra.mrb[98].mxu0 %vm391_vm0, %v7922_v7 }
0x146a   :  { %6751 = vmatpush3.bf16.msra.mxu0 %v7917_v6  ;;  %6403 = vmatprep.mubr.msk.f32.mxu0 %vm7480_vm2, %v7481_v25 }
0x1530   :  { %v6344_v5 = vpop.f32.mrb[92].mxu0 }
0x1531   :  { %v2622_v8 = vpop.f32.mrb[93].mxu0  ;;  %v2664_v48 = vsel %vm1427_vm1, %v6344_v5, -inf }
0x1532   :  { %2665 = vmax.xlane.f32.xlu0 %v2664_v48  ;;  %v2661_v22 = vsel %vm1427_vm1, %v2622_v8, -inf }
0x1534   :  { %v6347_v39 = vpop.f32.mrb[94].mxu0 }
0x1535   :  { %v2632_v44 = vpop.f32.mrb[95].mxu0  ;;  %v2670_v20 = vsel %vm1427_vm1, %v6347_v39, -inf }
0x1536   :  { %2662 = vmax.xlane.f32.xlu0 %v2661_v22  ;;  %v2667_v26 = vsel %vm1427_vm1, %v2632_v44, -inf }
0x1538   :  { %v6350_v23 = vpop.f32.mrb[96].mxu0 }
0x1539   :  { %v2642_v46 = vpop.f32.mrb[97].mxu0  ;;  %v2676_v12 = vsel %vm1427_vm1, %v6350_v23, -inf }
0x153a   :  { %2671 = vmax.xlane.f32.xlu0 %v2670_v20  ;;  %v2673_v17 = vsel %vm1427_vm1, %v2642_v46, -inf }
0x153c   :  { %v6353_v45 = vpop.f32.mrb[98].mxu0 }
0x153d   :  { %v2652_v33 = vpop.f32.mrb[99].mxu0  ;;  %v2682_v2 = vsel %vm1427_vm1, %v6353_v45, -inf }
0x153e   :  { %2668 = vmax.xlane.f32.xlu0 %v2667_v26  ;;  %v2679_v16 = vsel %vm1427_vm1, %v2652_v33, -inf }
0x153f   :  { %2680 = vmax.xlane.f32.xlu1 %v2679_v16 }
0x1542   :  { %2674 = vmax.xlane.f32.xlu0 %v2673_v17 }
0x1546   :  { %2677 = vmax.xlane.f32.xlu0 %v2676_v12 }
0x154a   :  { %2683 = vmax.xlane.f32.xlu0 %v2682_v2 }
0x15bf   :  { %v2666_v36 = vpop.xlane.xlu0 %2665 }
0x15c0   :  { %v2686_v31 = vsub.f32 %v6344_v5, %v2666_v36 }
0x15c2   :  { %v2695_v3 = vmul.f32 1.442695, %v2686_v31 }
0x15c3   :  { %v2663_v43 = vpop.xlane.xlu0 %2662 }
0x15c4   :  { %7107 = vpow2.f32 %v2695_v3  ;;  %v2685_v47 = vsub.f32 %v2622_v8, %v2663_v43 }
0x15c6   :  { %v2693_v13 = vmul.f32 1.442695, %v2685_v47 }
0x15c7   :  { %v2672_v24 = vpop.xlane.xlu0 %2671 }
0x15c8   :  { %7109 = vpow2.f32 %v2693_v13  ;;  %v2688_v19 = vsub.f32 %v6347_v39, %v2672_v24 }
0x15ca   :  { %v2699_v27 = vmul.f32 1.442695, %v2688_v19 }
0x15cb   :  { %v2669_v48 = vpop.xlane.xlu0 %2668 }
0x15cc   :  { %7111 = vpow2.f32 %v2699_v27  ;;  %v2687_v22 = vsub.f32 %v2632_v44, %v2669_v48  ;;  %v2681_v2 = vpop.xlane.xlu1 %2680 }
0x15cd   :  { %v2691_v3 = vsub.f32 %v2652_v33, %v2681_v2 }
0x15ce   :  { %v7108_v20 = vpop.eup %7107  ;;  %v2697_v26 = vmul.f32 1.442695, %v2687_v22 }
0x15cf   :  { %v2675_v16 = vpop.xlane.xlu0 %2674  ;;  %v2712_v17 = vsel %vm1427_vm1, %v7108_v20, 0.0  ;;  %v2705_v19 = vmul.f32 1.442695, %v2691_v3 }
0x15d0   :  { %7113 = vpow2.f32 %v2697_v26  ;;  %2713 = vadd.xlane.f32.xlu0 %v2712_v17  ;;  %v2689_v12 = vsub.f32 %v2642_v46, %v2675_v16 }
0x15d2   :  { %v7110_v5 = vpop.eup %7109  ;;  %v2701_v43 = vmul.f32 1.442695, %v2689_v12 }
0x15d3   :  { %v2678_v36 = vpop.xlane.xlu0 %2677  ;;  %v2709_v8 = vsel %vm1427_vm1, %v7110_v5, 0.0 }
0x15d4   :  { %v2690_v31 = vsub.f32 %v6350_v23, %v2678_v36  ;;  %2710 = vadd.xlane.f32.xlu0 %v2709_v8 }
0x15d6   :  { %v7112_v39 = vpop.eup %7111  ;;  %v2703_v47 = vmul.f32 1.442695, %v2690_v31 }
0x15d7   :  { %v2684_v44 = vpop.xlane.xlu0 %2683  ;;  %v2718_v13 = vsel %vm1427_vm1, %v7112_v39, 0.0 }
0x15d8   :  { %7115 = vpow2.f32 %v2703_v47  ;;  %2719 = vadd.xlane.f32.xlu0 %v2718_v13  ;;  %v2692_v27 = vsub.f32 %v6353_v45, %v2684_v44 }
0x15d9   :  { %7117 = vpow2.f32 %v2701_v43 }
0x15da   :  { %v7114_v24 = vpop.eup %7113  ;;  %7119 = vpow2.f32 %v2705_v19  ;;  %v2707_v48 = vmul.f32 1.442695, %v2692_v27 }
0x15db   :  { %v2715_v46 = vsel %vm1427_vm1, %v7114_v24, 0.0 }
0x15dc   :  { %2716 = vadd.xlane.f32.xlu0 %v2715_v46  ;;  %7121 = vpow2.f32 %v2707_v48 }
0x15e2   :  { %v7116_v23 = vpop.eup %7115 }
0x15e3   :  { %v2724_v33 = vsel %vm1427_vm1, %v7116_v23, 0.0  ;;  %v7118_v22 = vpop.eup %7117 }
0x15e4   :  { %2725 = vadd.xlane.f32.xlu0 %v2724_v33  ;;  %v2721_v26 = vsel %vm1427_vm1, %v7118_v22, 0.0  ;;  %v7120_v16 = vpop.eup %7119 }
0x15e5   :  { %v2727_v17 = vsel %vm1427_vm1, %v7120_v16, 0.0 }
0x15e6   :  { %v7122_v12 = vpop.eup %7121 }
0x15e7   :  { %v2730_v45 = vsel %vm1427_vm1, %v7122_v12, 0.0 }
0x15e8   :  { %2722 = vadd.xlane.f32.xlu0 %v2721_v26 }
0x15ec   :  { %2728 = vadd.xlane.f32.xlu0 %v2727_v17 }
0x15f0   :  { %2731 = vadd.xlane.f32.xlu0 %v2730_v45 }
0x165d   :  { %v2714_v2 = vpop.xlane.xlu0 %2713 }
0x1661   :  { %v2711_v36 = vpop.xlane.xlu0 %2710 }
0x1662   :  { %7123 = vrcp.f32 %v2711_v36 }
0x1663   :  { %7125 = vrcp.f32 %v2714_v2 }
0x1665   :  { %v2720_v8 = vpop.xlane.xlu0 %2719 }
0x1669   :  { %v2717_v31 = vpop.xlane.xlu0 %2716 }
0x166a   :  { %7127 = vrcp.f32 %v2717_v31 }
0x166b   :  { %7129 = vrcp.f32 %v2720_v8 }
0x166c   :  { %v7124_v3 = vpop.eup %7123 }
0x166d   :  { %v2734_v43 = vmul.f32 %v7124_v3, %v7110_v5  ;;  %v7126_v47 = vpop.eup %7125 }
0x166e   :  { %v2736_v13 = vmul.f32 %v7126_v47, %v7108_v20 }
0x166f   :  { %2749 = vxpose.xlu0.b32.start [1/8] (short) (narrow) %v2734_v43, 8 }
0x1671   :  { %v2726_v44 = vpop.xlane.xlu0 %2725 }
0x1673   :  { %2750 = vxpose.xlu0.b32.cont [2/8] (short) (narrow) %v2736_v13, 8 }
0x1674   :  { %v7128_v19 = vpop.eup %7127 }
0x1675   :  { %v2723_v27 = vpop.xlane.xlu0 %2722  ;;  %v2738_v46 = vmul.f32 %v7128_v19, %v7114_v24  ;;  %v7130_v48 = vpop.eup %7129 }
0x1676   :  { %7131 = vrcp.f32 %v2723_v27  ;;  %v2740_v26 = vmul.f32 %v7130_v48, %v7112_v39 }
0x1677   :  { %2751 = vxpose.xlu0.b32.cont [3/8] (short) (narrow) %v2738_v46, 8  ;;  %7133 = vrcp.f32 %v2726_v44 }
0x1679   :  { %v2729_v33 = vpop.xlane.xlu0 %2728 }
0x167a   :  { %7135 = vrcp.f32 %v2729_v33 }
0x167b   :  { %2752 = vxpose.xlu0.b32.cont [4/8] (short) (narrow) %v2740_v26, 8 }
0x167d   :  { %v2732_v17 = vpop.xlane.xlu0 %2731 }
0x167e   :  { %7137 = vrcp.f32 %v2732_v17 }
0x1680   :  { %v7132_v45 = vpop.eup %7131 }
0x1681   :  { %v2742_v5 = vmul.f32 %v7132_v45, %v7118_v22  ;;  %v7134_v2 = vpop.eup %7133 }
0x1682   :  { %v2744_v36 = vmul.f32 %v7134_v2, %v7116_v23 }
0x1683   :  { %2753 = vxpose.xlu0.b32.cont [5/8] (short) (narrow) %v2742_v5, 8 }
0x1684   :  { %v7136_v20 = vpop.eup %7135 }
0x1685   :  { %v2746_v8 = vmul.f32 %v7136_v20, %v7120_v16 }
0x1687   :  { %2754 = vxpose.xlu0.b32.cont [6/8] (short) (narrow) %v2744_v36, 8 }
0x1688   :  { %v7138_v31 = vpop.eup %7137 }
0x1689   :  { %v2748_v24 = vmul.f32 %v7138_v31, %v7122_v12 }
0x168b   :  { %2755 = vxpose.xlu0.b32.cont [7/8] (short) (narrow) %v2746_v8, 8 }
0x168f   :  { %2756 = vxpose.xlu0.b32.end [8/8] (short) (narrow) %v2748_v24, 8 }
0x16f3   :  { %v2765_v3 = vpop.trf.xlu0 }
0x16f4   :  { %6371 = vmatmul.mubr.msk.f32.vlgmr.msra.gmra.mrb[108].mxu1 %vm1548_vm3, %v2765_v3 }
0x16f5   :  { %6375 = vmatprep.mubr.msk.f32.mxu1 %vm391_vm0, %v7863_v14 }
0x17c7   :  { %v2850_v39 = vpop.f32.mrb[108].mxu1 }
0x17c8   :  { %2856 = vperm.xlu1 %6893, %v2850_v39   ;;  %v6372_v43 = vpop.f32.mrb[109].mxu1 }
0x1847   :  { %v2857_v22 = vpop.permute.xlu1 %2856 }
0x1848   :  { %7139 = vrcp.f32 %v2857_v22 }
0x1852   :  { %v7140_v47 = vpop.eup %7139 }
0x1853   :  { %v2860_v23 = vmul.f32 %v7140_v47, %v2850_v39 }
0x1855   :  { %6373 = vmatprep.subr.msk.mxu1 %vm391_vm0, %v2860_v23 }
0x1856   :  { %6374 = vmatpush3.xpose.msk.msra.mxu1 %vm391_vm0, %v2860_v23 }
0x1857   :  { %6752 = vmatprep.subr.bf16.mxu1 %v7479_v51 }
0x1859   :  { %6376 = vmatmul.mubr.msk.f32.vlgmr.msra.gmra.mrb[110].mxu1 %vm391_vm0, %v7874_v30 }
0x185a   :  { %6378 = vmatprep.mubr.msk.f32.mxu1 %vm391_vm0, %v7877_v34  ;;  %6754 = vmatpush3.bf16.msra.mxu1 %v7879_v35 }
0x185b   :  { %6755 = vmatprep.subr.bf16.mxu1 %v7479_v51 }
0x185d   :  { %6379 = vmatmul.mubr.msk.f32.gmra.mrb[112].mxu1 %vm391_vm0, %v7887_v41 }
0x185e   :  { %6381 = vmatprep.mubr.msk.f32.mxu1 %vm391_vm0, %v7889_v42  ;;  %6757 = vmatpush3.bf16.msra.mxu1 %v7872_v28 }
0x185f   :  { %6758 = vmatprep.subr.bf16.mxu1 %v7479_v51 }
0x1861   :  { %6382 = vmatmul.mubr.msk.f32.gmra.mrb[114].mxu1 %vm391_vm0, %v7905_v0 }
0x1862   :  { %6384 = vmatprep.mubr.msk.f32.mxu1 %vm391_vm0, %v7907_v1  ;;  %6760 = vmatpush3.bf16.msra.mxu1 %v7900_v49 }
0x1863   :  { %6761 = vmatprep.subr.bf16.mxu1 %v7479_v51 }
0x1865   :  { %6385 = vmatmul.mubr.msk.f32.gmra.mrb[116].mxu1 %vm391_vm0, %v7922_v7 }
0x1866   :  { %6763 = vmatpush3.bf16.msra.mxu1 %v7917_v6  ;;  %6436 = vmatprep.mubr.msk.f32.mxu1 %vm7480_vm2, %v7481_v25 }
0x192c   :  { %v6377_v16 = vpop.f32.mrb[110].mxu1 }
0x192d   :  { %v2930_v12 = vpop.f32.mrb[111].mxu1  ;;  %v2972_v44 = vsel %vm1427_vm1, %v6377_v16, -inf }
0x192e   :  { %2973 = vmax.xlane.f32.xlu1 %v2972_v44  ;;  %v2969_v27 = vsel %vm1427_vm1, %v2930_v12, -inf }
0x1930   :  { %v6380_v13 = vpop.f32.mrb[112].mxu1 }
0x1931   :  { %v2940_v19 = vpop.f32.mrb[113].mxu1  ;;  %v2978_v33 = vsel %vm1427_vm1, %v6380_v13, -inf }
0x1932   :  { %2970 = vmax.xlane.f32.xlu1 %v2969_v27  ;;  %v2975_v45 = vsel %vm1427_vm1, %v2940_v19, -inf }
0x1934   :  { %v6383_v46 = vpop.f32.mrb[114].mxu1 }
0x1935   :  { %v2950_v48 = vpop.f32.mrb[115].mxu1  ;;  %v2984_v36 = vsel %vm1427_vm1, %v6383_v46, -inf }
0x1936   :  { %2979 = vmax.xlane.f32.xlu1 %v2978_v33  ;;  %v2981_v2 = vsel %vm1427_vm1, %v2950_v48, -inf }
0x1938   :  { %v6386_v26 = vpop.f32.mrb[116].mxu1 }
0x1939   :  { %v2960_v17 = vpop.f32.mrb[117].mxu1  ;;  %v2990_v20 = vsel %vm1427_vm1, %v6386_v26, -inf }
0x193a   :  { %2976 = vmax.xlane.f32.xlu1 %v2975_v45  ;;  %v2987_v5 = vsel %vm1427_vm1, %v2960_v17, -inf }
0x193b   :  { %2988 = vmax.xlane.f32.xlu0 %v2987_v5 }
0x193e   :  { %2982 = vmax.xlane.f32.xlu1 %v2981_v2 }
0x1942   :  { %2985 = vmax.xlane.f32.xlu1 %v2984_v36 }
0x1946   :  { %2991 = vmax.xlane.f32.xlu1 %v2990_v20 }
0x19bb   :  { %v2974_v8 = vpop.xlane.xlu1 %2973 }
0x19bc   :  { %v2994_v31 = vsub.f32 %v6377_v16, %v2974_v8 }
0x19be   :  { %v3003_v24 = vmul.f32 1.442695, %v2994_v31 }
0x19bf   :  { %v2971_v3 = vpop.xlane.xlu1 %2970 }
0x19c0   :  { %7141 = vpow2.f32 %v3003_v24  ;;  %v2993_v39 = vsub.f32 %v2930_v12, %v2971_v3 }
0x19c2   :  { %v3001_v43 = vmul.f32 1.442695, %v2993_v39 }
0x19c3   :  { %v2980_v22 = vpop.xlane.xlu1 %2979 }
0x19c4   :  { %7143 = vpow2.f32 %v3001_v43  ;;  %v2996_v47 = vsub.f32 %v6380_v13, %v2980_v22 }
0x19c6   :  { %v3007_v23 = vmul.f32 1.442695, %v2996_v47 }
0x19c7   :  { %v2977_v44 = vpop.xlane.xlu1 %2976 }
0x19c8   :  { %7145 = vpow2.f32 %v3007_v23  ;;  %v2995_v27 = vsub.f32 %v2940_v19, %v2977_v44  ;;  %v2989_v20 = vpop.xlane.xlu0 %2988 }
0x19c9   :  { %v2999_v24 = vsub.f32 %v2960_v17, %v2989_v20 }
0x19ca   :  { %v7142_v33 = vpop.eup %7141  ;;  %v3005_v45 = vmul.f32 1.442695, %v2995_v27 }
0x19cb   :  { %v2983_v5 = vpop.xlane.xlu1 %2982  ;;  %v3020_v2 = vsel %vm1427_vm1, %v7142_v33, 0.0  ;;  %v3013_v47 = vmul.f32 1.442695, %v2999_v24 }
0x19cc   :  { %7147 = vpow2.f32 %v3005_v45  ;;  %3021 = vadd.xlane.f32.xlu1 %v3020_v2  ;;  %v2997_v36 = vsub.f32 %v2950_v48, %v2983_v5 }
0x19ce   :  { %v7144_v16 = vpop.eup %7143  ;;  %v3009_v3 = vmul.f32 1.442695, %v2997_v36 }
0x19cf   :  { %v2986_v8 = vpop.xlane.xlu1 %2985  ;;  %v3017_v12 = vsel %vm1427_vm1, %v7144_v16, 0.0 }
0x19d0   :  { %v2998_v31 = vsub.f32 %v6383_v46, %v2986_v8  ;;  %3018 = vadd.xlane.f32.xlu1 %v3017_v12 }
0x19d2   :  { %v7146_v13 = vpop.eup %7145  ;;  %v3011_v39 = vmul.f32 1.442695, %v2998_v31 }
0x19d3   :  { %v2992_v19 = vpop.xlane.xlu1 %2991  ;;  %v3026_v43 = vsel %vm1427_vm1, %v7146_v13, 0.0 }
0x19d4   :  { %7149 = vpow2.f32 %v3011_v39  ;;  %3027 = vadd.xlane.f32.xlu1 %v3026_v43  ;;  %v3000_v23 = vsub.f32 %v6386_v26, %v2992_v19 }
0x19d5   :  { %7151 = vpow2.f32 %v3009_v3 }
0x19d6   :  { %v7148_v22 = vpop.eup %7147  ;;  %7153 = vpow2.f32 %v3013_v47  ;;  %v3015_v44 = vmul.f32 1.442695, %v3000_v23 }
0x19d7   :  { %v3023_v48 = vsel %vm1427_vm1, %v7148_v22, 0.0 }
0x19d8   :  { %3024 = vadd.xlane.f32.xlu1 %v3023_v48  ;;  %7155 = vpow2.f32 %v3015_v44 }
0x19de   :  { %v7150_v46 = vpop.eup %7149 }
0x19df   :  { %v3032_v17 = vsel %vm1427_vm1, %v7150_v46, 0.0  ;;  %v7152_v27 = vpop.eup %7151 }
0x19e0   :  { %3033 = vadd.xlane.f32.xlu1 %v3032_v17  ;;  %v3029_v45 = vsel %vm1427_vm1, %v7152_v27, 0.0  ;;  %v7154_v5 = vpop.eup %7153 }
0x19e1   :  { %v3035_v2 = vsel %vm1427_vm1, %v7154_v5, 0.0 }
0x19e2   :  { %v7156_v36 = vpop.eup %7155 }
0x19e3   :  { %v3038_v26 = vsel %vm1427_vm1, %v7156_v36, 0.0 }
0x19e4   :  { %3030 = vadd.xlane.f32.xlu1 %v3029_v45 }
0x19e8   :  { %3036 = vadd.xlane.f32.xlu1 %v3035_v2 }
0x19ec   :  { %3039 = vadd.xlane.f32.xlu1 %v3038_v26 }
0x1a59   :  { %v3022_v20 = vpop.xlane.xlu1 %3021 }
0x1a5d   :  { %v3019_v8 = vpop.xlane.xlu1 %3018 }
0x1a5e   :  { %7157 = vrcp.f32 %v3019_v8 }
0x1a5f   :  { %7159 = vrcp.f32 %v3022_v20 }
0x1a61   :  { %v3028_v12 = vpop.xlane.xlu1 %3027 }
0x1a65   :  { %v3025_v31 = vpop.xlane.xlu1 %3024 }
0x1a66   :  { %7161 = vrcp.f32 %v3025_v31 }
0x1a67   :  { %7163 = vrcp.f32 %v3028_v12 }
0x1a68   :  { %v7158_v24 = vpop.eup %7157 }
0x1a69   :  { %v3042_v3 = vmul.f32 %v7158_v24, %v7144_v16  ;;  %v7160_v39 = vpop.eup %7159 }
0x1a6a   :  { %v3044_v43 = vmul.f32 %v7160_v39, %v7142_v33 }
0x1a6b   :  { %3057 = vxpose.xlu1.b32.start [1/8] (short) (narrow) %v3042_v3, 8 }
0x1a6d   :  { %v3034_v19 = vpop.xlane.xlu1 %3033 }
0x1a6f   :  { %3058 = vxpose.xlu1.b32.cont [2/8] (short) (narrow) %v3044_v43, 8 }
0x1a70   :  { %v7162_v47 = vpop.eup %7161 }
0x1a71   :  { %v3031_v23 = vpop.xlane.xlu1 %3030  ;;  %v3046_v48 = vmul.f32 %v7162_v47, %v7148_v22  ;;  %v7164_v44 = vpop.eup %7163 }
0x1a72   :  { %7165 = vrcp.f32 %v3031_v23  ;;  %v3048_v45 = vmul.f32 %v7164_v44, %v7146_v13 }
0x1a73   :  { %3059 = vxpose.xlu1.b32.cont [3/8] (short) (narrow) %v3046_v48, 8  ;;  %7167 = vrcp.f32 %v3034_v19 }
0x1a75   :  { %v3037_v17 = vpop.xlane.xlu1 %3036 }
0x1a76   :  { %7169 = vrcp.f32 %v3037_v17 }
0x1a77   :  { %3060 = vxpose.xlu1.b32.cont [4/8] (short) (narrow) %v3048_v45, 8 }
0x1a79   :  { %v3040_v2 = vpop.xlane.xlu1 %3039 }
0x1a7a   :  { %7171 = vrcp.f32 %v3040_v2 }
0x1a7c   :  { %v7166_v26 = vpop.eup %7165 }
0x1a7d   :  { %v3050_v16 = vmul.f32 %v7166_v26, %v7152_v27  ;;  %v7168_v20 = vpop.eup %7167 }
0x1a7e   :  { %v3052_v8 = vmul.f32 %v7168_v20, %v7150_v46 }
0x1a7f   :  { %3061 = vxpose.xlu1.b32.cont [5/8] (short) (narrow) %v3050_v16, 8 }
0x1a80   :  { %v7170_v33 = vpop.eup %7169 }
0x1a81   :  { %v3054_v12 = vmul.f32 %v7170_v33, %v7154_v5 }
0x1a83   :  { %3062 = vxpose.xlu1.b32.cont [6/8] (short) (narrow) %v3052_v8, 8 }
0x1a84   :  { %v7172_v31 = vpop.eup %7171 }
0x1a85   :  { %v3056_v22 = vmul.f32 %v7172_v31, %v7156_v36 }
0x1a87   :  { %3063 = vxpose.xlu1.b32.cont [7/8] (short) (narrow) %v3054_v12, 8 }
0x1a8b   :  { %3064 = vxpose.xlu1.b32.end [8/8] (short) (narrow) %v3056_v22, 8 }
0x1aef   :  { %v3073_v24 = vpop.trf.xlu1 }
0x1af0   :  { %6404 = vmatmul.mubr.msk.f32.vlgmr.msra.gmra.mrb[100].mxu0 %vm1548_vm3, %v3073_v24 }
0x1af1   :  { %6408 = vmatprep.mubr.msk.f32.mxu0 %vm391_vm0, %v7863_v14 }
0x1bc3   :  { %v3158_v13 = vpop.f32.mrb[100].mxu0 }
0x1bc4   :  { %3164 = vperm.xlu0 %6894, %v3158_v13   ;;  %v6405_v3 = vpop.f32.mrb[101].mxu0 }
0x1c43   :  { %v3165_v27 = vpop.permute.xlu0 %3164 }
0x1c44   :  { %7173 = vrcp.f32 %v3165_v27 }
0x1c4e   :  { %v7174_v39 = vpop.eup %7173 }
0x1c4f   :  { %v3168_v46 = vmul.f32 %v7174_v39, %v3158_v13 }
0x1c51   :  { %6406 = vmatprep.subr.msk.mxu0 %vm391_vm0, %v3168_v46 }
0x1c52   :  { %6407 = vmatpush3.xpose.msk.msra.mxu0 %vm391_vm0, %v3168_v46 }
0x1c53   :  { %6764 = vmatprep.subr.bf16.mxu0 %v7479_v51 }
0x1c55   :  { %6409 = vmatmul.mubr.msk.f32.vlgmr.msra.gmra.mrb[102].mxu0 %vm391_vm0, %v7874_v30 }
0x1c56   :  { %6411 = vmatprep.mubr.msk.f32.mxu0 %vm391_vm0, %v7877_v34  ;;  %6766 = vmatpush3.bf16.msra.mxu0 %v7879_v35 }
0x1c57   :  { %6767 = vmatprep.subr.bf16.mxu0 %v7479_v51 }
0x1c59   :  { %6412 = vmatmul.mubr.msk.f32.gmra.mrb[104].mxu0 %vm391_vm0, %v7887_v41 }
0x1c5a   :  { %6414 = vmatprep.mubr.msk.f32.mxu0 %vm391_vm0, %v7889_v42  ;;  %6769 = vmatpush3.bf16.msra.mxu0 %v7872_v28 }
0x1c5b   :  { %6770 = vmatprep.subr.bf16.mxu0 %v7479_v51 }
0x1c5d   :  { %6415 = vmatmul.mubr.msk.f32.gmra.mrb[106].mxu0 %vm391_vm0, %v7905_v0 }
0x1c5e   :  { %6417 = vmatprep.mubr.msk.f32.mxu0 %vm391_vm0, %v7907_v1  ;;  %6772 = vmatpush3.bf16.msra.mxu0 %v7900_v49 }
0x1c5f   :  { %6773 = vmatprep.subr.bf16.mxu0 %v7479_v51 }
0x1c61   :  { %6418 = vmatmul.mubr.msk.f32.gmra.mrb[108].mxu0 %vm391_vm0, %v7922_v7 }
0x1c62   :  { %6775 = vmatpush3.bf16.msra.mxu0 %v7917_v6  ;;  %6469 = vmatprep.mubr.msk.f32.mxu0 %vm7480_vm2, %v7481_v25 }
0x1d28   :  { %v6410_v5 = vpop.f32.mrb[102].mxu0 }
0x1d29   :  { %v3238_v36 = vpop.f32.mrb[103].mxu0  ;;  %v3280_v19 = vsel %vm1427_vm1, %v6410_v5, -inf }
0x1d2a   :  { %3281 = vmax.xlane.f32.xlu0 %v3280_v19  ;;  %v3277_v23 = vsel %vm1427_vm1, %v3238_v36, -inf }
0x1d2c   :  { %v6413_v43 = vpop.f32.mrb[104].mxu0 }
0x1d2d   :  { %v3248_v47 = vpop.f32.mrb[105].mxu0  ;;  %v3286_v17 = vsel %vm1427_vm1, %v6413_v43, -inf }
0x1d2e   :  { %3278 = vmax.xlane.f32.xlu0 %v3277_v23  ;;  %v3283_v26 = vsel %vm1427_vm1, %v3248_v47, -inf }
0x1d30   :  { %v6416_v48 = vpop.f32.mrb[106].mxu0 }
0x1d31   :  { %v3258_v44 = vpop.f32.mrb[107].mxu0  ;;  %v3292_v8 = vsel %vm1427_vm1, %v6416_v48, -inf }
0x1d32   :  { %3287 = vmax.xlane.f32.xlu0 %v3286_v17  ;;  %v3289_v20 = vsel %vm1427_vm1, %v3258_v44, -inf }
0x1d34   :  { %v6419_v45 = vpop.f32.mrb[108].mxu0 }
0x1d35   :  { %v3268_v2 = vpop.f32.mrb[109].mxu0  ;;  %v3298_v33 = vsel %vm1427_vm1, %v6419_v45, -inf }
0x1d36   :  { %3284 = vmax.xlane.f32.xlu0 %v3283_v26  ;;  %v3295_v16 = vsel %vm1427_vm1, %v3268_v2, -inf }
0x1d37   :  { %3296 = vmax.xlane.f32.xlu1 %v3295_v16 }
0x1d3a   :  { %3290 = vmax.xlane.f32.xlu0 %v3289_v20 }
0x1d3e   :  { %3293 = vmax.xlane.f32.xlu0 %v3292_v8 }
0x1d42   :  { %3299 = vmax.xlane.f32.xlu0 %v3298_v33 }
0x1db7   :  { %v3282_v12 = vpop.xlane.xlu0 %3281 }
0x1db8   :  { %v3302_v31 = vsub.f32 %v6410_v5, %v3282_v12 }
0x1dba   :  { %v3311_v22 = vmul.f32 1.442695, %v3302_v31 }
0x1dbb   :  { %v3279_v24 = vpop.xlane.xlu0 %3278 }
0x1dbc   :  { %7175 = vpow2.f32 %v3311_v22  ;;  %v3301_v13 = vsub.f32 %v3238_v36, %v3279_v24 }
0x1dbe   :  { %v3309_v3 = vmul.f32 1.442695, %v3301_v13 }
0x1dbf   :  { %v3288_v27 = vpop.xlane.xlu0 %3287 }
0x1dc0   :  { %7177 = vpow2.f32 %v3309_v3  ;;  %v3304_v39 = vsub.f32 %v6413_v43, %v3288_v27 }
0x1dc2   :  { %v3315_v46 = vmul.f32 1.442695, %v3304_v39 }
0x1dc3   :  { %v3285_v19 = vpop.xlane.xlu0 %3284 }
0x1dc4   :  { %7179 = vpow2.f32 %v3315_v46  ;;  %v3303_v23 = vsub.f32 %v3248_v47, %v3285_v19  ;;  %v3297_v33 = vpop.xlane.xlu1 %3296 }
0x1dc5   :  { %v3307_v22 = vsub.f32 %v3268_v2, %v3297_v33 }
0x1dc6   :  { %v7176_v17 = vpop.eup %7175  ;;  %v3313_v26 = vmul.f32 1.442695, %v3303_v23 }
0x1dc7   :  { %v3291_v16 = vpop.xlane.xlu0 %3290  ;;  %v3328_v20 = vsel %vm1427_vm1, %v7176_v17, 0.0  ;;  %v3321_v39 = vmul.f32 1.442695, %v3307_v22 }
0x1dc8   :  { %7181 = vpow2.f32 %v3313_v26  ;;  %3329 = vadd.xlane.f32.xlu0 %v3328_v20  ;;  %v3305_v8 = vsub.f32 %v3258_v44, %v3291_v16 }
0x1dca   :  { %v7178_v5 = vpop.eup %7177  ;;  %v3317_v24 = vmul.f32 1.442695, %v3305_v8 }
0x1dcb   :  { %v3294_v12 = vpop.xlane.xlu0 %3293  ;;  %v3325_v36 = vsel %vm1427_vm1, %v7178_v5, 0.0 }
0x1dcc   :  { %v3306_v31 = vsub.f32 %v6416_v48, %v3294_v12  ;;  %3326 = vadd.xlane.f32.xlu0 %v3325_v36 }
0x1dce   :  { %v7180_v43 = vpop.eup %7179  ;;  %v3319_v13 = vmul.f32 1.442695, %v3306_v31 }
0x1dcf   :  { %v3300_v47 = vpop.xlane.xlu0 %3299  ;;  %v3334_v3 = vsel %vm1427_vm1, %v7180_v43, 0.0 }
0x1dd0   :  { %7183 = vpow2.f32 %v3319_v13  ;;  %3335 = vadd.xlane.f32.xlu0 %v3334_v3  ;;  %v3308_v46 = vsub.f32 %v6419_v45, %v3300_v47 }
0x1dd1   :  { %7185 = vpow2.f32 %v3317_v24 }
0x1dd2   :  { %v7182_v27 = vpop.eup %7181  ;;  %7187 = vpow2.f32 %v3321_v39  ;;  %v3323_v19 = vmul.f32 1.442695, %v3308_v46 }
0x1dd3   :  { %v3331_v44 = vsel %vm1427_vm1, %v7182_v27, 0.0 }
0x1dd4   :  { %3332 = vadd.xlane.f32.xlu0 %v3331_v44  ;;  %7189 = vpow2.f32 %v3323_v19 }
0x1dda   :  { %v7184_v48 = vpop.eup %7183 }
0x1ddb   :  { %v3340_v2 = vsel %vm1427_vm1, %v7184_v48, 0.0  ;;  %v7186_v23 = vpop.eup %7185 }
0x1ddc   :  { %3341 = vadd.xlane.f32.xlu0 %v3340_v2  ;;  %v3337_v26 = vsel %vm1427_vm1, %v7186_v23, 0.0  ;;  %v7188_v16 = vpop.eup %7187 }
0x1ddd   :  { %v3343_v20 = vsel %vm1427_vm1, %v7188_v16, 0.0 }
0x1dde   :  { %v7190_v8 = vpop.eup %7189 }
0x1ddf   :  { %v3346_v45 = vsel %vm1427_vm1, %v7190_v8, 0.0 }
0x1de0   :  { %3338 = vadd.xlane.f32.xlu0 %v3337_v26 }
0x1de4   :  { %3344 = vadd.xlane.f32.xlu0 %v3343_v20 }
0x1de8   :  { %3347 = vadd.xlane.f32.xlu0 %v3346_v45 }
0x1e55   :  { %v3330_v33 = vpop.xlane.xlu0 %3329 }
0x1e59   :  { %v3327_v12 = vpop.xlane.xlu0 %3326 }
0x1e5a   :  { %7191 = vrcp.f32 %v3327_v12 }
0x1e5b   :  { %7193 = vrcp.f32 %v3330_v33 }
0x1e5d   :  { %v3336_v36 = vpop.xlane.xlu0 %3335 }
0x1e61   :  { %v3333_v31 = vpop.xlane.xlu0 %3332 }
0x1e62   :  { %7195 = vrcp.f32 %v3333_v31 }
0x1e63   :  { %7197 = vrcp.f32 %v3336_v36 }
0x1e64   :  { %v7192_v22 = vpop.eup %7191 }
0x1e65   :  { %v3350_v24 = vmul.f32 %v7192_v22, %v7178_v5  ;;  %v7194_v13 = vpop.eup %7193 }
0x1e66   :  { %v3352_v47 = vmul.f32 %v7194_v13, %v7176_v17 }
0x1e67   :  { %3365 = vxpose.xlu0.b32.start [1/8] (short) (narrow) %v3350_v24, 8 }
0x1e69   :  { %v3342_v3 = vpop.xlane.xlu0 %3341 }
0x1e6b   :  { %3366 = vxpose.xlu0.b32.cont [2/8] (short) (narrow) %v3352_v47, 8 }
0x1e6c   :  { %v7196_v39 = vpop.eup %7195 }
0x1e6d   :  { %v3354_v46 = vmul.f32 %v7196_v39, %v7182_v27  ;;  %v3339_v44 = vpop.xlane.xlu0 %3338  ;;  %v7198_v19 = vpop.eup %7197 }
0x1e6e   :  { %7199 = vrcp.f32 %v3339_v44  ;;  %v3356_v2 = vmul.f32 %v7198_v19, %v7180_v43 }
0x1e6f   :  { %3367 = vxpose.xlu0.b32.cont [3/8] (short) (narrow) %v3354_v46, 8  ;;  %7201 = vrcp.f32 %v3342_v3 }
0x1e71   :  { %v3345_v26 = vpop.xlane.xlu0 %3344 }
0x1e72   :  { %7203 = vrcp.f32 %v3345_v26 }
0x1e73   :  { %3368 = vxpose.xlu0.b32.cont [4/8] (short) (narrow) %v3356_v2, 8 }
0x1e75   :  { %v3348_v20 = vpop.xlane.xlu0 %3347 }
0x1e76   :  { %7205 = vrcp.f32 %v3348_v20 }
0x1e78   :  { %v7200_v45 = vpop.eup %7199 }
0x1e79   :  { %v3358_v5 = vmul.f32 %v7200_v45, %v7186_v23  ;;  %v7202_v33 = vpop.eup %7201 }
0x1e7a   :  { %v3360_v17 = vmul.f32 %v7202_v33, %v7184_v48 }
0x1e7b   :  { %3369 = vxpose.xlu0.b32.cont [5/8] (short) (narrow) %v3358_v5, 8 }
0x1e7c   :  { %v7204_v12 = vpop.eup %7203 }
0x1e7d   :  { %v3362_v36 = vmul.f32 %v7204_v12, %v7188_v16 }
0x1e7f   :  { %3370 = vxpose.xlu0.b32.cont [6/8] (short) (narrow) %v3360_v17, 8 }
0x1e80   :  { %v7206_v27 = vpop.eup %7205 }
0x1e81   :  { %v3364_v31 = vmul.f32 %v7206_v27, %v7190_v8 }
0x1e83   :  { %3371 = vxpose.xlu0.b32.cont [7/8] (short) (narrow) %v3362_v36, 8 }
0x1e87   :  { %3372 = vxpose.xlu0.b32.end [8/8] (short) (narrow) %v3364_v31, 8 }
0x1eeb   :  { %v3381_v22 = vpop.trf.xlu0 }
0x1eec   :  { %6437 = vmatmul.mubr.msk.f32.vlgmr.msra.gmra.mrb[118].mxu1 %vm1548_vm3, %v3381_v22 }
0x1eed   :  { %6441 = vmatprep.mubr.msk.f32.mxu1 %vm391_vm0, %v7863_v14 }
0x1fbf   :  { %v3466_v43 = vpop.f32.mrb[118].mxu1 }
0x1fc0   :  { %3472 = vperm.xlu1 %6893, %v3466_v43   ;;  %v6438_v24 = vpop.f32.mrb[119].mxu1 }
0x203f   :  { %v3473_v23 = vpop.permute.xlu1 %3472 }
0x2040   :  { %7207 = vrcp.f32 %v3473_v23 }
0x204a   :  { %v7208_v13 = vpop.eup %7207 }
0x204b   :  { %v3476_v48 = vmul.f32 %v7208_v13, %v3466_v43 }
0x204d   :  { %6439 = vmatprep.subr.msk.mxu1 %vm391_vm0, %v3476_v48 }
0x204e   :  { %6440 = vmatpush3.xpose.msk.msra.mxu1 %vm391_vm0, %v3476_v48 }
0x204f   :  { %6776 = vmatprep.subr.bf16.mxu1 %v7479_v51 }
0x2051   :  { %6442 = vmatmul.mubr.msk.f32.vlgmr.msra.gmra.mrb[120].mxu1 %vm391_vm0, %v7874_v30 }
0x2052   :  { %6444 = vmatprep.mubr.msk.f32.mxu1 %vm391_vm0, %v7877_v34  ;;  %6778 = vmatpush3.bf16.msra.mxu1 %v7879_v35 }
0x2053   :  { %6779 = vmatprep.subr.bf16.mxu1 %v7479_v51 }
0x2055   :  { %6445 = vmatmul.mubr.msk.f32.gmra.mrb[122].mxu1 %vm391_vm0, %v7887_v41 }
0x2056   :  { %6447 = vmatprep.mubr.msk.f32.mxu1 %vm391_vm0, %v7889_v42  ;;  %6781 = vmatpush3.bf16.msra.mxu1 %v7872_v28 }
0x2057   :  { %6782 = vmatprep.subr.bf16.mxu1 %v7479_v51 }
0x2059   :  { %6448 = vmatmul.mubr.msk.f32.gmra.mrb[124].mxu1 %vm391_vm0, %v7905_v0 }
0x205a   :  { %6450 = vmatprep.mubr.msk.f32.mxu1 %vm391_vm0, %v7907_v1  ;;  %6784 = vmatpush3.bf16.msra.mxu1 %v7900_v49 }
0x205b   :  { %6785 = vmatprep.subr.bf16.mxu1 %v7479_v51 }
0x205d   :  { %6451 = vmatmul.mubr.msk.f32.gmra.mrb[126].mxu1 %vm391_vm0, %v7922_v7 }
0x205e   :  { %6787 = vmatpush3.bf16.msra.mxu1 %v7917_v6  ;;  %6502 = vmatprep.mubr.msk.f32.mxu1 %vm7480_vm2, %v7481_v25 }
0x2124   :  { %v6443_v16 = vpop.f32.mrb[120].mxu1 }
0x2125   :  { %v3546_v8 = vpop.f32.mrb[121].mxu1  ;;  %v3588_v47 = vsel %vm1427_vm1, %v6443_v16, -inf }
0x2126   :  { %3589 = vmax.xlane.f32.xlu1 %v3588_v47  ;;  %v3585_v46 = vsel %vm1427_vm1, %v3546_v8, -inf }
0x2128   :  { %v6446_v3 = vpop.f32.mrb[122].mxu1 }
0x2129   :  { %v3556_v39 = vpop.f32.mrb[123].mxu1  ;;  %v3594_v2 = vsel %vm1427_vm1, %v6446_v3, -inf }
0x212a   :  { %3586 = vmax.xlane.f32.xlu1 %v3585_v46  ;;  %v3591_v45 = vsel %vm1427_vm1, %v3556_v39, -inf }
0x212c   :  { %v6449_v44 = vpop.f32.mrb[124].mxu1 }
0x212d   :  { %v3566_v19 = vpop.f32.mrb[125].mxu1  ;;  %v3600_v17 = vsel %vm1427_vm1, %v6449_v44, -inf }
0x212e   :  { %3595 = vmax.xlane.f32.xlu1 %v3594_v2  ;;  %v3597_v33 = vsel %vm1427_vm1, %v3566_v19, -inf }
0x2130   :  { %v6452_v26 = vpop.f32.mrb[126].mxu1 }
0x2131   :  { %v3576_v20 = vpop.f32.mrb[127].mxu1  ;;  %v3606_v12 = vsel %vm1427_vm1, %v6452_v26, -inf }
0x2132   :  { %3592 = vmax.xlane.f32.xlu1 %v3591_v45  ;;  %v3603_v5 = vsel %vm1427_vm1, %v3576_v20, -inf }
0x2133   :  { %3604 = vmax.xlane.f32.xlu0 %v3603_v5 }
0x2136   :  { %3598 = vmax.xlane.f32.xlu1 %v3597_v33 }
0x213a   :  { %3601 = vmax.xlane.f32.xlu1 %v3600_v17 }
0x213e   :  { %3607 = vmax.xlane.f32.xlu1 %v3606_v12 }
0x21b3   :  { %v3590_v36 = vpop.xlane.xlu1 %3589 }
0x21b4   :  { %v3610_v27 = vsub.f32 %v6443_v16, %v3590_v36 }
0x21b6   :  { %v3619_v31 = vmul.f32 1.442695, %v3610_v27 }
0x21b7   :  { %v3587_v22 = vpop.xlane.xlu1 %3586 }
0x21b8   :  { %7209 = vpow2.f32 %v3619_v31  ;;  %v3609_v43 = vsub.f32 %v3546_v8, %v3587_v22 }
0x21ba   :  { %v3617_v24 = vmul.f32 1.442695, %v3609_v43 }
0x21bb   :  { %v3596_v23 = vpop.xlane.xlu1 %3595 }
0x21bc   :  { %7211 = vpow2.f32 %v3617_v24  ;;  %v3612_v13 = vsub.f32 %v6446_v3, %v3596_v23 }
0x21be   :  { %v3623_v48 = vmul.f32 1.442695, %v3612_v13 }
0x21bf   :  { %v3593_v47 = vpop.xlane.xlu1 %3592 }
0x21c0   :  { %7213 = vpow2.f32 %v3623_v48  ;;  %v3611_v46 = vsub.f32 %v3556_v39, %v3593_v47  ;;  %v3605_v12 = vpop.xlane.xlu0 %3604 }
0x21c1   :  { %v3615_v31 = vsub.f32 %v3576_v20, %v3605_v12 }
0x21c2   :  { %v7210_v2 = vpop.eup %7209  ;;  %v3621_v45 = vmul.f32 1.442695, %v3611_v46 }
0x21c3   :  { %v3599_v5 = vpop.xlane.xlu1 %3598  ;;  %v3636_v33 = vsel %vm1427_vm1, %v7210_v2, 0.0  ;;  %v3629_v13 = vmul.f32 1.442695, %v3615_v31 }
0x21c4   :  { %7215 = vpow2.f32 %v3621_v45  ;;  %3637 = vadd.xlane.f32.xlu1 %v3636_v33  ;;  %v3613_v17 = vsub.f32 %v3566_v19, %v3599_v5 }
0x21c6   :  { %v7212_v16 = vpop.eup %7211  ;;  %v3625_v22 = vmul.f32 1.442695, %v3613_v17 }
0x21c7   :  { %v3602_v36 = vpop.xlane.xlu1 %3601  ;;  %v3633_v8 = vsel %vm1427_vm1, %v7212_v16, 0.0 }
0x21c8   :  { %v3614_v27 = vsub.f32 %v6449_v44, %v3602_v36  ;;  %3634 = vadd.xlane.f32.xlu1 %v3633_v8 }
0x21ca   :  { %v7214_v3 = vpop.eup %7213  ;;  %v3627_v43 = vmul.f32 1.442695, %v3614_v27 }
0x21cb   :  { %v3608_v39 = vpop.xlane.xlu1 %3607  ;;  %v3642_v24 = vsel %vm1427_vm1, %v7214_v3, 0.0 }
0x21cc   :  { %7217 = vpow2.f32 %v3627_v43  ;;  %3643 = vadd.xlane.f32.xlu1 %v3642_v24  ;;  %v3616_v48 = vsub.f32 %v6452_v26, %v3608_v39 }
0x21cd   :  { %7219 = vpow2.f32 %v3625_v22 }
0x21ce   :  { %v7216_v23 = vpop.eup %7215  ;;  %7221 = vpow2.f32 %v3629_v13  ;;  %v3631_v47 = vmul.f32 1.442695, %v3616_v48 }
0x21cf   :  { %v3639_v19 = vsel %vm1427_vm1, %v7216_v23, 0.0 }
0x21d0   :  { %3640 = vadd.xlane.f32.xlu1 %v3639_v19  ;;  %7223 = vpow2.f32 %v3631_v47 }
0x21d6   :  { %v7218_v44 = vpop.eup %7217 }
0x21d7   :  { %v3648_v20 = vsel %vm1427_vm1, %v7218_v44, 0.0  ;;  %v7220_v46 = vpop.eup %7219 }
0x21d8   :  { %3649 = vadd.xlane.f32.xlu1 %v3648_v20  ;;  %v3645_v45 = vsel %vm1427_vm1, %v7220_v46, 0.0  ;;  %v7222_v5 = vpop.eup %7221 }
0x21d9   :  { %v3651_v33 = vsel %vm1427_vm1, %v7222_v5, 0.0 }
0x21da   :  { %v7224_v17 = vpop.eup %7223 }
0x21db   :  { %v3654_v26 = vsel %vm1427_vm1, %v7224_v17, 0.0 }
0x21dc   :  { %3646 = vadd.xlane.f32.xlu1 %v3645_v45 }
0x21e0   :  { %3652 = vadd.xlane.f32.xlu1 %v3651_v33 }
0x21e4   :  { %3655 = vadd.xlane.f32.xlu1 %v3654_v26 }
0x2251   :  { %v3638_v12 = vpop.xlane.xlu1 %3637 }
0x2255   :  { %v3635_v36 = vpop.xlane.xlu1 %3634 }
0x2256   :  { %7225 = vrcp.f32 %v3635_v36 }
0x2257   :  { %7227 = vrcp.f32 %v3638_v12 }
0x2259   :  { %v3644_v8 = vpop.xlane.xlu1 %3643 }
0x225d   :  { %v3641_v27 = vpop.xlane.xlu1 %3640 }
0x225e   :  { %7229 = vrcp.f32 %v3641_v27 }
0x225f   :  { %7231 = vrcp.f32 %v3644_v8 }
0x2260   :  { %v7226_v31 = vpop.eup %7225 }
0x2261   :  { %v3658_v22 = vmul.f32 %v7226_v31, %v7212_v16  ;;  %v7228_v43 = vpop.eup %7227 }
0x2262   :  { %v3660_v39 = vmul.f32 %v7228_v43, %v7210_v2 }
0x2263   :  { %3673 = vxpose.xlu1.b32.start [1/8] (short) (narrow) %v3658_v22, 8 }
0x2265   :  { %v3650_v24 = vpop.xlane.xlu1 %3649 }
0x2267   :  { %3674 = vxpose.xlu1.b32.cont [2/8] (short) (narrow) %v3660_v39, 8 }
0x2268   :  { %v7230_v13 = vpop.eup %7229 }
0x2269   :  { %v3662_v48 = vmul.f32 %v7230_v13, %v7216_v23  ;;  %v3647_v19 = vpop.xlane.xlu1 %3646  ;;  %v7232_v47 = vpop.eup %7231 }
0x226a   :  { %7233 = vrcp.f32 %v3647_v19  ;;  %v3664_v20 = vmul.f32 %v7232_v47, %v7214_v3 }
0x226b   :  { %3675 = vxpose.xlu1.b32.cont [3/8] (short) (narrow) %v3662_v48, 8  ;;  %7235 = vrcp.f32 %v3650_v24 }
0x226d   :  { %v3653_v45 = vpop.xlane.xlu1 %3652 }
0x226e   :  { %7237 = vrcp.f32 %v3653_v45 }
0x226f   :  { %3676 = vxpose.xlu1.b32.cont [4/8] (short) (narrow) %v3664_v20, 8 }
0x2271   :  { %v3656_v33 = vpop.xlane.xlu1 %3655 }
0x2272   :  { %7239 = vrcp.f32 %v3656_v33 }
0x2274   :  { %v7234_v26 = vpop.eup %7233 }
0x2275   :  { %v3666_v16 = vmul.f32 %v7234_v26, %v7220_v46  ;;  %v7236_v12 = vpop.eup %7235 }
0x2276   :  { %v3668_v2 = vmul.f32 %v7236_v12, %v7218_v44 }
0x2277   :  { %3677 = vxpose.xlu1.b32.cont [5/8] (short) (narrow) %v3666_v16, 8 }
0x2278   :  { %v7238_v36 = vpop.eup %7237 }
0x2279   :  { %v3670_v8 = vmul.f32 %v7238_v36, %v7222_v5 }
0x227b   :  { %3678 = vxpose.xlu1.b32.cont [6/8] (short) (narrow) %v3668_v2, 8 }
0x227c   :  { %v7240_v23 = vpop.eup %7239 }
0x227d   :  { %v3672_v27 = vmul.f32 %v7240_v23, %v7224_v17 }
0x227f   :  { %3679 = vxpose.xlu1.b32.cont [7/8] (short) (narrow) %v3670_v8, 8 }
0x2283   :  { %3680 = vxpose.xlu1.b32.end [8/8] (short) (narrow) %v3672_v27, 8 }
0x22e7   :  { %v3689_v31 = vpop.trf.xlu1 }
0x22e8   :  { %6470 = vmatmul.mubr.msk.f32.vlgmr.msra.gmra.mrb[110].mxu0 %vm1548_vm3, %v3689_v31 }
0x22e9   :  { %6474 = vmatprep.mubr.msk.f32.mxu0 %vm391_vm0, %v7863_v14 }
0x23bb   :  { %v3774_v3 = vpop.f32.mrb[110].mxu0 }
0x23bc   :  { %3780 = vperm.xlu0 %6894, %v3774_v3   ;;  %v6471_v22 = vpop.f32.mrb[111].mxu0 }
0x243b   :  { %v3781_v46 = vpop.permute.xlu0 %3780 }
0x243c   :  { %7241 = vrcp.f32 %v3781_v46 }
0x2446   :  { %v7242_v43 = vpop.eup %7241 }
0x2447   :  { %v3784_v44 = vmul.f32 %v7242_v43, %v3774_v3 }
0x2449   :  { %6472 = vmatprep.subr.msk.mxu0 %vm391_vm0, %v3784_v44 }
0x244a   :  { %6473 = vmatpush3.xpose.msk.msra.mxu0 %vm391_vm0, %v3784_v44 }
0x244b   :  { %6788 = vmatprep.subr.bf16.mxu0 %v7479_v51 }
0x244d   :  { %6475 = vmatmul.mubr.msk.f32.vlgmr.msra.gmra.mrb[112].mxu0 %vm391_vm0, %v7874_v30 }
0x244e   :  { %6477 = vmatprep.mubr.msk.f32.mxu0 %vm391_vm0, %v7877_v34  ;;  %6790 = vmatpush3.bf16.msra.mxu0 %v7879_v35 }
0x244f   :  { %6791 = vmatprep.subr.bf16.mxu0 %v7479_v51 }
0x2451   :  { %6478 = vmatmul.mubr.msk.f32.gmra.mrb[114].mxu0 %vm391_vm0, %v7887_v41 }
0x2452   :  { %6480 = vmatprep.mubr.msk.f32.mxu0 %vm391_vm0, %v7889_v42  ;;  %6793 = vmatpush3.bf16.msra.mxu0 %v7872_v28 }
0x2453   :  { %6794 = vmatprep.subr.bf16.mxu0 %v7479_v51 }
0x2455   :  { %6481 = vmatmul.mubr.msk.f32.gmra.mrb[116].mxu0 %vm391_vm0, %v7905_v0 }
0x2456   :  { %6483 = vmatprep.mubr.msk.f32.mxu0 %vm391_vm0, %v7907_v1  ;;  %6796 = vmatpush3.bf16.msra.mxu0 %v7900_v49 }
0x2457   :  { %6797 = vmatprep.subr.bf16.mxu0 %v7479_v51 }
0x2459   :  { %6484 = vmatmul.mubr.msk.f32.gmra.mrb[118].mxu0 %vm391_vm0, %v7922_v7 }
0x245a   :  { %6799 = vmatpush3.bf16.msra.mxu0 %v7917_v6  ;;  %6535 = vmatprep.mubr.msk.f32.mxu0 %vm7480_vm2, %v7481_v25 }
0x2520   :  { %v6476_v5 = vpop.f32.mrb[112].mxu0 }
0x2521   :  { %v3854_v17 = vpop.f32.mrb[113].mxu0  ;;  %v3896_v39 = vsel %vm1427_vm1, %v6476_v5, -inf }
0x2522   :  { %3897 = vmax.xlane.f32.xlu0 %v3896_v39  ;;  %v3893_v48 = vsel %vm1427_vm1, %v3854_v17, -inf }
0x2524   :  { %v6479_v24 = vpop.f32.mrb[114].mxu0 }
0x2525   :  { %v3864_v13 = vpop.f32.mrb[115].mxu0  ;;  %v3902_v20 = vsel %vm1427_vm1, %v6479_v24, -inf }
0x2526   :  { %3894 = vmax.xlane.f32.xlu0 %v3893_v48  ;;  %v3899_v26 = vsel %vm1427_vm1, %v3864_v13, -inf }
0x2528   :  { %v6482_v19 = vpop.f32.mrb[116].mxu0 }
0x2529   :  { %v3874_v47 = vpop.f32.mrb[117].mxu0  ;;  %v3908_v2 = vsel %vm1427_vm1, %v6482_v19, -inf }
0x252a   :  { %3903 = vmax.xlane.f32.xlu0 %v3902_v20  ;;  %v3905_v12 = vsel %vm1427_vm1, %v3874_v47, -inf }
0x252c   :  { %v6485_v45 = vpop.f32.mrb[118].mxu0 }
0x252d   :  { %v3884_v33 = vpop.f32.mrb[119].mxu0  ;;  %v3914_v36 = vsel %vm1427_vm1, %v6485_v45, -inf }
0x252e   :  { %3900 = vmax.xlane.f32.xlu0 %v3899_v26  ;;  %v3911_v16 = vsel %vm1427_vm1, %v3884_v33, -inf }
0x252f   :  { %3912 = vmax.xlane.f32.xlu1 %v3911_v16 }
0x2532   :  { %3906 = vmax.xlane.f32.xlu0 %v3905_v12 }
0x2536   :  { %3909 = vmax.xlane.f32.xlu0 %v3908_v2 }
0x253a   :  { %3915 = vmax.xlane.f32.xlu0 %v3914_v36 }
0x25af   :  { %v3898_v8 = vpop.xlane.xlu0 %3897 }
0x25b0   :  { %v3918_v23 = vsub.f32 %v6476_v5, %v3898_v8 }
0x25b2   :  { %v3927_v27 = vmul.f32 1.442695, %v3918_v23 }
0x25b3   :  { %v3895_v31 = vpop.xlane.xlu0 %3894 }
0x25b4   :  { %7243 = vpow2.f32 %v3927_v27  ;;  %v3917_v3 = vsub.f32 %v3854_v17, %v3895_v31 }
0x25b6   :  { %v3925_v22 = vmul.f32 1.442695, %v3917_v3 }
0x25b7   :  { %v3904_v46 = vpop.xlane.xlu0 %3903 }
0x25b8   :  { %7245 = vpow2.f32 %v3925_v22  ;;  %v3920_v43 = vsub.f32 %v6479_v24, %v3904_v46 }
0x25ba   :  { %v3931_v44 = vmul.f32 1.442695, %v3920_v43 }
0x25bb   :  { %v3901_v39 = vpop.xlane.xlu0 %3900 }
0x25bc   :  { %7247 = vpow2.f32 %v3931_v44  ;;  %v3919_v48 = vsub.f32 %v3864_v13, %v3901_v39  ;;  %v3913_v36 = vpop.xlane.xlu1 %3912 }
0x25bd   :  { %v3923_v27 = vsub.f32 %v3884_v33, %v3913_v36 }
0x25be   :  { %v7244_v20 = vpop.eup %7243  ;;  %v3929_v26 = vmul.f32 1.442695, %v3919_v48 }
0x25bf   :  { %v3907_v16 = vpop.xlane.xlu0 %3906  ;;  %v3944_v12 = vsel %vm1427_vm1, %v7244_v20, 0.0  ;;  %v3937_v43 = vmul.f32 1.442695, %v3923_v27 }
0x25c0   :  { %7249 = vpow2.f32 %v3929_v26  ;;  %3945 = vadd.xlane.f32.xlu0 %v3944_v12  ;;  %v3921_v2 = vsub.f32 %v3874_v47, %v3907_v16 }
0x25c2   :  { %v7246_v5 = vpop.eup %7245  ;;  %v3933_v31 = vmul.f32 1.442695, %v3921_v2 }
0x25c3   :  { %v3910_v8 = vpop.xlane.xlu0 %3909  ;;  %v3941_v17 = vsel %vm1427_vm1, %v7246_v5, 0.0 }
0x25c4   :  { %v3922_v23 = vsub.f32 %v6482_v19, %v3910_v8  ;;  %3942 = vadd.xlane.f32.xlu0 %v3941_v17 }
0x25c6   :  { %v7248_v24 = vpop.eup %7247  ;;  %v3935_v3 = vmul.f32 1.442695, %v3922_v23 }
0x25c7   :  { %v3916_v13 = vpop.xlane.xlu0 %3915  ;;  %v3950_v22 = vsel %vm1427_vm1, %v7248_v24, 0.0 }
0x25c8   :  { %7251 = vpow2.f32 %v3935_v3  ;;  %3951 = vadd.xlane.f32.xlu0 %v3950_v22  ;;  %v3924_v44 = vsub.f32 %v6485_v45, %v3916_v13 }
0x25c9   :  { %7253 = vpow2.f32 %v3933_v31 }
0x25ca   :  { %v7250_v46 = vpop.eup %7249  ;;  %7255 = vpow2.f32 %v3937_v43  ;;  %v3939_v39 = vmul.f32 1.442695, %v3924_v44 }
0x25cb   :  { %v3947_v47 = vsel %vm1427_vm1, %v7250_v46, 0.0 }
0x25cc   :  { %3948 = vadd.xlane.f32.xlu0 %v3947_v47  ;;  %7257 = vpow2.f32 %v3939_v39 }
0x25d2   :  { %v7252_v19 = vpop.eup %7251 }
0x25d3   :  { %v3956_v33 = vsel %vm1427_vm1, %v7252_v19, 0.0  ;;  %v7254_v48 = vpop.eup %7253 }
0x25d4   :  { %3957 = vadd.xlane.f32.xlu0 %v3956_v33  ;;  %v3953_v26 = vsel %vm1427_vm1, %v7254_v48, 0.0  ;;  %v7256_v16 = vpop.eup %7255 }
0x25d5   :  { %v3959_v12 = vsel %vm1427_vm1, %v7256_v16, 0.0 }
0x25d6   :  { %v7258_v2 = vpop.eup %7257 }
0x25d7   :  { %v3962_v45 = vsel %vm1427_vm1, %v7258_v2, 0.0 }
0x25d8   :  { %3954 = vadd.xlane.f32.xlu0 %v3953_v26 }
0x25dc   :  { %3960 = vadd.xlane.f32.xlu0 %v3959_v12 }
0x25e0   :  { %3963 = vadd.xlane.f32.xlu0 %v3962_v45 }
0x264d   :  { %v3946_v36 = vpop.xlane.xlu0 %3945 }
0x2651   :  { %v3943_v8 = vpop.xlane.xlu0 %3942 }
0x2652   :  { %7259 = vrcp.f32 %v3943_v8 }
0x2653   :  { %7261 = vrcp.f32 %v3946_v36 }
0x2655   :  { %v3952_v17 = vpop.xlane.xlu0 %3951 }
0x2659   :  { %v3949_v23 = vpop.xlane.xlu0 %3948 }
0x265a   :  { %7263 = vrcp.f32 %v3949_v23 }
0x265b   :  { %7265 = vrcp.f32 %v3952_v17 }
0x265c   :  { %v7260_v27 = vpop.eup %7259 }
0x265d   :  { %v3966_v31 = vmul.f32 %v7260_v27, %v7246_v5  ;;  %v7262_v3 = vpop.eup %7261 }
0x265e   :  { %v3968_v13 = vmul.f32 %v7262_v3, %v7244_v20 }
0x265f   :  { %3981 = vxpose.xlu0.b32.start [1/8] (short) (narrow) %v3966_v31, 8 }
0x2661   :  { %v3958_v22 = vpop.xlane.xlu0 %3957 }
0x2663   :  { %3982 = vxpose.xlu0.b32.cont [2/8] (short) (narrow) %v3968_v13, 8 }
0x2664   :  { %v7264_v43 = vpop.eup %7263 }
0x2665   :  { %v3970_v44 = vmul.f32 %v7264_v43, %v7250_v46  ;;  %v3955_v47 = vpop.xlane.xlu0 %3954  ;;  %v7266_v39 = vpop.eup %7265 }
0x2666   :  { %7267 = vrcp.f32 %v3955_v47  ;;  %v3972_v33 = vmul.f32 %v7266_v39, %v7248_v24 }
0x2667   :  { %3983 = vxpose.xlu0.b32.cont [3/8] (short) (narrow) %v3970_v44, 8  ;;  %7269 = vrcp.f32 %v3958_v22 }
0x2669   :  { %v3961_v26 = vpop.xlane.xlu0 %3960 }
0x266a   :  { %7271 = vrcp.f32 %v3961_v26 }
0x266b   :  { %3984 = vxpose.xlu0.b32.cont [4/8] (short) (narrow) %v3972_v33, 8 }
0x266d   :  { %v3964_v12 = vpop.xlane.xlu0 %3963 }
0x266e   :  { %7273 = vrcp.f32 %v3964_v12 }
0x2670   :  { %v7268_v45 = vpop.eup %7267 }
0x2671   :  { %v3974_v5 = vmul.f32 %v7268_v45, %v7254_v48  ;;  %v7270_v36 = vpop.eup %7269 }
0x2672   :  { %v3976_v20 = vmul.f32 %v7270_v36, %v7252_v19 }
0x2673   :  { %3985 = vxpose.xlu0.b32.cont [5/8] (short) (narrow) %v3974_v5, 8 }
0x2674   :  { %v7272_v8 = vpop.eup %7271 }
0x2675   :  { %v3978_v17 = vmul.f32 %v7272_v8, %v7256_v16 }
0x2677   :  { %3986 = vxpose.xlu0.b32.cont [6/8] (short) (narrow) %v3976_v20, 8 }
0x2678   :  { %v7274_v46 = vpop.eup %7273 }
0x2679   :  { %v3980_v23 = vmul.f32 %v7274_v46, %v7258_v2 }
0x267b   :  { %3987 = vxpose.xlu0.b32.cont [7/8] (short) (narrow) %v3978_v17, 8 }
0x267f   :  { %3988 = vxpose.xlu0.b32.end [8/8] (short) (narrow) %v3980_v23, 8 }
0x26e3   :  { %v3997_v27 = vpop.trf.xlu0 }
0x26e4   :  { %6503 = vmatmul.mubr.msk.f32.vlgmr.msra.gmra.mrb[128].mxu1 %vm1548_vm3, %v3997_v27 }
0x26e5   :  { %6507 = vmatprep.mubr.msk.f32.mxu1 %vm391_vm0, %v7863_v14 }
0x27b7   :  { %v4082_v24 = vpop.f32.mrb[128].mxu1 }
0x27b8   :  { %4088 = vperm.xlu1 %6893, %v4082_v24   ;;  %v6504_v31 = vpop.f32.mrb[129].mxu1 }
0x2837   :  { %v4089_v48 = vpop.permute.xlu1 %4088 }
0x2838   :  { %7275 = vrcp.f32 %v4089_v48 }
0x2842   :  { %v7276_v3 = vpop.eup %7275 }
0x2843   :  { %v4092_v19 = vmul.f32 %v7276_v3, %v4082_v24 }
0x2845   :  { %6505 = vmatprep.subr.msk.mxu1 %vm391_vm0, %v4092_v19 }
0x2846   :  { %6506 = vmatpush3.xpose.msk.msra.mxu1 %vm391_vm0, %v4092_v19 }
0x2847   :  { %6800 = vmatprep.subr.bf16.mxu1 %v7479_v51 }
0x2849   :  { %6508 = vmatmul.mubr.msk.f32.vlgmr.msra.gmra.mrb[130].mxu1 %vm391_vm0, %v7874_v30 }
0x284a   :  { %6510 = vmatprep.mubr.msk.f32.mxu1 %vm391_vm0, %v7877_v34  ;;  %6802 = vmatpush3.bf16.msra.mxu1 %v7879_v35 }
0x284b   :  { %6803 = vmatprep.subr.bf16.mxu1 %v7479_v51 }
0x284d   :  { %6511 = vmatmul.mubr.msk.f32.gmra.mrb[132].mxu1 %vm391_vm0, %v7887_v41 }
0x284e   :  { %6513 = vmatprep.mubr.msk.f32.mxu1 %vm391_vm0, %v7889_v42  ;;  %6805 = vmatpush3.bf16.msra.mxu1 %v7872_v28 }
0x284f   :  { %6806 = vmatprep.subr.bf16.mxu1 %v7479_v51 }
0x2851   :  { %6514 = vmatmul.mubr.msk.f32.gmra.mrb[134].mxu1 %vm391_vm0, %v7905_v0 }
0x2852   :  { %6516 = vmatprep.mubr.msk.f32.mxu1 %vm391_vm0, %v7907_v1  ;;  %6808 = vmatpush3.bf16.msra.mxu1 %v7900_v49 }
0x2853   :  { %6809 = vmatprep.subr.bf16.mxu1 %v7479_v51 }
0x2855   :  { %6517 = vmatmul.mubr.msk.f32.gmra.mrb[136].mxu1 %vm391_vm0, %v7922_v7 }
0x2856   :  { %6811 = vmatpush3.bf16.msra.mxu1 %v7917_v6  ;;  %6568 = vmatprep.mubr.msk.f32.mxu1 %vm7480_vm2, %v7481_v25 }
0x291c   :  { %v6509_v28 = vpop.f32.mrb[130].mxu1 }
0x291d   :  { %v4162_v35 = vpop.f32.mrb[131].mxu1  ;;  %v4204_v16 = vsel %vm1427_vm1, %v6509_v28, -inf }
0x291e   :  { %4205 = vmax.xlane.f32.xlu1 %v4204_v16  ;;  %v4201_v22 = vsel %vm1427_vm1, %v4162_v35, -inf }
0x2920   :  { %v6512_v2 = vpop.f32.mrb[132].mxu1 }
0x2921   :  { %v4172_v13 = vpop.f32.mrb[133].mxu1  ;;  %v4210_v44 = vsel %vm1427_vm1, %v6512_v2, -inf }
0x2922   :  { %4202 = vmax.xlane.f32.xlu1 %v4201_v22  ;;  %v4207_v39 = vsel %vm1427_vm1, %v4172_v13, -inf }
0x2924   :  { %v6515_v49 = vpop.f32.mrb[134].mxu1 }
0x2925   :  { %v4182_v43 = vpop.f32.mrb[135].mxu1  ;;  %v4216_v12 = vsel %vm1427_vm1, %v6515_v49, -inf }
0x2926   :  { %4211 = vmax.xlane.f32.xlu1 %v4210_v44  ;;  %v4213_v26 = vsel %vm1427_vm1, %v4182_v43, -inf }
0x2928   :  { %v6518_v47 = vpop.f32.mrb[136].mxu1 }
0x2929   :  { %v4192_v6 = vpop.f32.mrb[137].mxu1  ;;  %v4222_v45 = vsel %vm1427_vm1, %v6518_v47, -inf }
0x292a   :  { %4208 = vmax.xlane.f32.xlu1 %v4207_v39  ;;  %v4219_v33 = vsel %vm1427_vm1, %v4192_v6, -inf }
0x292b   :  { %4220 = vmax.xlane.f32.xlu0 %v4219_v33 }
0x292e   :  { %4214 = vmax.xlane.f32.xlu1 %v4213_v26 }
0x2932   :  { %4217 = vmax.xlane.f32.xlu1 %v4216_v12 }
0x2936   :  { %4223 = vmax.xlane.f32.xlu1 %v4222_v45 }
0x29ab   :  { %v4206_v5 = vpop.xlane.xlu1 %4205 }
0x29ac   :  { %v4226_v36 = vsub.f32 %v6509_v28, %v4206_v5 }
0x29ae   :  { %v4235_v20 = vmul.f32 1.442695, %v4226_v36 }
0x29af   :  { %v4203_v8 = vpop.xlane.xlu1 %4202 }
0x29b0   :  { %7277 = vpow2.f32 %v4235_v20  ;;  %v4225_v17 = vsub.f32 %v4162_v35, %v4203_v8 }
0x29b2   :  { %v4233_v46 = vmul.f32 1.442695, %v4225_v17 }
0x29b3   :  { %v4212_v23 = vpop.xlane.xlu1 %4211 }
0x29b4   :  { %7279 = vpow2.f32 %v4233_v46  ;;  %v4228_v27 = vsub.f32 %v6512_v2, %v4212_v23 }
0x29b6   :  { %v4239_v24 = vmul.f32 1.442695, %v4228_v27 }
0x29b7   :  { %v4209_v31 = vpop.xlane.xlu1 %4208 }
0x29b8   :  { %7281 = vpow2.f32 %v4239_v24  ;;  %v4227_v48 = vsub.f32 %v4172_v13, %v4209_v31  ;;  %v4221_v39 = vpop.xlane.xlu0 %4220 }
0x29b9   :  { %v4231_v12 = vsub.f32 %v4192_v6, %v4221_v39 }
0x29ba   :  { %v7278_v3 = vpop.eup %7277  ;;  %v4237_v19 = vmul.f32 1.442695, %v4227_v48 }
0x29bb   :  { %v4215_v16 = vpop.xlane.xlu1 %4214  ;;  %v4252_v22 = vsel %vm1427_vm1, %v7278_v3, 0.0  ;;  %v4245_v8 = vmul.f32 1.442695, %v4231_v12 }
0x29bc   :  { %7283 = vpow2.f32 %v4237_v19  ;;  %4253 = vadd.xlane.f32.xlu1 %v4252_v22  ;;  %v4229_v44 = vsub.f32 %v4182_v43, %v4215_v16 }
0x29be   :  { %v7280_v28 = vpop.eup %7279  ;;  %v4241_v45 = vmul.f32 1.442695, %v4229_v44 }
0x29bf   :  { %v4218_v33 = vpop.xlane.xlu1 %4217  ;;  %v4249_v35 = vsel %vm1427_vm1, %v7280_v28, 0.0 }
0x29c0   :  { %v4230_v26 = vsub.f32 %v6515_v49, %v4218_v33  ;;  %4250 = vadd.xlane.f32.xlu1 %v4249_v35 }
0x29c2   :  { %v7282_v2 = vpop.eup %7281  ;;  %v4243_v5 = vmul.f32 1.442695, %v4230_v26 }
0x29c3   :  { %v4224_v13 = vpop.xlane.xlu1 %4223  ;;  %v4258_v36 = vsel %vm1427_vm1, %v7282_v2, 0.0 }
0x29c4   :  { %7285 = vpow2.f32 %v4243_v5  ;;  %4259 = vadd.xlane.f32.xlu1 %v4258_v36  ;;  %v4232_v17 = vsub.f32 %v6518_v47, %v4224_v13 }
0x29c5   :  { %7287 = vpow2.f32 %v4241_v45 }
0x29c6   :  { %v7284_v20 = vpop.eup %7283  ;;  %7289 = vpow2.f32 %v4245_v8  ;;  %v4247_v46 = vmul.f32 1.442695, %v4232_v17 }
0x29c7   :  { %v4255_v43 = vsel %vm1427_vm1, %v7284_v20, 0.0 }
0x29c8   :  { %4256 = vadd.xlane.f32.xlu1 %v4255_v43  ;;  %7291 = vpow2.f32 %v4247_v46 }
0x29ce   :  { %v7286_v49 = vpop.eup %7285 }
0x29cf   :  { %v4264_v6 = vsel %vm1427_vm1, %v7286_v49, 0.0  ;;  %v7288_v23 = vpop.eup %7287 }
0x29d0   :  { %4265 = vadd.xlane.f32.xlu1 %v4264_v6  ;;  %v4261_v27 = vsel %vm1427_vm1, %v7288_v23, 0.0  ;;  %v7290_v24 = vpop.eup %7289 }
0x29d1   :  { %v4267_v31 = vsel %vm1427_vm1, %v7290_v24, 0.0 }
0x29d2   :  { %v7292_v48 = vpop.eup %7291 }
0x29d3   :  { %v4270_v47 = vsel %vm1427_vm1, %v7292_v48, 0.0 }
0x29d4   :  { %4262 = vadd.xlane.f32.xlu1 %v4261_v27 }
0x29d8   :  { %4268 = vadd.xlane.f32.xlu1 %v4267_v31 }
0x29dc   :  { %4271 = vadd.xlane.f32.xlu1 %v4270_v47 }
0x2a49   :  { %v4254_v19 = vpop.xlane.xlu1 %4253 }
0x2a4d   :  { %v4251_v16 = vpop.xlane.xlu1 %4250 }
0x2a4e   :  { %7293 = vrcp.f32 %v4251_v16 }
0x2a4f   :  { %7295 = vrcp.f32 %v4254_v19 }
0x2a51   :  { %v4260_v22 = vpop.xlane.xlu1 %4259 }
0x2a55   :  { %v4257_v44 = vpop.xlane.xlu1 %4256 }
0x2a56   :  { %7297 = vrcp.f32 %v4257_v44 }
0x2a57   :  { %7299 = vrcp.f32 %v4260_v22 }
0x2a58   :  { %v7294_v39 = vpop.eup %7293 }
0x2a59   :  { %v4274_v33 = vmul.f32 %v7294_v39, %v7280_v28  ;;  %v7296_v35 = vpop.eup %7295 }
0x2a5a   :  { %v4276_v26 = vmul.f32 %v7296_v35, %v7278_v3 }
0x2a5b   :  { %4289 = vxpose.xlu1.b32.start [1/8] (short) (narrow) %v4274_v33, 8 }
0x2a5d   :  { %v4266_v12 = vpop.xlane.xlu1 %4265 }
0x2a5f   :  { %4290 = vxpose.xlu1.b32.cont [2/8] (short) (narrow) %v4276_v26, 8 }
0x2a60   :  { %v7298_v45 = vpop.eup %7297 }
0x2a61   :  { %v4278_v5 = vmul.f32 %v7298_v45, %v7284_v20  ;;  %v4263_v13 = vpop.xlane.xlu1 %4262  ;;  %v7300_v36 = vpop.eup %7299 }
0x2a62   :  { %7301 = vrcp.f32 %v4263_v13  ;;  %v4280_v8 = vmul.f32 %v7300_v36, %v7282_v2 }
0x2a63   :  { %4291 = vxpose.xlu1.b32.cont [3/8] (short) (narrow) %v4278_v5, 8  ;;  %7303 = vrcp.f32 %v4266_v12  ;;  %v4934_v5 = vld [vmem:[%s8590_s6] sm:$0xff] }
0x2a65   :  { %v4269_v17 = vpop.xlane.xlu1 %4268 }
0x2a66   :  { %7305 = vrcp.f32 %v4269_v17 }
0x2a67   :  { %4292 = vxpose.xlu1.b32.cont [4/8] (short) (narrow) %v4280_v8, 8 }
0x2a69   :  { %v4272_v43 = vpop.xlane.xlu1 %4271 }
0x2a6a   :  { %7307 = vrcp.f32 %v4272_v43  ;;  %v4936_v43 = vld [vmem:[%s8590_s6 + $0x10] sm:$0xff] }
0x2a6c   :  { %v7302_v46 = vpop.eup %7301 }
0x2a6d   :  { %v4282_v28 = vmul.f32 %v7302_v46, %v7288_v23  ;;  %v7304_v6 = vpop.eup %7303  ;;  %v4920_v23 = vrot.slane %v7833_v50, 4  ;;  %v4937_v46 = vld [vmem:[%s8590_s6 + $0x18] sm:$0xff] }
0x2a6e   :  { %v4284_v3 = vmul.f32 %v7304_v6, %v7286_v49 }
0x2a6f   :  { %4293 = vxpose.xlu1.b32.cont [5/8] (short) (narrow) %v4282_v28, 8  ;;  %v4921_v49 = vadd.f32 %v4920_v23, %v7833_v50  ;;  %v4935_v50 = vld [vmem:[%s8590_s6 + $0x8] sm:$0xff]  ;;  %v6817_v28 = vpack.c.bf16 %v4937_v46, %v4936_v43  ;;  %s5490_s6 = sld [smem:[#allocation2 + $0x1]] }
0x2a70   :  { %v7306_v27 = vpop.eup %7305  ;;  %v6813_v13 = vpack.c.bf16 %v4935_v50, %v4934_v5 }
0x2a71   :  { %v4286_v31 = vmul.f32 %v7306_v27, %v7290_v24  ;;  %v4922_v22 = vrot.slane %v4921_v49, 2 }
0x2a73   :  { %4294 = vxpose.xlu1.b32.cont [6/8] (short) (narrow) %v4284_v3, 8  ;;  %v4923_v44 = vadd.f32 %v4922_v22, %v4921_v49 }
0x2a74   :  { %v7308_v20 = vpop.eup %7307 }
0x2a75   :  { %v4288_v47 = vmul.f32 %v7308_v20, %v7292_v48  ;;  %v4924_v24 = vrot.slane %v4923_v44, 1 }
0x2a77   :  { %4295 = vxpose.xlu1.b32.cont [7/8] (short) (narrow) %v4286_v31, 8  ;;  %v4925_v39 = vadd.f32 %v4924_v24, %v4923_v44 }
0x2a79   :  { %v4927_v33 = vmul.f32 0.015625, %v4925_v39 }
0x2a7b   :  { %4296 = vxpose.xlu1.b32.end [8/8] (short) (narrow) %v4288_v47, 8  ;;  %v4928_v48 = vsub.f32 0.0, %v4927_v33 }
0x2a7d   :  { %v4929_v26 = vmul.f32 1.442695, %v4928_v48 }
0x2adf   :  { %v4305_v19 = vpop.trf.xlu1 }
0x2ae0   :  { %6536 = vmatmul.mubr.msk.f32.vlgmr.msra.gmra.mrb[120].mxu0 %vm1548_vm3, %v4305_v19 }
0x2ae1   :  { %6540 = vmatprep.mubr.msk.f32.mxu0 %vm391_vm0, %v7863_v14 }
0x2bb3   :  { %v4390_v2 = vpop.f32.mrb[120].mxu0 }
0x2bb4   :  { %4396 = vperm.xlu0 %6894, %v4390_v2   ;;  %v6537_v16 = vpop.f32.mrb[121].mxu0 }
0x2c33   :  { %v4397_v35 = vpop.permute.xlu0 %4396 }
0x2c34   :  { %7309 = vrcp.f32 %v4397_v35 }
0x2c35   :  { %7311 = vpow2.f32 %v4929_v26 }
0x2c3e   :  { %v7310_v12 = vpop.eup %7309 }
0x2c3f   :  { %v4400_v45 = vmul.f32 %v7310_v12, %v4390_v2  ;;  %v7312_v36 = vpop.eup %7311 }
0x2c40   :  { %v4931_v17 = vadd.f32 1.0, %v7312_v36 }
0x2c41   :  { %6538 = vmatprep.subr.msk.mxu0 %vm391_vm0, %v4400_v45 }
0x2c42   :  { %6539 = vmatpush3.xpose.msk.msra.mxu0 %vm391_vm0, %v4400_v45  ;;  %7313 = vrcp.f32 %v4931_v17 }
0x2c43   :  { %6812 = vmatprep.subr.bf16.mxu0 %v7479_v51 }
0x2c45   :  { %6541 = vmatmul.mubr.msk.f32.vlgmr.msra.gmra.mrb[122].mxu0 %vm391_vm0, %v7874_v30 }
0x2c46   :  { %6543 = vmatprep.mubr.msk.f32.mxu0 %vm391_vm0, %v7877_v34  ;;  %6815 = vmatpush3.bf16.xpose.msk.msra.mxu0 %vm8372_vm4, %v6813_v13 }
0x2c47   :  { %6816 = vmatprep.subr.bf16.mxu0 %v7479_v51 }
0x2c49   :  { %6544 = vmatmul.mubr.msk.f32.gmra.mrb[124].mxu0 %vm391_vm0, %v7887_v41 }
0x2c4a   :  { %6546 = vmatprep.mubr.msk.f32.mxu0 %vm391_vm0, %v7889_v42 }
0x2c4c   :  { %v7314_v6 = vpop.eup %7313 }
0x2c4d   :  { %6547 = vmatmul.mubr.msk.f32.gmra.mrb[126].mxu0 %vm391_vm0, %v7905_v0 }
0x2c4e   :  { %6549 = vmatprep.mubr.msk.f32.mxu0 %vm391_vm0, %v7907_v1  ;;  %6819 = vmatpush3.bf16.xpose.msk.msra.mxu0 %vm8372_vm4, %v6817_v28 }
0x2c51   :  { %6550 = vmatmul.mubr.msk.f32.gmra.mrb[128].mxu0 %vm391_vm0, %v7922_v7 }
0x2c52   :  { %6593 = vmatprep.mubr.msk.f32.mxu0 %vm7480_vm2, %v7481_v25 }
0x2c55   :  { %6594 = vmatmul.mubr.msk.f32.vlgmr.msra.gmra.mrb[130].mxu0 %vm391_vm0, %v7314_v6 }
0x2d18   :  { %v6542_v3 = vpop.f32.mrb[122].mxu0 }
0x2d19   :  { %v4470_v27 = vpop.f32.mrb[123].mxu0  ;;  %v4512_v31 = vsel %vm1427_vm1, %v6542_v3, -inf }
0x2d1a   :  { %4513 = vmax.xlane.f32.xlu0 %v4512_v31  ;;  %v4509_v19 = vsel %vm1427_vm1, %v4470_v27, -inf }
0x2d1c   :  { %v6545_v20 = vpop.f32.mrb[124].mxu0 }
0x2d1d   :  { %v4480_v47 = vpop.f32.mrb[125].mxu0  ;;  %v4518_v23 = vsel %vm1427_vm1, %v6545_v20, -inf }
0x2d1e   :  { %4510 = vmax.xlane.f32.xlu0 %v4509_v19  ;;  %v4515_v44 = vsel %vm1427_vm1, %v4480_v47, -inf }
0x2d20   :  { %v6548_v2 = vpop.f32.mrb[126].mxu0 }
0x2d21   :  { %v4490_v16 = vpop.f32.mrb[127].mxu0  ;;  %v4524_v35 = vsel %vm1427_vm1, %v6548_v2, -inf }
0x2d22   :  { %4519 = vmax.xlane.f32.xlu0 %v4518_v23  ;;  %v4521_v48 = vsel %vm1427_vm1, %v4490_v16, -inf }
0x2d24   :  { %v6551_v49 = vpop.f32.mrb[128].mxu0 }
0x2d25   :  { %v4500_v22 = vpop.f32.mrb[129].mxu0  ;;  %v4530_v26 = vsel %vm1427_vm1, %v6551_v49, -inf }
0x2d26   :  { %4516 = vmax.xlane.f32.xlu0 %v4515_v44  ;;  %v4527_v24 = vsel %vm1427_vm1, %v4500_v22, -inf }
0x2d27   :  { %4528 = vmax.xlane.f32.xlu1 %v4527_v24 }
0x2d28   :  { %v8409_v39 = vpop.f32.mrb[130].mxu0 }
0x2d29   :  { %v6595_v33 = vpop.f32.mrb[131].mxu0 }
0x2d2a   :  { %4522 = vmax.xlane.f32.xlu0 %v4521_v48 }
0x2d2e   :  { %4525 = vmax.xlane.f32.xlu0 %v4524_v35 }
0x2d32   :  { %4531 = vmax.xlane.f32.xlu0 %v4530_v26 }
0x2da7   :  { %v4514_v12 = vpop.xlane.xlu0 %4513 }
0x2da8   :  { %v4534_v45 = vsub.f32 %v6542_v3, %v4514_v12 }
0x2daa   :  { %v4543_v5 = vmul.f32 1.442695, %v4534_v45 }
0x2dab   :  { %v4511_v50 = vpop.xlane.xlu0 %4510 }
0x2dac   :  { %7315 = vpow2.f32 %v4543_v5  ;;  %v4533_v13 = vsub.f32 %v4470_v27, %v4511_v50 }
0x2dae   :  { %v4541_v36 = vmul.f32 1.442695, %v4533_v13 }
0x2daf   :  { %v4520_v17 = vpop.xlane.xlu0 %4519 }
0x2db0   :  { %7317 = vpow2.f32 %v4541_v36  ;;  %v4536_v43 = vsub.f32 %v6545_v20, %v4520_v17 }
0x2db2   :  { %v4547_v46 = vmul.f32 1.442695, %v4536_v43 }
0x2db3   :  { %v4517_v28 = vpop.xlane.xlu0 %4516 }
0x2db4   :  { %7319 = vpow2.f32 %v4547_v46  ;;  %v4535_v6 = vsub.f32 %v4480_v47, %v4517_v28  ;;  %v4529_v33 = vpop.xlane.xlu1 %4528 }
0x2db5   :  { %v4539_v26 = vsub.f32 %v4500_v22, %v4529_v33 }
0x2db6   :  { %v7316_v31 = vpop.eup %7315  ;;  %v4545_v19 = vmul.f32 1.442695, %v4535_v6 }
0x2db7   :  { %v4523_v23 = vpop.xlane.xlu0 %4522  ;;  %v4560_v44 = vsel %vm1427_vm1, %v7316_v31, 0.0  ;;  %v4553_v13 = vmul.f32 1.442695, %v4539_v26 }
0x2db8   :  { %7321 = vpow2.f32 %v4545_v19  ;;  %4561 = vadd.xlane.f32.xlu0 %v4560_v44  ;;  %v4537_v24 = vsub.f32 %v4490_v16, %v4523_v23 }
0x2dba   :  { %v7318_v3 = vpop.eup %7317  ;;  %v4549_v12 = vmul.f32 1.442695, %v4537_v24 }
0x2dbb   :  { %v4526_v48 = vpop.xlane.xlu0 %4525  ;;  %v4557_v27 = vsel %vm1427_vm1, %v7318_v3, 0.0 }
0x2dbc   :  { %v4538_v35 = vsub.f32 %v6548_v2, %v4526_v48  ;;  %4558 = vadd.xlane.f32.xlu0 %v4557_v27 }
0x2dbe   :  { %v7320_v20 = vpop.eup %7319  ;;  %v4551_v45 = vmul.f32 1.442695, %v4538_v35 }
0x2dbf   :  { %v4532_v47 = vpop.xlane.xlu0 %4531  ;;  %v4566_v5 = vsel %vm1427_vm1, %v7320_v20, 0.0 }
0x2dc0   :  { %7323 = vpow2.f32 %v4551_v45  ;;  %4567 = vadd.xlane.f32.xlu0 %v4566_v5  ;;  %v4540_v36 = vsub.f32 %v6551_v49, %v4532_v47 }
0x2dc1   :  { %7325 = vpow2.f32 %v4549_v12 }
0x2dc2   :  { %v7322_v50 = vpop.eup %7321  ;;  %7327 = vpow2.f32 %v4553_v13  ;;  %v4555_v17 = vmul.f32 1.442695, %v4540_v36 }
0x2dc3   :  { %v4563_v16 = vsel %vm1427_vm1, %v7322_v50, 0.0 }
0x2dc4   :  { %4564 = vadd.xlane.f32.xlu0 %v4563_v16  ;;  %7329 = vpow2.f32 %v4555_v17 }
0x2dca   :  { %v7324_v2 = vpop.eup %7323 }
0x2dcb   :  { %v4572_v22 = vsel %vm1427_vm1, %v7324_v2, 0.0  ;;  %v7326_v43 = vpop.eup %7325 }
0x2dcc   :  { %4573 = vadd.xlane.f32.xlu0 %v4572_v22  ;;  %v4569_v46 = vsel %vm1427_vm1, %v7326_v43, 0.0  ;;  %v7328_v28 = vpop.eup %7327 }
0x2dcd   :  { %v4575_v6 = vsel %vm1427_vm1, %v7328_v28, 0.0 }
0x2dce   :  { %v7330_v19 = vpop.eup %7329 }
0x2dcf   :  { %v4578_v49 = vsel %vm1427_vm1, %v7330_v19, 0.0 }
0x2dd0   :  { %4570 = vadd.xlane.f32.xlu0 %v4569_v46 }
0x2dd4   :  { %4576 = vadd.xlane.f32.xlu0 %v4575_v6 }
0x2dd8   :  { %4579 = vadd.xlane.f32.xlu0 %v4578_v49 }
0x2e45   :  { %v4562_v23 = vpop.xlane.xlu0 %4561 }
0x2e49   :  { %v4559_v44 = vpop.xlane.xlu0 %4558 }
0x2e4a   :  { %7331 = vrcp.f32 %v4559_v44 }
0x2e4b   :  { %7333 = vrcp.f32 %v4562_v23 }
0x2e4d   :  { %v4568_v24 = vpop.xlane.xlu0 %4567 }
0x2e51   :  { %v4565_v33 = vpop.xlane.xlu0 %4564 }
0x2e52   :  { %7335 = vrcp.f32 %v4565_v33 }
0x2e53   :  { %7337 = vrcp.f32 %v4568_v24 }
0x2e54   :  { %v7332_v48 = vpop.eup %7331 }
0x2e55   :  { %v4582_v27 = vmul.f32 %v7332_v48, %v7318_v3  ;;  %v7334_v35 = vpop.eup %7333 }
0x2e56   :  { %v4584_v26 = vmul.f32 %v7334_v35, %v7316_v31 }
0x2e57   :  { %4597 = vxpose.xlu0.b32.start [1/8] (short) (narrow) %v4582_v27, 8 }
0x2e59   :  { %v4574_v12 = vpop.xlane.xlu0 %4573 }
0x2e5b   :  { %4598 = vxpose.xlu0.b32.cont [2/8] (short) (narrow) %v4584_v26, 8 }
0x2e5c   :  { %v7336_v45 = vpop.eup %7335 }
0x2e5d   :  { %v4586_v47 = vmul.f32 %v7336_v45, %v7322_v50  ;;  %v4571_v5 = vpop.xlane.xlu0 %4570  ;;  %v7338_v13 = vpop.eup %7337 }
0x2e5e   :  { %7339 = vrcp.f32 %v4571_v5  ;;  %v4588_v36 = vmul.f32 %v7338_v13, %v7320_v20 }
0x2e5f   :  { %4599 = vxpose.xlu0.b32.cont [3/8] (short) (narrow) %v4586_v47, 8  ;;  %7341 = vrcp.f32 %v4574_v12 }
0x2e61   :  { %v4577_v16 = vpop.xlane.xlu0 %4576 }
0x2e62   :  { %7343 = vrcp.f32 %v4577_v16 }
0x2e63   :  { %4600 = vxpose.xlu0.b32.cont [4/8] (short) (narrow) %v4588_v36, 8 }
0x2e65   :  { %v4580_v17 = vpop.xlane.xlu0 %4579 }
0x2e66   :  { %7345 = vrcp.f32 %v4580_v17 }
0x2e68   :  { %v7340_v22 = vpop.eup %7339 }
0x2e69   :  { %v4590_v3 = vmul.f32 %v7340_v22, %v7326_v43  ;;  %v7342_v46 = vpop.eup %7341 }
0x2e6a   :  { %v4592_v31 = vmul.f32 %v7342_v46, %v7324_v2 }
0x2e6b   :  { %4601 = vxpose.xlu0.b32.cont [5/8] (short) (narrow) %v4590_v3, 8 }
0x2e6c   :  { %v7344_v6 = vpop.eup %7343 }
0x2e6d   :  { %v4594_v49 = vmul.f32 %v7344_v6, %v7328_v28 }
0x2e6f   :  { %4602 = vxpose.xlu0.b32.cont [6/8] (short) (narrow) %v4592_v31, 8 }
0x2e70   :  { %v7346_v50 = vpop.eup %7345 }
0x2e71   :  { %v4596_v23 = vmul.f32 %v7346_v50, %v7330_v19 }
0x2e73   :  { %4603 = vxpose.xlu0.b32.cont [7/8] (short) (narrow) %v4594_v49, 8 }
0x2e77   :  { %4604 = vxpose.xlu0.b32.end [8/8] (short) (narrow) %v4596_v23, 8 }
0x2edb   :  { %v4613_v44 = vpop.trf.xlu0 }
0x2edc   :  { %6569 = vmatmul.mubr.msk.f32.vlgmr.msra.gmra.mrb[138].mxu1 %vm1548_vm3, %v4613_v44 }
0x2edd   :  { %6573 = vmatprep.mubr.msk.f32.mxu1 %vm391_vm0, %v7863_v14 }
0x2faf   :  { %v4698_v20 = vpop.f32.mrb[138].mxu1 }
0x2fb0   :  { %4704 = vperm.xlu1 %6893, %v4698_v20   ;;  %v6570_v24 = vpop.f32.mrb[139].mxu1 }
0x302f   :  { %v4705_v43 = vpop.permute.xlu1 %4704 }
0x3030   :  { %7347 = vrcp.f32 %v4705_v43 }
0x303a   :  { %v7348_v33 = vpop.eup %7347 }
0x303b   :  { %v4708_v2 = vmul.f32 %v7348_v33, %v4698_v20 }
0x303d   :  { %6571 = vmatprep.subr.msk.mxu1 %vm391_vm0, %v4708_v2  ;;  %6631 = vmatprep.subr.mxu0 %v4708_v2 }
0x303e   :  { %6572 = vmatpush3.xpose.msk.msra.mxu1 %vm391_vm0, %v4708_v2  ;;  %6632 = vmatpush3.msra.mxu0 %v4708_v2 }
0x303f   :  { %6820 = vmatprep.subr.bf16.mxu1 %v7479_v51  ;;  %6852 = vmatprep.subr.bf16.mxu0 %v7479_v51 }
0x3041   :  { %6574 = vmatmul.mubr.msk.f32.vlgmr.msra.gmra.mrb[140].mxu1 %vm391_vm0, %v7874_v30 }
0x3042   :  { %6576 = vmatprep.mubr.msk.f32.mxu1 %vm391_vm0, %v7877_v34  ;;  %6823 = vmatpush3.bf16.xpose.msk.msra.mxu1 %vm8372_vm4, %v6821_v15 }
0x3043   :  { %6824 = vmatprep.subr.bf16.mxu1 %v7479_v51 }
0x3045   :  { %6577 = vmatmul.mubr.msk.f32.gmra.mrb[142].mxu1 %vm391_vm0, %v7887_v41 }
0x3046   :  { %6579 = vmatprep.mubr.msk.f32.mxu1 %vm391_vm0, %v7889_v42 }
0x3049   :  { %6580 = vmatmul.mubr.msk.f32.gmra.mrb[144].mxu1 %vm391_vm0, %v7905_v0 }
0x304a   :  { %6582 = vmatprep.mubr.msk.f32.mxu1 %vm391_vm0, %v7907_v1  ;;  %6827 = vmatpush3.bf16.xpose.msk.msra.mxu1 %vm8372_vm4, %v6825_v21 }
0x304b   :  { %6828 = vmatprep.subr.bf16.mxu1 %v7479_v51 }
0x304d   :  { %6583 = vmatmul.mubr.msk.f32.gmra.mrb[146].mxu1 %vm391_vm0, %v7922_v7 }
0x304e   :  { %6628 = vmatprep.mubr.msk.f32.mxu1 %vm7480_vm2, %v7481_v25 }
0x3052   :  { %6831 = vmatpush3.bf16.xpose.msk.msra.mxu1 %vm8372_vm4, %v6829_v40 }
0x3053   :  { %6832 = vmatprep.subr.bf16.mxu1 %v7479_v51 }
0x305a   :  { %6835 = vmatpush3.bf16.xpose.msk.msra.mxu1 %vm8372_vm4, %v6833_v37 }
0x305b   :  { %6836 = vmatprep.subr.bf16.mxu1 %v7479_v51 }
0x3062   :  { %6839 = vmatpush3.bf16.xpose.msk.msra.mxu1 %vm8372_vm4, %v6837_v57 }
0x3063   :  { %6840 = vmatprep.subr.bf16.mxu1 %v7479_v51 }
0x306a   :  { %6843 = vmatpush3.bf16.xpose.msk.msra.mxu1 %vm8372_vm4, %v6841_v55 }
0x306b   :  { %6844 = vmatprep.subr.bf16.mxu1 %v7479_v51 }
0x3072   :  { %6847 = vmatpush3.bf16.xpose.msk.msra.mxu1 %vm8372_vm4, %v6845_v63 }
0x3073   :  { %6848 = vmatprep.subr.bf16.mxu1 %v7479_v51 }
0x307a   :  { %6851 = vmatpush3.bf16.xpose.msk.msra.mxu1 %vm8372_vm4, %v6849_v61 }
0x3081   :  { %6629 = vmatmul.mubr.msk.f32.vlgmr.msra.gmra.mrb[148].mxu1 %vm391_vm0, %v8409_v39  ;;  %v5023_v39 = vstv %s5490_s6 }
0x3114   :  { %v6575_v21 = vpop.f32.mrb[140].mxu1 }
0x3115   :  { %v4778_v15 = vpop.f32.mrb[141].mxu1  ;;  %v4820_v57 = vsel %vm1427_vm1, %v6575_v21, -inf }
0x3116   :  { %v4817_v37 = vsel %vm1427_vm1, %v4778_v15, -inf }
0x3117   :  { %4818 = vmax.xlane.f32.xlu1 %v4817_v37 }
0x3118   :  { %v6578_v40 = vpop.f32.mrb[142].mxu1 }
0x3119   :  { %v4788_v55 = vpop.f32.mrb[143].mxu1  ;;  %v4826_v41 = vsel %vm1427_vm1, %v6578_v40, -inf }
0x311a   :  { %v4823_v30 = vsel %vm1427_vm1, %v4788_v55, -inf }
0x311b   :  { %4821 = vmax.xlane.f32.xlu1 %v4820_v57 }
0x311c   :  { %v6581_v63 = vpop.f32.mrb[144].mxu1 }
0x311d   :  { %v4798_v14 = vpop.f32.mrb[145].mxu1  ;;  %v4832_v1 = vsel %vm1427_vm1, %v6581_v63, -inf }
0x311e   :  { %v4829_v0 = vsel %vm1427_vm1, %v4798_v14, -inf }
0x311f   :  { %4824 = vmax.xlane.f32.xlu1 %v4823_v30 }
0x3120   :  { %v6584_v34 = vpop.f32.mrb[146].mxu1 }
0x3121   :  { %v4808_v61 = vpop.f32.mrb[147].mxu1  ;;  %v4838_v7 = vsel %vm1427_vm1, %v6584_v34, -inf }
0x3122   :  { %v4835_v42 = vsel %vm1427_vm1, %v4808_v61, -inf }
0x3123   :  { %4827 = vmax.xlane.f32.xlu1 %v4826_v41  ;;  %4836 = vmax.xlane.f32.xlu0 %v4835_v42 }
0x3127   :  { %4830 = vmax.xlane.f32.xlu1 %v4829_v0 }
0x312b   :  { %4833 = vmax.xlane.f32.xlu1 %v4832_v1 }
0x312f   :  { %4839 = vmax.xlane.f32.xlu1 %v4838_v7 }
0x3154   :  { %v5141_v28 = vpop.f32.mrb[148].mxu1 }
0x3155   :  { %v5142_v19 = vadd.f32 %v5141_v28, %v5023_v39  ;;  %v6630_v48 = vpop.f32.mrb[149].mxu1 }
0x3157   :  { %5145 = vst [vmem:[#allocation5] sm:$0x1] %v5142_v19 }
0x31a4   :  { %v4819_v27 = vpop.xlane.xlu1 %4818 }
0x31a5   :  { %v4841_v35 = vsub.f32 %v4778_v15, %v4819_v27 }
0x31a7   :  { %v4849_v26 = vmul.f32 1.442695, %v4841_v35 }
0x31a8   :  { %v4822_v12 = vpop.xlane.xlu1 %4821 }
0x31a9   :  { %7349 = vpow2.f32 %v4849_v26  ;;  %v4842_v45 = vsub.f32 %v6575_v21, %v4822_v12 }
0x31ab   :  { %v4851_v47 = vmul.f32 1.442695, %v4842_v45 }
0x31ac   :  { %v4825_v5 = vpop.xlane.xlu1 %4824 }
0x31ad   :  { %7351 = vpow2.f32 %v4851_v47  ;;  %v4843_v13 = vsub.f32 %v4788_v55, %v4825_v5 }
0x31af   :  { %v4853_v36 = vmul.f32 1.442695, %v4843_v13 }
0x31b0   :  { %v4828_v16 = vpop.xlane.xlu1 %4827  ;;  %v4837_v46 = vpop.xlane.xlu0 %4836 }
0x31b1   :  { %7353 = vpow2.f32 %v4853_v36  ;;  %v4844_v17 = vsub.f32 %v6578_v40, %v4828_v16  ;;  %v4847_v23 = vsub.f32 %v4808_v61, %v4837_v46 }
0x31b3   :  { %v7350_v22 = vpop.eup %7349  ;;  %v4855_v3 = vmul.f32 1.442695, %v4844_v17  ;;  %v4861_v2 = vmul.f32 1.442695, %v4847_v23 }
0x31b4   :  { %v4831_v31 = vpop.xlane.xlu1 %4830  ;;  %v4865_v6 = vsel %vm1427_vm1, %v7350_v22, 0.0 }
0x31b5   :  { %7355 = vpow2.f32 %v4855_v3  ;;  %v4845_v49 = vsub.f32 %v4798_v14, %v4831_v31  ;;  %4866 = vadd.xlane.f32.xlu1 %v4865_v6 }
0x31b7   :  { %v7352_v50 = vpop.eup %7351  ;;  %v4857_v44 = vmul.f32 1.442695, %v4845_v49 }
0x31b8   :  { %v4834_v20 = vpop.xlane.xlu1 %4833  ;;  %v4868_v24 = vsel %vm1427_vm1, %v7352_v50, 0.0 }
0x31b9   :  { %7357 = vpow2.f32 %v4857_v44  ;;  %v4846_v43 = vsub.f32 %v6581_v63, %v4834_v20  ;;  %4869 = vadd.xlane.f32.xlu1 %v4868_v24 }
0x31bb   :  { %v7354_v33 = vpop.eup %7353  ;;  %v4859_v21 = vmul.f32 1.442695, %v4846_v43 }
0x31bc   :  { %v4840_v15 = vpop.xlane.xlu1 %4839  ;;  %v4871_v37 = vsel %vm1427_vm1, %v7354_v33, 0.0 }
0x31bd   :  { %7359 = vpow2.f32 %v4859_v21  ;;  %v4848_v40 = vsub.f32 %v6584_v34, %v4840_v15  ;;  %4872 = vadd.xlane.f32.xlu1 %v4871_v37 }
0x31be   :  { %7361 = vpow2.f32 %v4861_v2 }
0x31bf   :  { %v7356_v55 = vpop.eup %7355  ;;  %v4863_v57 = vmul.f32 1.442695, %v4848_v40 }
0x31c0   :  { %v4874_v14 = vsel %vm1427_vm1, %v7356_v55, 0.0 }
0x31c1   :  { %4875 = vadd.xlane.f32.xlu1 %v4874_v14  ;;  %7363 = vpow2.f32 %v4863_v57 }
0x31c3   :  { %v7358_v30 = vpop.eup %7357 }
0x31c4   :  { %v4877_v63 = vsel %vm1427_vm1, %v7358_v30, 0.0 }
0x31c5   :  { %4878 = vadd.xlane.f32.xlu1 %v4877_v63 }
0x31c7   :  { %v7360_v61 = vpop.eup %7359 }
0x31c8   :  { %v4880_v41 = vsel %vm1427_vm1, %v7360_v61, 0.0  ;;  %v7362_v42 = vpop.eup %7361 }
0x31c9   :  { %4881 = vadd.xlane.f32.xlu1 %v4880_v41  ;;  %v4883_v0 = vsel %vm1427_vm1, %v7362_v42, 0.0 }
0x31cb   :  { %v7364_v34 = vpop.eup %7363 }
0x31cc   :  { %v4886_v1 = vsel %vm1427_vm1, %v7364_v34, 0.0 }
0x31cd   :  { %4884 = vadd.xlane.f32.xlu1 %v4883_v0 }
0x31d1   :  { %4887 = vadd.xlane.f32.xlu1 %v4886_v1 }
0x3242   :  { %v4867_v7 = vpop.xlane.xlu1 %4866 }
0x3243   :  { %7365 = vrcp.f32 %v4867_v7 }
0x3246   :  { %v4870_v39 = vpop.xlane.xlu1 %4869 }
0x3247   :  { %7367 = vrcp.f32 %v4870_v39 }
0x324a   :  { %v4873_v28 = vpop.xlane.xlu1 %4872 }
0x324b   :  { %7369 = vrcp.f32 %v4873_v28 }
0x324d   :  { %v7366_v19 = vpop.eup %7365 }
0x324e   :  { %v4876_v48 = vpop.xlane.xlu1 %4875  ;;  %v4890_v27 = vmul.f32 %v7366_v19, %v7350_v22 }
0x324f   :  { %7371 = vrcp.f32 %v4876_v48 }
0x3250   :  { %6633 = vmatprep.mubr.msk.f32.mxu0 %vm1427_vm1, %v4890_v27 }
0x3251   :  { %v7368_v35 = vpop.eup %7367 }
0x3252   :  { %v4892_v26 = vmul.f32 %v7368_v35, %v7352_v50  ;;  %v4879_v12 = vpop.xlane.xlu1 %4878 }
0x3253   :  { %7373 = vrcp.f32 %v4879_v12 }
0x3254   :  { %6634 = vmatmul.mubr.msk.f32.vlgmr.msra.gmra.mrb[132].mxu0 %vm1427_vm1, %v4892_v26 }
0x3255   :  { %v7370_v45 = vpop.eup %7369 }
0x3256   :  { %v4882_v47 = vpop.xlane.xlu1 %4881  ;;  %v4894_v5 = vmul.f32 %v7370_v45, %v7354_v33 }
0x3257   :  { %7375 = vrcp.f32 %v4882_v47 }
0x3258   :  { %6636 = vmatprep.mubr.msk.f32.mxu0 %vm1427_vm1, %v4894_v5 }
0x3259   :  { %v7372_v13 = vpop.eup %7371 }
0x325a   :  { %v4885_v36 = vpop.xlane.xlu1 %4884  ;;  %v4896_v16 = vmul.f32 %v7372_v13, %v7356_v55 }
0x325b   :  { %7377 = vrcp.f32 %v4885_v36 }
0x325c   :  { %6637 = vmatmul.mubr.msk.f32.gmra.mrb[134].mxu0 %vm1427_vm1, %v4896_v16 }
0x325d   :  { %v7374_v17 = vpop.eup %7373 }
0x325e   :  { %v4888_v22 = vpop.xlane.xlu1 %4887  ;;  %v4898_v3 = vmul.f32 %v7374_v17, %v7358_v30 }
0x325f   :  { %7379 = vrcp.f32 %v4888_v22 }
0x3260   :  { %6639 = vmatprep.mubr.msk.f32.mxu0 %vm1427_vm1, %v4898_v3 }
0x3261   :  { %v7376_v46 = vpop.eup %7375 }
0x3262   :  { %v4900_v31 = vmul.f32 %v7376_v46, %v7360_v61 }
0x3264   :  { %6640 = vmatmul.mubr.msk.f32.gmra.mrb[136].mxu0 %vm1427_vm1, %v4900_v31 }
0x3265   :  { %v7378_v6 = vpop.eup %7377 }
0x3266   :  { %v4902_v49 = vmul.f32 %v7378_v6, %v7362_v42 }
0x3268   :  { %6642 = vmatprep.mubr.msk.f32.mxu0 %vm1427_vm1, %v4902_v49 }
0x3269   :  { %v7380_v50 = vpop.eup %7379 }
0x326a   :  { %v4904_v23 = vmul.f32 %v7380_v50, %v7364_v34 }
0x326c   :  { %6643 = vmatmul.mubr.msk.f32.gmra.mrb[138].mxu0 %vm1427_vm1, %v4904_v23 }
0x326d   :  { %6677 = vmatprep.mubr.msk.f32.mxu0 %vm7480_vm2, %v7481_v25 }
0x3327   :  { %v6635_v44 = vpop.f32.mrb[132].mxu0 }
0x3328   :  { %v5276_v20 = vsub.f32 0.0, %v6635_v44  ;;  %v5236_v24 = vpop.f32.mrb[133].mxu0 }
0x3329   :  { %v5275_v43 = vsub.f32 0.0, %v5236_v24 }
0x332a   :  { %v5285_v33 = vmul.f32 1.442695, %v5276_v20 }
0x332b   :  { %v5283_v2 = vmul.f32 1.442695, %v5275_v43 }
0x332c   :  { %7381 = vpow2.f32 %v5285_v33 }
0x332d   :  { %7383 = vpow2.f32 %v5283_v2 }
0x332f   :  { %v6638_v21 = vpop.f32.mrb[134].mxu0 }
0x3330   :  { %v5278_v15 = vsub.f32 0.0, %v6638_v21  ;;  %v5246_v37 = vpop.f32.mrb[135].mxu0 }
0x3331   :  { %v5277_v40 = vsub.f32 0.0, %v5246_v37 }
0x3332   :  { %v5289_v55 = vmul.f32 1.442695, %v5278_v15 }
0x3333   :  { %v5287_v57 = vmul.f32 1.442695, %v5277_v40 }
0x3334   :  { %7385 = vpow2.f32 %v5289_v55 }
0x3335   :  { %7387 = vpow2.f32 %v5287_v57 }
0x3336   :  { %v7382_v14 = vpop.eup %7381 }
0x3337   :  { %v7384_v30 = vpop.eup %7383  ;;  %v5300_v63 = vadd.f32 1.0, %v7382_v14  ;;  %v6641_v25 = vpop.f32.mrb[136].mxu0 }
0x3338   :  { %v5299_v61 = vadd.f32 1.0, %v7384_v30  ;;  %v5280_v41 = vsub.f32 0.0, %v6641_v25  ;;  %v5256_v42 = vpop.f32.mrb[137].mxu0 }
0x3339   :  { %7389 = vrcp.f32 %v5300_v63  ;;  %v5279_v0 = vsub.f32 0.0, %v5256_v42 }
0x333a   :  { %7391 = vrcp.f32 %v5299_v61  ;;  %v5293_v34 = vmul.f32 1.442695, %v5280_v41 }
0x333b   :  { %v5291_v1 = vmul.f32 1.442695, %v5279_v0 }
0x333c   :  { %7393 = vpow2.f32 %v5293_v34 }
0x333d   :  { %7395 = vpow2.f32 %v5291_v1 }
0x333e   :  { %v7386_v7 = vpop.eup %7385 }
0x333f   :  { %v7388_v39 = vpop.eup %7387  ;;  %v5302_v28 = vadd.f32 1.0, %v7386_v7  ;;  %v6644_v19 = vpop.f32.mrb[138].mxu0 }
0x3340   :  { %v5301_v48 = vadd.f32 1.0, %v7388_v39  ;;  %v5282_v27 = vsub.f32 0.0, %v6644_v19  ;;  %v5266_v35 = vpop.f32.mrb[139].mxu0 }
0x3341   :  { %7397 = vrcp.f32 %v5302_v28  ;;  %v5281_v26 = vsub.f32 0.0, %v5266_v35 }
0x3342   :  { %7399 = vrcp.f32 %v5301_v48  ;;  %v5297_v12 = vmul.f32 1.442695, %v5282_v27 }
0x3343   :  { %v7390_v45 = vpop.eup %7389  ;;  %v5295_v47 = vmul.f32 1.442695, %v5281_v26 }
0x3344   :  { %v7392_v5 = vpop.eup %7391  ;;  %7401 = vpow2.f32 %v5297_v12  ;;  %v5324_v13 = vmul.f32 %v7390_v45, %v7783_v11  ;;  %v5332_v36 = vmul.f32 %v7390_v45, %v7845_v56 }
0x3345   :  { %7403 = vpow2.f32 %v5295_v47  ;;  %v5323_v16 = vmul.f32 %v7392_v5, %v7771_v10  ;;  %v5331_v17 = vmul.f32 %v7392_v5, %v7839_v53 }
0x3346   :  { %v7394_v22 = vpop.eup %7393 }
0x3347   :  { %v7396_v3 = vpop.eup %7395  ;;  %v5304_v46 = vadd.f32 1.0, %v7394_v22  ;;  %v6853_v31 = vpack.c.bf16 %v5324_v13, %v5323_v16  ;;  %v6869_v6 = vpack.c.bf16 %v5332_v36, %v5331_v17 }
0x3348   :  { %v5303_v49 = vadd.f32 1.0, %v7396_v3 }
0x3349   :  { %7405 = vrcp.f32 %v5304_v46  ;;  %6855 = vmatpush3.bf16.xpose.msk.msra.mxu0 %vm8372_vm4, %v6853_v31 }
0x334a   :  { %7407 = vrcp.f32 %v5303_v49  ;;  %6856 = vmatprep.subr.bf16.mxu0 %v7479_v51 }
0x334b   :  { %v7398_v11 = vpop.eup %7397 }
0x334c   :  { %v7400_v56 = vpop.eup %7399  ;;  %v5326_v50 = vmul.f32 %v7398_v11, %v7775_v18  ;;  %v5334_v10 = vmul.f32 %v7398_v11, %v7841_v54 }
0x334d   :  { %v5325_v53 = vmul.f32 %v7400_v56, %v7769_v9  ;;  %v5333_v23 = vmul.f32 %v7400_v56, %v7837_v52 }
0x334e   :  { %v7402_v44 = vpop.eup %7401 }
0x334f   :  { %v7404_v20 = vpop.eup %7403  ;;  %v5306_v24 = vadd.f32 1.0, %v7402_v44  ;;  %v6857_v43 = vpack.c.bf16 %v5326_v50, %v5325_v53  ;;  %v6873_v33 = vpack.c.bf16 %v5334_v10, %v5333_v23 }
0x3350   :  { %v5305_v2 = vadd.f32 1.0, %v7404_v20 }
0x3351   :  { %7409 = vrcp.f32 %v5306_v24  ;;  %6859 = vmatpush3.bf16.xpose.msk.msra.mxu0 %vm8372_vm4, %v6857_v43 }
0x3352   :  { %7411 = vrcp.f32 %v5305_v2  ;;  %6860 = vmatprep.subr.bf16.mxu0 %v7479_v51 }
0x3353   :  { %v7406_v18 = vpop.eup %7405 }
0x3354   :  { %v7408_v21 = vpop.eup %7407  ;;  %v5328_v54 = vmul.f32 %v7406_v18, %v7817_v38  ;;  %v5336_v9 = vmul.f32 %v7406_v18, %v7857_v62 }
0x3355   :  { %v5327_v52 = vmul.f32 %v7408_v21, %v7803_v29  ;;  %v5335_v15 = vmul.f32 %v7408_v21, %v7851_v59 }
0x3357   :  { %v6861_v37 = vpack.c.bf16 %v5328_v54, %v5327_v52  ;;  %v6877_v40 = vpack.c.bf16 %v5336_v9, %v5335_v15 }
0x3359   :  { %6863 = vmatpush3.bf16.xpose.msk.msra.mxu0 %vm8372_vm4, %v6861_v37 }
0x335a   :  { %6864 = vmatprep.subr.bf16.mxu0 %v7479_v51 }
0x335b   :  { %v7410_v55 = vpop.eup %7409 }
0x335c   :  { %v7412_v57 = vpop.eup %7411  ;;  %v5330_v14 = vmul.f32 %v7410_v55, %v7807_v32  ;;  %v5338_v30 = vmul.f32 %v7410_v55, %v7853_v60 }
0x335d   :  { %v5329_v38 = vmul.f32 %v7412_v57, %v7800_v4  ;;  %v5337_v62 = vmul.f32 %v7412_v57, %v7849_v58  ;;  %v7483_v4 = vmov 1.0  }
0x335f   :  { %v6865_v29 = vpack.c.bf16 %v5330_v14, %v5329_v38  ;;  %v6881_v63 = vpack.c.bf16 %v5338_v30, %v5337_v62 }
0x3361   :  { %6867 = vmatpush3.bf16.xpose.msk.msra.mxu0 %vm8372_vm4, %v6865_v29 }
0x3362   :  { %6868 = vmatprep.subr.bf16.mxu0 %v7479_v51 }
0x3369   :  { %6871 = vmatpush3.bf16.xpose.msk.msra.mxu0 %vm8372_vm4, %v6869_v6 }
0x336a   :  { %6872 = vmatprep.subr.bf16.mxu0 %v7479_v51 }
0x3371   :  { %6875 = vmatpush3.bf16.xpose.msk.msra.mxu0 %vm8372_vm4, %v6873_v33 }
0x3372   :  { %6876 = vmatprep.subr.bf16.mxu0 %v7479_v51 }
0x3379   :  { %6879 = vmatpush3.bf16.xpose.msk.msra.mxu0 %vm8372_vm4, %v6877_v40 }
0x337a   :  { %6880 = vmatprep.subr.bf16.mxu0 %v7479_v51 }
0x3381   :  { %6883 = vmatpush3.bf16.xpose.msk.msra.mxu0 %vm8372_vm4, %v6881_v63 }
0x3388   :  { %6678 = vmatmul.mubr.msk.f32.vlgmr.msra.gmra.mrb[140].mxu0 %vm391_vm0, %v7483_v4 }
0x3389   :  { %7438 = shalt.err (!%p7435_p9)
}
0x338a   :  { %s7439_s2 = scalar_lea.hbm %s8591_s7, 16 }
0x338b   :  { %p7440_p10 = scmp.ne.s32.totalorder %s8591_s7, %s7439_s2  ;;  %p7443_p11 = scmp.lt.u32.totalorder %s7439_s2, %s8591_s7 }
0x338d   :  { %p7445_p12 = pnand %p7443_p11, %p7440_p10 }
0x338f   :  { %7448 = shalt.err (!%p7445_p12)
}
0x3390   :  { %5470 = dma.vmem_to_hbm [thread:$0]  %s5468_s13, 16, %s8591_s7, [#allocation3]  }
0x3391   :  { %s7485_s4 = smov [#allocation6]  }
0x3392   :  { %s5477_s22 = sshll.u32 %s7485_s4, 4  ;;  %s5478_s22 = int_to_ptr.vmem [resolvable:$true] %s5477_s22 }
0x3393   :  { %s7449_s23 = scalar_lea.vmem %s5478_s22, 16  ;;  %s7453_s24 = scalar_lea.vmem %s5478_s22, 32 }
0x3394   :  { %p7450_p13 = scmp.ne.s32.totalorder %s5478_s22, %s7449_s23  ;;  %p7454_p0 = scmp.lt.s32.totalorder %s5478_s22, %s5478_s22 }
0x3395   :  { %p7455_p1 = scmp.lt.s32.totalorder %s7453_s24, %s7449_s23 }
0x3397   :  { %p7456_p2 = por %p7455_p1, %p7454_p0 }
0x3399   :  { %p7457_p3 = pnand %p7456_p2, %p7450_p13 }
0x345b   :  { %v5456_v32 = vpop.f32.mrb[140].mxu0 }
0x345c   :  { %5460 = vst [vmem:[#allocation6] sm:$0x1] %v5456_v32  ;;  %v6679_v51 = vpop.f32.mrb[141].mxu0 }
0x345d   :  { %7460 = shalt.err (!%p7457_p3)
}
0x345e   :  { %s7461_s1 = scalar_lea.hbm %s8592_s8, 16 }
0x345f   :  { %p7462_p4 = scmp.ne.s32.totalorder %s8592_s8, %s7461_s1  ;;  %p7465_p5 = scmp.lt.u32.totalorder %s7461_s1, %s8592_s8 }
0x3461   :  { %p7467_p6 = pnand %p7465_p5, %p7462_p4 }
0x3463   :  { %7470 = shalt.err (!%p7467_p6)
}
0x3464   :  { %5480 = dma.vmem_to_hbm [thread:$0]  %s5478_s22, 16, %s8592_s8, [#allocation7]  }
0x3465   :  { %7473 = dma.done.wait [#allocation3], 16  }
0x3466   :  { %7474 = vsyncadd [#allocation3], 4294967280 }
0x3467   :  { %7475 = dma.done.wait [#allocation7], 16  }
0x3468   :  { %7476 = vsyncadd [#allocation7], 4294967280 }
0x3469   :  { %5487 = vsyncpa [#allocation3], 1 }
0x346a   :  { %5488 = vsyncpa [#allocation7], 1 }
0x346b   :  { %5489 = vsyncpa [#allocation4], 1 }

</bundles_post_ra>
